<compile_context>
chip_gen: v6e
topology: v6e:2x2x1
jax: 0.10.0
libtpu: 0.0.40
codegen_flags: <defaults>
</compile_context>

<pallas_src>
import functools

import jax
import jax.numpy as jnp
from jax.experimental import pallas as pl
from jax.experimental.pallas import tpu as pltpu

EPS = 1e-5                    # nn.BatchNorm2d default eps
KSIZE = 3                     # kernel_size (module used with ks=3, padding=1)
PAD = 1
LANE = 128                    # lane width: channels padded to this in VMEM only
MATMUL_DTYPE = jnp.bfloat16   # MXU operand dtype (accumulation is always f32);
                              # set to jnp.float32 for exact-f32 conv math.


def _round_up(n, m):
    return (n + m - 1) // m * m


# ---------------------------------------------------------------------------
# In-kernel helpers
# ---------------------------------------------------------------------------
def _bn_relu_conv_tile(rows, scale_ref, shift_ref, w_ref, b_ref):
    """BN(scale/shift) -> ReLU -> ReflectionPad(W) -> 3x3 'valid' conv of one
    halo-row tile.

    rows: (th+2, W, C) f32 -- th output rows plus one halo row above/below.
    Returns the conv output as (th*W, Cp) f32 (Cp = lane-padded channels).
    """
    th2, w, c = rows.shape
    th = th2 - 2
    cp = scale_ref.shape[-1]

    # Lane-pad channels in VMEM only (padded scale/shift/weights/bias are zero).
    if cp != c:
        rows = jnp.concatenate(
            [rows, jnp.zeros((th2, w, cp - c), rows.dtype)], axis=-1)

    # Folded training-mode BatchNorm + ReLU (f32).
    a = jnp.maximum(rows * scale_ref[...].reshape(1, 1, cp)
                    + shift_ref[...].reshape(1, 1, cp), 0.0)

    # ReflectionPad2d(1) along W, built in VMEM; the column axis is zero-padded
    # up to a multiple of 8 (sublane alignment).  Extra zero columns are never
    # selected by the kx taps below, so the math is exact.
    wp = _round_up(w + 2, 8)
    cols = [a[:, 1:2, :], a, a[:, w - 2:w - 1, :]]
    if wp > w + 2:
        cols.append(jnp.zeros((th2, wp - (w + 2), cp), a.dtype))
    a = jnp.concatenate(cols, axis=1)                      # (th+2, wp, cp)

    # Cast the activated tile to the MXU operand dtype exactly ONCE.
    a = a.astype(MATMUL_DTYPE)

    # 3x3 conv as 3 accumulating matmuls (one per kernel row); contraction
    # depth K = 3*Cp fills the 256-deep MXU on v6e/v7x, f32 accumulation.
    acc = jnp.zeros((th * w, cp), jnp.float32)
    for ky in range(KSIZE):
        lhs = jnp.concatenate(
            [a[ky:ky + th, kx:kx + w, :] for kx in range(KSIZE)], axis=-1)
        acc = acc + jnp.dot(lhs.reshape(th * w, KSIZE * cp), w_ref[ky],
                            preferred_element_type=jnp.float32)
    return acc + b_ref[...]                                 # (1, cp) bias bcast


def _conv1_kernel(xm_ref, xt_ref, xb_ref, scale_ref, shift_ref, w_ref, b_ref,
                  c1_ref, s_ref):
    """BN1 -> ReLU -> reflect-pad -> conv1 on one (th, W) row tile; also emits
    this tile's per-channel sum / sum-of-squares (partial BN2 statistics)."""
    _, th, w, c = xm_ref.shape
    rows = jnp.concatenate([xt_ref[0], xm_ref[0], xb_ref[0]], axis=0)
    y = _bn_relu_conv_tile(rows, scale_ref, shift_ref, w_ref, b_ref)[:, :c]
    c1_ref[...] = y.reshape(1, th, w, c)
    s_ref[...] = jnp.concatenate(
        [jnp.sum(y, axis=0, keepdims=True),
         jnp.sum(y * y, axis=0, keepdims=True)], axis=0).reshape(1, 1, 2, c)


def _conv2_kernel(c1m_ref, c1t_ref, c1b_ref, xres_ref, scale_ref, shift_ref,
                  w_ref, b_ref, o_ref):
    """BN2 -> ReLU -> reflect-pad -> conv2 -> + residual on one row tile."""
    _, th, w, c = c1m_ref.shape
    rows = jnp.concatenate([c1t_ref[0], c1m_ref[0], c1b_ref[0]], axis=0)
    y = _bn_relu_conv_tile(rows, scale_ref, shift_ref, w_ref, b_ref)[:, :c]
    o_ref[...] = y.reshape(1, th, w, c) + xres_ref[...]


# ---------------------------------------------------------------------------
# Wrapper
# ---------------------------------------------------------------------------
def _vmem_budget():
    """(physical VMEM, scoped limit to request) -- generation aware."""
    try:
        cap = int(pltpu.get_tpu_info().vmem_capacity_bytes)
    except Exception:
        cap = 64 * 1024 * 1024                      # conservative (v7x-sized) floor
    limit = min(int(cap * 0.80), cap - 8 * 1024 * 1024)
    return cap, limit


def _tile_vmem_estimate(th, w, c, cp):
    """Rough per-grid-step VMEM footprint (double-buffered I/O + conv scratch)."""
    wp = _round_up(w + 2, 8)
    io = 2 * 2 * ((th + 2) * w * c * 4)             # in tile + out tile, 2 buffers each
    act = (th + 2) * wp * cp * (4 + 2)              # f32 activated + bf16 cast
    lhs = th * w * KSIZE * cp * 2                   # per-ky matmul operand
    acc = th * w * cp * 4                           # f32 accumulator
    weights = 2 * KSIZE * KSIZE * cp * cp * 2       # resident conv weights (2 bufs)
    return io + act + lhs + acc + weights


def _pick_tile_h(h, w, c, cp, budget):
    """Largest divisor of H whose estimated footprint fits the VMEM budget."""
    for th in range(h, 0, -1):
        if h % th == 0 and _tile_vmem_estimate(th, w, c, cp) <= budget:
            return th
    return 1


def _fold_bn(total_sum, total_sumsq, count, gamma, beta):
    """Training-mode BatchNorm (batch stats, biased var, eps) + affine folded
    into a per-channel scale/shift."""
    mean = total_sum / count
    # TODO(synk): E[x^2]-E[x]^2 cancels for large-mean channels; a Welford /
    # shifted-moment accumulation would be more robust.
    var = jnp.maximum(total_sumsq / count - mean * mean, 0.0)
    scale = jax.lax.rsqrt(var + EPS) * gamma
    shift = beta - mean * scale
    return scale, shift


def _pad_vec(v, cp):
    v = jnp.asarray(v).reshape(1, -1).astype(jnp.float32)
    pad = cp - v.shape[-1]
    return v if pad == 0 else jnp.pad(v, ((0, 0), (0, pad)))


def _prep_weight(wq, cp):
    """(3,3,Cin,Cout) HWIO -> (3, 3*Cp, Cp) per-ky matmul matrices, MXU dtype."""
    ci, co = wq.shape[2], wq.shape[3]
    wq = jnp.pad(wq.astype(jnp.float32),
                 ((0, 0), (0, 0), (0, cp - ci), (0, cp - co)))
    return wq.reshape(KSIZE, KSIZE * cp, cp).astype(MATMUL_DTYPE)


def residual_block_nhwc(x, params, tile_h=None):
    x = x.astype(jnp.float32)
    n, h, w, c = x.shape
    assert h >= 2 and w >= 2, "ReflectionPad2d(1) needs spatial dims >= 2"
    assert params["w1"].shape == (KSIZE, KSIZE, c, c), "residual add needs in==out planes"
    cp = _round_up(c, LANE)

    _, vmem_limit = _vmem_budget()
    th = tile_h if tile_h is not None else _pick_tile_h(h, w, c, cp,
                                                        int(vmem_limit * 0.6))
    assert h % th == 0, f"H={h} must be a multiple of tile_h={th}"
    n_h = h // th
    count = n * h * w

    # ---- BN1 batch statistics: one fused plain-JAX read of x (per review) ----
    s1 = jnp.sum(x, axis=(0, 1, 2))
    sq1 = jnp.sum(x * x, axis=(0, 1, 2))
    scale1, shift1 = _fold_bn(s1, sq1, count,
                              params["g1"].astype(jnp.float32),
                              params["b1"].astype(jnp.float32))
    scale1 = _pad_vec(scale1, cp)
    shift1 = _pad_vec(shift1, cp)
    cb1 = _pad_vec(params["cb1"], cp)
    cb2 = _pad_vec(params["cb2"], cp)
    w1m = _prep_weight(params["w1"], cp)
    w2m = _prep_weight(params["w2"], cp)

    grid = (n, n_h)
    # Main tile plus two 1-row halo views of the SAME un-padded HBM array; the
    # halo index_maps pick the neighbouring row, or the ReflectionPad2d(1) row
    # (row 1 / row H-2) at the image borders.  No halo copy is materialized.
    main_spec = pl.BlockSpec((1, th, w, c), lambda i, j: (i, j, 0, 0))
    top_spec = pl.BlockSpec(
        (1, 1, w, c), lambda i, j: (i, jnp.where(j == 0, 1, j * th - 1), 0, 0))
    bot_spec = pl.BlockSpec(
        (1, 1, w, c),
        lambda i, j: (i, jnp.where(j == n_h - 1, h - 2, (j + 1) * th), 0, 0))
    vec_spec = pl.BlockSpec((1, cp), lambda i, j: (0, 0))
    wgt_spec = pl.BlockSpec((KSIZE, KSIZE * cp, cp), lambda i, j: (0, 0, 0))
    stat_spec = pl.BlockSpec((1, 1, 2, c), lambda i, j: (i, j, 0, 0))

    cparams = pltpu.CompilerParams(
        dimension_semantics=("parallel", "parallel"),   # megacore on either axis
        vmem_limit_bytes=vmem_limit)

    # ---- pass 1: BN1 -> ReLU -> conv1, + per-tile partial BN2 statistics ----
    c1, s2 = pl.pallas_call(
        _conv1_kernel,
        grid=grid,
        in_specs=[main_spec, top_spec, bot_spec,
                  vec_spec, vec_spec, wgt_spec, vec_spec],
        out_specs=(main_spec, stat_spec),
        out_shape=(jax.ShapeDtypeStruct((n, h, w, c), jnp.float32),
                   jax.ShapeDtypeStruct((n, n_h, 2, c), jnp.float32)),
        compiler_params=cparams,
    )(x, x, x, scale1, shift1, w1m, cb1)
    # TODO(synk): store c1 as bf16 to halve the intermediate HBM round trip (it
    # is recast to bf16 for conv2's matmul anyway); kept f32 for tolerance headroom.

    tot2 = jnp.sum(s2, axis=(0, 1))                      # (2, C) global BN2 sums
    scale2, shift2 = _fold_bn(tot2[0], tot2[1], count,
                              params["g2"].astype(jnp.float32),
                              params["b2"].astype(jnp.float32))
    scale2 = _pad_vec(scale2, cp)
    shift2 = _pad_vec(shift2, cp)

    # ---- pass 2: BN2 -> ReLU -> conv2 -> + residual ----
    out = pl.pallas_call(
        _conv2_kernel,
        grid=grid,
        in_specs=[main_spec, top_spec, bot_spec, main_spec,
                  vec_spec, vec_spec, wgt_spec, vec_spec],
        out_specs=main_spec,
        out_shape=jax.ShapeDtypeStruct((n, h, w, c), jnp.float32),
        input_output_aliases={3: 0},     # residual input's HBM buffer -> output
        compiler_params=cparams,
    )(c1, c1, c1, x, scale2, shift2, w2m, cb2)
    return out


@functools.partial(jax.jit, static_argnames=("tile_h",))
def residual_block(x_nchw, params, tile_h=None):
    # PyTorch-layout (NCHW) entry point; the Pallas passes run in NHWC.
    # TODO(synk): if the surrounding model is NHWC, call residual_block_nhwc
    # directly and drop these two layout transposes.
    x = jnp.transpose(x_nchw, (0, 2, 3, 1))
    out = residual_block_nhwc(x, params, tile_h=tile_h)
    return jnp.transpose(out, (0, 3, 1, 2))


# ---------------------------------------------------------------------------
# Pure-JAX reference + params
# ---------------------------------------------------------------------------
def ref_forward(x_nchw, p, matmul_dtype=jnp.float32):
    """Reference. matmul_dtype=bf16 mirrors the kernel's MXU operand precision
    (both accumulate in f32); matmul_dtype=f32 is the exact PyTorch-f32 math."""
    x = jnp.transpose(x_nchw, (0, 2, 3, 1)).astype(jnp.float32)

    def bn_relu(v, g, b):
        m = jnp.mean(v, axis=(0, 1, 2), keepdims=True)
        var = jnp.mean((v - m) ** 2, axis=(0, 1, 2), keepdims=True)
        vn = (v - m) * jax.lax.rsqrt(var + EPS)
        return jax.nn.relu(vn * g.reshape(1, 1, 1, -1) + b.reshape(1, 1, 1, -1))

    def rpad(v):
        return jnp.pad(v, ((0, 0), (PAD, PAD), (PAD, PAD), (0, 0)), mode="reflect")

    def conv(v, w, b):
        o = jax.lax.conv_general_dilated(
            v.astype(matmul_dtype), w.astype(matmul_dtype), (1, 1), "VALID",
            dimension_numbers=("NHWC", "HWIO", "NHWC"),
            preferred_element_type=jnp.float32)
        return o + b.reshape(1, 1, 1, -1)

    h1 = conv(rpad(bn_relu(x, p["g1"], p["b1"])), p["w1"], p["cb1"])
    h2 = conv(rpad(bn_relu(h1, p["g2"], p["b2"])), p["w2"], p["cb2"])
    return jnp.transpose(h2 + x, (0, 3, 1, 2))


def make_params(key, in_planes, out_planes):
    ks = jax.random.split(key, 8)
    s1 = 1.0 / jnp.sqrt(in_planes * KSIZE * KSIZE)
    s2 = 1.0 / jnp.sqrt(out_planes * KSIZE * KSIZE)
    return {
        "g1": jax.random.uniform(ks[0], (in_planes,), jnp.float32, 0.5, 1.5),
        "b1": jax.random.normal(ks[1], (in_planes,), jnp.float32) * 0.1,
        "g2": jax.random.uniform(ks[2], (out_planes,), jnp.float32, 0.5, 1.5),
        "b2": jax.random.normal(ks[3], (out_planes,), jnp.float32) * 0.1,
        # Conv weights in HWIO layout (kh, kw, Cin, Cout)
        "w1": jax.random.uniform(ks[4], (KSIZE, KSIZE, in_planes, out_planes),
                                 jnp.float32, -s1, s1),
        "cb1": jax.random.uniform(ks[5], (out_planes,), jnp.float32, -s1, s1),
        "w2": jax.random.uniform(ks[6], (KSIZE, KSIZE, out_planes, out_planes),
                                 jnp.float32, -s2, s2),
        "cb2": jax.random.uniform(ks[7], (out_planes,), jnp.float32, -s2, s2),
    }


if __name__ == "__main__":
    N, C, H, W = 2, 4, 16, 16        # in_planes = out_planes = 4
    key = jax.random.PRNGKey(0)
    kx, kp = jax.random.split(key)

    x = jax.random.normal(kx, (N, C, H, W), jnp.float32)   # NCHW, like PyTorch
    params = make_params(kp, C, C)

    ref_mx = ref_forward(x, params, matmul_dtype=jnp.bfloat16)  # matched MXU precision
    ref_fp = ref_forward(x, params, matmul_dtype=jnp.float32)   # exact f32 math

    # tile_h=8 exercises cross-tile halo rows; tile_h=None exercises the
    # VMEM-budget-driven tile picker (single 16-row tile here).
    for th in (8, None):
        out = jax.block_until_ready(residual_block(x, params, tile_h=th))
        assert out.shape == (N, C, H, W)
        err_mx = float(jnp.max(jnp.abs(out - ref_mx)))
        err_fp = float(jnp.max(jnp.abs(out - ref_fp)))
        assert err_mx < 1e-2, f"tile_h={th}: mismatch vs matched-precision ref: {err_mx}"
        assert err_fp < 5e-2, f"tile_h={th}: mismatch vs full-f32 ref: {err_fp}"

    print("KERNEL_OK")
</pallas_src>

<mosaic_0001>
module attributes {stable_mosaic.version = 11 : i64} {
  func.func @_conv1_kernel(%arg0: i32, %arg1: i32, %arg2: memref<1x8x16x4xf32, #tpu.memory_space<vmem>>, %arg3: memref<1x1x16x4xf32, #tpu.memory_space<vmem>>, %arg4: memref<1x1x16x4xf32, #tpu.memory_space<vmem>>, %arg5: memref<1x128xf32, #tpu.memory_space<vmem>>, %arg6: memref<1x128xf32, #tpu.memory_space<vmem>>, %arg7: memref<3x384x128xbf16, #tpu.memory_space<vmem>>, %arg8: memref<1x128xf32, #tpu.memory_space<vmem>>, %arg9: memref<1x8x16x4xf32, #tpu.memory_space<vmem>>, %arg10: memref<1x1x2x4xf32, #tpu.memory_space<vmem>>) attributes {dimension_semantics = [#tpu.dimension_semantics<parallel>, #tpu.dimension_semantics<parallel>], iteration_bounds = array<i64: 2, 2>, scalar_prefetch = 0 : i64, scratch_operands = 0 : i64, tpu.core_type = #tpu.core_type<tc>, window_params = [{transform_indices = @transform_0, window_bounds = array<i64: 1, 8, 16, 4>}, {transform_indices = @transform_1, window_bounds = array<i64: 1, 1, 16, 4>}, {transform_indices = @transform_2, window_bounds = array<i64: 1, 1, 16, 4>}, {pipeline_mode = #tpu.pipeline_mode<synchronous>, transform_indices = @transform_3, window_bounds = array<i64: 1, 128>}, {pipeline_mode = #tpu.pipeline_mode<synchronous>, transform_indices = @transform_4, window_bounds = array<i64: 1, 128>}, {pipeline_mode = #tpu.pipeline_mode<synchronous>, transform_indices = @transform_5, window_bounds = array<i64: 3, 384, 128>}, {pipeline_mode = #tpu.pipeline_mode<synchronous>, transform_indices = @transform_6, window_bounds = array<i64: 1, 128>}, {transform_indices = @transform_7, window_bounds = array<i64: 1, 8, 16, 4>}, {transform_indices = @transform_8, window_bounds = array<i64: 1, 1, 2, 4>}]} {
    %c0 = arith.constant 0 : index
    %c0_0 = arith.constant 0 : index
    %c0_1 = arith.constant 0 : index
    %c0_2 = arith.constant 0 : index
    %0 = vector.load %arg3[%c0, %c0_0, %c0_1, %c0_2] : memref<1x1x16x4xf32, #tpu.memory_space<vmem>>, vector<1x1x16x4xf32>
    %1 = vector.shape_cast %0 : vector<1x1x16x4xf32> to vector<1x16x4xf32>
    %c0_3 = arith.constant 0 : index
    %c0_4 = arith.constant 0 : index
    %c0_5 = arith.constant 0 : index
    %c0_6 = arith.constant 0 : index
    %2 = vector.load %arg2[%c0_3, %c0_4, %c0_5, %c0_6] : memref<1x8x16x4xf32, #tpu.memory_space<vmem>>, vector<1x8x16x4xf32>
    %3 = vector.shape_cast %2 : vector<1x8x16x4xf32> to vector<8x16x4xf32>
    %c0_7 = arith.constant 0 : index
    %c0_8 = arith.constant 0 : index
    %c0_9 = arith.constant 0 : index
    %c0_10 = arith.constant 0 : index
    %4 = vector.load %arg4[%c0_7, %c0_8, %c0_9, %c0_10] : memref<1x1x16x4xf32, #tpu.memory_space<vmem>>, vector<1x1x16x4xf32>
    %5 = vector.shape_cast %4 : vector<1x1x16x4xf32> to vector<1x16x4xf32>
    %6 = tpu.concatenate %1, %3, %5 in 0 : vector<1x16x4xf32>, vector<8x16x4xf32>, vector<1x16x4xf32> -> vector<10x16x4xf32>
    %cst = arith.constant 0.000000e+00 : f32
    %7 = vector.broadcast %cst : f32 to vector<10x16x124xf32>
    %8 = tpu.concatenate %6, %7 in 2 : vector<10x16x4xf32>, vector<10x16x124xf32> -> vector<10x16x128xf32>
    %c0_11 = arith.constant 0 : index
    %c0_12 = arith.constant 0 : index
    %9 = vector.load %arg5[%c0_11, %c0_12] : memref<1x128xf32, #tpu.memory_space<vmem>>, vector<1x128xf32>
    %10 = vector.shape_cast %9 : vector<1x128xf32> to vector<1x1x128xf32>
    %11 = vector.broadcast %10 : vector<1x1x128xf32> to vector<10x16x128xf32>
    %12 = arith.mulf %8, %11 : vector<10x16x128xf32>
    %c0_13 = arith.constant 0 : index
    %c0_14 = arith.constant 0 : index
    %13 = vector.load %arg6[%c0_13, %c0_14] : memref<1x128xf32, #tpu.memory_space<vmem>>, vector<1x128xf32>
    %14 = vector.shape_cast %13 : vector<1x128xf32> to vector<1x1x128xf32>
    %15 = vector.broadcast %14 : vector<1x1x128xf32> to vector<10x16x128xf32>
    %16 = arith.addf %12, %15 : vector<10x16x128xf32>
    %cst_15 = arith.constant 0.000000e+00 : f32
    %17 = vector.broadcast %cst_15 : f32 to vector<10x16x128xf32>
    %18 = arith.maximumf %16, %17 : vector<10x16x128xf32>
    %19 = vector.extract_strided_slice %18 {offsets = [0, 1, 0], sizes = [10, 1, 128], strides = [1, 1, 1]} : vector<10x16x128xf32> to vector<10x1x128xf32>
    %20 = vector.extract_strided_slice %18 {offsets = [0, 14, 0], sizes = [10, 1, 128], strides = [1, 1, 1]} : vector<10x16x128xf32> to vector<10x1x128xf32>
    %cst_16 = arith.constant 0.000000e+00 : f32
    %21 = vector.broadcast %cst_16 : f32 to vector<10x6x128xf32>
    %22 = tpu.concatenate %19, %18, %20, %21 in 1 : vector<10x1x128xf32>, vector<10x16x128xf32>, vector<10x1x128xf32>, vector<10x6x128xf32> -> vector<10x24x128xf32>
    %23 = arith.truncf %22 : vector<10x24x128xf32> to vector<10x24x128xbf16>
    %cst_17 = arith.constant 0.000000e+00 : f32
    %24 = vector.broadcast %cst_17 : f32 to vector<128x128xf32>
    %25 = vector.extract_strided_slice %23 {offsets = [0, 0, 0], sizes = [8, 16, 128], strides = [1, 1, 1]} : vector<10x24x128xbf16> to vector<8x16x128xbf16>
    %26 = vector.extract_strided_slice %23 {offsets = [0, 1, 0], sizes = [8, 16, 128], strides = [1, 1, 1]} : vector<10x24x128xbf16> to vector<8x16x128xbf16>
    %27 = vector.extract_strided_slice %23 {offsets = [0, 2, 0], sizes = [8, 16, 128], strides = [1, 1, 1]} : vector<10x24x128xbf16> to vector<8x16x128xbf16>
    %28 = tpu.concatenate %25, %26, %27 in 2 : vector<8x16x128xbf16>, vector<8x16x128xbf16>, vector<8x16x128xbf16> -> vector<8x16x384xbf16>
    %29 = vector.shape_cast %28 : vector<8x16x384xbf16> to vector<128x384xbf16>
    %c0_18 = arith.constant 0 : index
    %c0_19 = arith.constant 0 : index
    %c0_20 = arith.constant 0 : index
    %30 = vector.load %arg7[%c0_18, %c0_19, %c0_20] : memref<3x384x128xbf16, #tpu.memory_space<vmem>>, vector<1x384x128xbf16>
    %31 = vector.shape_cast %30 : vector<1x384x128xbf16> to vector<384x128xbf16>
    %cst_21 = arith.constant dense<0.000000e+00> : vector<128x128xf32>
    %32 = tpu.matmul %29, %31, %cst_21 {dimension_numbers = #tpu.dot_dimension_numbers<[1], [0], [0], [1], [0, 0, 1, 1], [], []>} : vector<128x384xbf16>, vector<384x128xbf16>, vector<128x128xf32> -> vector<128x128xf32>
    %33 = arith.addf %24, %32 : vector<128x128xf32>
    %34 = vector.extract_strided_slice %23 {offsets = [1, 0, 0], sizes = [8, 16, 128], strides = [1, 1, 1]} : vector<10x24x128xbf16> to vector<8x16x128xbf16>
    %35 = vector.extract_strided_slice %23 {offsets = [1, 1, 0], sizes = [8, 16, 128], strides = [1, 1, 1]} : vector<10x24x128xbf16> to vector<8x16x128xbf16>
    %36 = vector.extract_strided_slice %23 {offsets = [1, 2, 0], sizes = [8, 16, 128], strides = [1, 1, 1]} : vector<10x24x128xbf16> to vector<8x16x128xbf16>
    %37 = tpu.concatenate %34, %35, %36 in 2 : vector<8x16x128xbf16>, vector<8x16x128xbf16>, vector<8x16x128xbf16> -> vector<8x16x384xbf16>
    %38 = vector.shape_cast %37 : vector<8x16x384xbf16> to vector<128x384xbf16>
    %c1 = arith.constant 1 : index
    %c0_22 = arith.constant 0 : index
    %c0_23 = arith.constant 0 : index
    %39 = vector.load %arg7[%c1, %c0_22, %c0_23] : memref<3x384x128xbf16, #tpu.memory_space<vmem>>, vector<1x384x128xbf16>
    %40 = vector.shape_cast %39 : vector<1x384x128xbf16> to vector<384x128xbf16>
    %cst_24 = arith.constant dense<0.000000e+00> : vector<128x128xf32>
    %41 = tpu.matmul %38, %40, %cst_24 {dimension_numbers = #tpu.dot_dimension_numbers<[1], [0], [0], [1], [0, 0, 1, 1], [], []>} : vector<128x384xbf16>, vector<384x128xbf16>, vector<128x128xf32> -> vector<128x128xf32>
    %42 = arith.addf %33, %41 : vector<128x128xf32>
    %43 = vector.extract_strided_slice %23 {offsets = [2, 0, 0], sizes = [8, 16, 128], strides = [1, 1, 1]} : vector<10x24x128xbf16> to vector<8x16x128xbf16>
    %44 = vector.extract_strided_slice %23 {offsets = [2, 1, 0], sizes = [8, 16, 128], strides = [1, 1, 1]} : vector<10x24x128xbf16> to vector<8x16x128xbf16>
    %45 = vector.extract_strided_slice %23 {offsets = [2, 2, 0], sizes = [8, 16, 128], strides = [1, 1, 1]} : vector<10x24x128xbf16> to vector<8x16x128xbf16>
    %46 = tpu.concatenate %43, %44, %45 in 2 : vector<8x16x128xbf16>, vector<8x16x128xbf16>, vector<8x16x128xbf16> -> vector<8x16x384xbf16>
    %47 = vector.shape_cast %46 : vector<8x16x384xbf16> to vector<128x384xbf16>
    %c2 = arith.constant 2 : index
    %c0_25 = arith.constant 0 : index
    %c0_26 = arith.constant 0 : index
    %48 = vector.load %arg7[%c2, %c0_25, %c0_26] : memref<3x384x128xbf16, #tpu.memory_space<vmem>>, vector<1x384x128xbf16>
    %49 = vector.shape_cast %48 : vector<1x384x128xbf16> to vector<384x128xbf16>
    %cst_27 = arith.constant dense<0.000000e+00> : vector<128x128xf32>
    %50 = tpu.matmul %47, %49, %cst_27 {dimension_numbers = #tpu.dot_dimension_numbers<[1], [0], [0], [1], [0, 0, 1, 1], [], []>} : vector<128x384xbf16>, vector<384x128xbf16>, vector<128x128xf32> -> vector<128x128xf32>
    %51 = arith.addf %42, %50 : vector<128x128xf32>
    %c0_28 = arith.constant 0 : index
    %c0_29 = arith.constant 0 : index
    %52 = vector.load %arg8[%c0_28, %c0_29] : memref<1x128xf32, #tpu.memory_space<vmem>>, vector<1x128xf32>
    %53 = vector.broadcast %52 : vector<1x128xf32> to vector<128x128xf32>
    %54 = arith.addf %51, %53 : vector<128x128xf32>
    %55 = vector.extract_strided_slice %54 {offsets = [0, 0], sizes = [128, 4], strides = [1, 1]} : vector<128x128xf32> to vector<128x4xf32>
    %56 = vector.shape_cast %55 : vector<128x4xf32> to vector<1x8x16x4xf32>
    %c0_30 = arith.constant 0 : index
    %c0_31 = arith.constant 0 : index
    %c0_32 = arith.constant 0 : index
    %c0_33 = arith.constant 0 : index
    %57 = vector.load %arg9[%c0_30, %c0_31, %c0_32, %c0_33] : memref<1x8x16x4xf32, #tpu.memory_space<vmem>>, vector<1x8x16x4xf32>
    tpu.vector_store %arg9[%c0_30, %c0_31, %c0_32, %c0_33], %56 {strides = array<i32>} : memref<1x8x16x4xf32, #tpu.memory_space<vmem>>, vector<1x8x16x4xf32>,
    %cst_34 = arith.constant dense<0.000000e+00> : vector<4xf32>
    %58 = vector.multi_reduction <add>, %55, %cst_34 [0] : vector<128x4xf32> to vector<4xf32>
    %59 = vector.shape_cast %58 : vector<4xf32> to vector<1x4xf32>
    %60 = arith.mulf %55, %55 : vector<128x4xf32>
    %cst_35 = arith.constant dense<0.000000e+00> : vector<4xf32>
    %61 = vector.multi_reduction <add>, %60, %cst_35 [0] : vector<128x4xf32> to vector<4xf32>
    %62 = vector.shape_cast %61 : vector<4xf32> to vector<1x4xf32>
    %63 = tpu.concatenate %59, %62 in 0 : vector<1x4xf32>, vector<1x4xf32> -> vector<2x4xf32>
    %64 = vector.shape_cast %63 : vector<2x4xf32> to vector<1x1x2x4xf32>
    %c0_36 = arith.constant 0 : index
    %c0_37 = arith.constant 0 : index
    %c0_38 = arith.constant 0 : index
    %c0_39 = arith.constant 0 : index
    %65 = vector.load %arg10[%c0_36, %c0_37, %c0_38, %c0_39] : memref<1x1x2x4xf32, #tpu.memory_space<vmem>>, vector<1x1x2x4xf32>
    tpu.vector_store %arg10[%c0_36, %c0_37, %c0_38, %c0_39], %64 {strides = array<i32>} : memref<1x1x2x4xf32, #tpu.memory_space<vmem>>, vector<1x1x2x4xf32>,
    return
  }
  func.func @transform_0(%arg0: i32, %arg1: i32) -> (i32, i32, i32, i32) {
    %c0_i32 = arith.constant 0 : i32
    %c0_i32_0 = arith.constant 0 : i32
    %c0_i32_1 = arith.constant 0 : i32
    return %arg0, %arg1, %c0_i32, %c0_i32_0 : i32, i32, i32, i32
  }
  func.func @transform_1(%arg0: i32, %arg1: i32) -> (i32, i32, i32, i32) {
    %c0_i32 = arith.constant 0 : i32
    %0 = arith.cmpi eq, %arg1, %c0_i32 : i32
    %c8_i32 = arith.constant 8 : i32
    %1 = arith.muli %arg1, %c8_i32 : i32
    %c1_i32 = arith.constant 1 : i32
    %2 = arith.subi %1, %c1_i32 : i32
    %c1_i32_0 = arith.constant 1 : i32
    %3 = arith.select %0, %c1_i32_0, %2 : i32
    %c0_i32_1 = arith.constant 0 : i32
    %c0_i32_2 = arith.constant 0 : i32
    %c0_i32_3 = arith.constant 0 : i32
    return %arg0, %3, %c0_i32_1, %c0_i32_2 : i32, i32, i32, i32
  }
  func.func @transform_2(%arg0: i32, %arg1: i32) -> (i32, i32, i32, i32) {
    %c1_i32 = arith.constant 1 : i32
    %0 = arith.cmpi eq, %arg1, %c1_i32 : i32
    %c1_i32_0 = arith.constant 1 : i32
    %1 = arith.addi %arg1, %c1_i32_0 : i32
    %c8_i32 = arith.constant 8 : i32
    %2 = arith.muli %1, %c8_i32 : i32
    %c14_i32 = arith.constant 14 : i32
    %3 = arith.select %0, %c14_i32, %2 : i32
    %c0_i32 = arith.constant 0 : i32
    %c0_i32_1 = arith.constant 0 : i32
    %c0_i32_2 = arith.constant 0 : i32
    return %arg0, %3, %c0_i32, %c0_i32_1 : i32, i32, i32, i32
  }
  func.func @transform_3(%arg0: i32, %arg1: i32) -> (i32, i32) {
    %c0_i32 = arith.constant 0 : i32
    %c0_i32_0 = arith.constant 0 : i32
    %c0_i32_1 = arith.constant 0 : i32
    return %c0_i32, %c0_i32_0 : i32, i32
  }
  func.func @transform_4(%arg0: i32, %arg1: i32) -> (i32, i32) {
    %c0_i32 = arith.constant 0 : i32
    %c0_i32_0 = arith.constant 0 : i32
    %c0_i32_1 = arith.constant 0 : i32
    return %c0_i32, %c0_i32_0 : i32, i32
  }
  func.func @transform_5(%arg0: i32, %arg1: i32) -> (i32, i32, i32) {
    %c0_i32 = arith.constant 0 : i32
    %c0_i32_0 = arith.constant 0 : i32
    %c0_i32_1 = arith.constant 0 : i32
    %c0_i32_2 = arith.constant 0 : i32
    return %c0_i32, %c0_i32_0, %c0_i32_1 : i32, i32, i32
  }
  func.func @transform_6(%arg0: i32, %arg1: i32) -> (i32, i32) {
    %c0_i32 = arith.constant 0 : i32
    %c0_i32_0 = arith.constant 0 : i32
    %c0_i32_1 = arith.constant 0 : i32
    return %c0_i32, %c0_i32_0 : i32, i32
  }
  func.func @transform_7(%arg0: i32, %arg1: i32) -> (i32, i32, i32, i32) {
    %c0_i32 = arith.constant 0 : i32
    %c0_i32_0 = arith.constant 0 : i32
    %c0_i32_1 = arith.constant 0 : i32
    return %arg0, %arg1, %c0_i32, %c0_i32_0 : i32, i32, i32, i32
  }
  func.func @transform_8(%arg0: i32, %arg1: i32) -> (i32, i32, i32, i32) {
    %c0_i32 = arith.constant 0 : i32
    %c0_i32_0 = arith.constant 0 : i32
    %c0_i32_1 = arith.constant 0 : i32
    return %arg0, %arg1, %c0_i32, %c0_i32_0 : i32, i32, i32, i32
  }
}

module attributes {stable_mosaic.version = 11 : i64} {
  func.func @_conv2_kernel(%arg0: i32, %arg1: i32, %arg2: memref<1x8x16x4xf32, #tpu.memory_space<vmem>>, %arg3: memref<1x1x16x4xf32, #tpu.memory_space<vmem>>, %arg4: memref<1x1x16x4xf32, #tpu.memory_space<vmem>>, %arg5: memref<1x8x16x4xf32, #tpu.memory_space<vmem>>, %arg6: memref<1x128xf32, #tpu.memory_space<vmem>>, %arg7: memref<1x128xf32, #tpu.memory_space<vmem>>, %arg8: memref<3x384x128xbf16, #tpu.memory_space<vmem>>, %arg9: memref<1x128xf32, #tpu.memory_space<vmem>>, %arg10: memref<1x8x16x4xf32, #tpu.memory_space<vmem>>) attributes {dimension_semantics = [#tpu.dimension_semantics<parallel>, #tpu.dimension_semantics<parallel>], iteration_bounds = array<i64: 2, 2>, scalar_prefetch = 0 : i64, scratch_operands = 0 : i64, tpu.core_type = #tpu.core_type<tc>, window_params = [{transform_indices = @transform_0, window_bounds = array<i64: 1, 8, 16, 4>}, {transform_indices = @transform_1, window_bounds = array<i64: 1, 1, 16, 4>}, {transform_indices = @transform_2, window_bounds = array<i64: 1, 1, 16, 4>}, {transform_indices = @transform_3, window_bounds = array<i64: 1, 8, 16, 4>}, {pipeline_mode = #tpu.pipeline_mode<synchronous>, transform_indices = @transform_4, window_bounds = array<i64: 1, 128>}, {pipeline_mode = #tpu.pipeline_mode<synchronous>, transform_indices = @transform_5, window_bounds = array<i64: 1, 128>}, {pipeline_mode = #tpu.pipeline_mode<synchronous>, transform_indices = @transform_6, window_bounds = array<i64: 3, 384, 128>}, {pipeline_mode = #tpu.pipeline_mode<synchronous>, transform_indices = @transform_7, window_bounds = array<i64: 1, 128>}, {transform_indices = @transform_8, window_bounds = array<i64: 1, 8, 16, 4>}]} {
    %c0 = arith.constant 0 : index
    %c0_0 = arith.constant 0 : index
    %c0_1 = arith.constant 0 : index
    %c0_2 = arith.constant 0 : index
    %0 = vector.load %arg3[%c0, %c0_0, %c0_1, %c0_2] : memref<1x1x16x4xf32, #tpu.memory_space<vmem>>, vector<1x1x16x4xf32>
    %1 = vector.shape_cast %0 : vector<1x1x16x4xf32> to vector<1x16x4xf32>
    %c0_3 = arith.constant 0 : index
    %c0_4 = arith.constant 0 : index
    %c0_5 = arith.constant 0 : index
    %c0_6 = arith.constant 0 : index
    %2 = vector.load %arg2[%c0_3, %c0_4, %c0_5, %c0_6] : memref<1x8x16x4xf32, #tpu.memory_space<vmem>>, vector<1x8x16x4xf32>
    %3 = vector.shape_cast %2 : vector<1x8x16x4xf32> to vector<8x16x4xf32>
    %c0_7 = arith.constant 0 : index
    %c0_8 = arith.constant 0 : index
    %c0_9 = arith.constant 0 : index
    %c0_10 = arith.constant 0 : index
    %4 = vector.load %arg4[%c0_7, %c0_8, %c0_9, %c0_10] : memref<1x1x16x4xf32, #tpu.memory_space<vmem>>, vector<1x1x16x4xf32>
    %5 = vector.shape_cast %4 : vector<1x1x16x4xf32> to vector<1x16x4xf32>
    %6 = tpu.concatenate %1, %3, %5 in 0 : vector<1x16x4xf32>, vector<8x16x4xf32>, vector<1x16x4xf32> -> vector<10x16x4xf32>
    %cst = arith.constant 0.000000e+00 : f32
    %7 = vector.broadcast %cst : f32 to vector<10x16x124xf32>
    %8 = tpu.concatenate %6, %7 in 2 : vector<10x16x4xf32>, vector<10x16x124xf32> -> vector<10x16x128xf32>
    %c0_11 = arith.constant 0 : index
    %c0_12 = arith.constant 0 : index
    %9 = vector.load %arg6[%c0_11, %c0_12] : memref<1x128xf32, #tpu.memory_space<vmem>>, vector<1x128xf32>
    %10 = vector.shape_cast %9 : vector<1x128xf32> to vector<1x1x128xf32>
    %11 = vector.broadcast %10 : vector<1x1x128xf32> to vector<10x16x128xf32>
    %12 = arith.mulf %8, %11 : vector<10x16x128xf32>
    %c0_13 = arith.constant 0 : index
    %c0_14 = arith.constant 0 : index
    %13 = vector.load %arg7[%c0_13, %c0_14] : memref<1x128xf32, #tpu.memory_space<vmem>>, vector<1x128xf32>
    %14 = vector.shape_cast %13 : vector<1x128xf32> to vector<1x1x128xf32>
    %15 = vector.broadcast %14 : vector<1x1x128xf32> to vector<10x16x128xf32>
    %16 = arith.addf %12, %15 : vector<10x16x128xf32>
    %cst_15 = arith.constant 0.000000e+00 : f32
    %17 = vector.broadcast %cst_15 : f32 to vector<10x16x128xf32>
    %18 = arith.maximumf %16, %17 : vector<10x16x128xf32>
    %19 = vector.extract_strided_slice %18 {offsets = [0, 1, 0], sizes = [10, 1, 128], strides = [1, 1, 1]} : vector<10x16x128xf32> to vector<10x1x128xf32>
    %20 = vector.extract_strided_slice %18 {offsets = [0, 14, 0], sizes = [10, 1, 128], strides = [1, 1, 1]} : vector<10x16x128xf32> to vector<10x1x128xf32>
    %cst_16 = arith.constant 0.000000e+00 : f32
    %21 = vector.broadcast %cst_16 : f32 to vector<10x6x128xf32>
    %22 = tpu.concatenate %19, %18, %20, %21 in 1 : vector<10x1x128xf32>, vector<10x16x128xf32>, vector<10x1x128xf32>, vector<10x6x128xf32> -> vector<10x24x128xf32>
    %23 = arith.truncf %22 : vector<10x24x128xf32> to vector<10x24x128xbf16>
    %cst_17 = arith.constant 0.000000e+00 : f32
    %24 = vector.broadcast %cst_17 : f32 to vector<128x128xf32>
    %25 = vector.extract_strided_slice %23 {offsets = [0, 0, 0], sizes = [8, 16, 128], strides = [1, 1, 1]} : vector<10x24x128xbf16> to vector<8x16x128xbf16>
    %26 = vector.extract_strided_slice %23 {offsets = [0, 1, 0], sizes = [8, 16, 128], strides = [1, 1, 1]} : vector<10x24x128xbf16> to vector<8x16x128xbf16>
    %27 = vector.extract_strided_slice %23 {offsets = [0, 2, 0], sizes = [8, 16, 128], strides = [1, 1, 1]} : vector<10x24x128xbf16> to vector<8x16x128xbf16>
    %28 = tpu.concatenate %25, %26, %27 in 2 : vector<8x16x128xbf16>, vector<8x16x128xbf16>, vector<8x16x128xbf16> -> vector<8x16x384xbf16>
    %29 = vector.shape_cast %28 : vector<8x16x384xbf16> to vector<128x384xbf16>
    %c0_18 = arith.constant 0 : index
    %c0_19 = arith.constant 0 : index
    %c0_20 = arith.constant 0 : index
    %30 = vector.load %arg8[%c0_18, %c0_19, %c0_20] : memref<3x384x128xbf16, #tpu.memory_space<vmem>>, vector<1x384x128xbf16>
    %31 = vector.shape_cast %30 : vector<1x384x128xbf16> to vector<384x128xbf16>
    %cst_21 = arith.constant dense<0.000000e+00> : vector<128x128xf32>
    %32 = tpu.matmul %29, %31, %cst_21 {dimension_numbers = #tpu.dot_dimension_numbers<[1], [0], [0], [1], [0, 0, 1, 1], [], []>} : vector<128x384xbf16>, vector<384x128xbf16>, vector<128x128xf32> -> vector<128x128xf32>
    %33 = arith.addf %24, %32 : vector<128x128xf32>
    %34 = vector.extract_strided_slice %23 {offsets = [1, 0, 0], sizes = [8, 16, 128], strides = [1, 1, 1]} : vector<10x24x128xbf16> to vector<8x16x128xbf16>
    %35 = vector.extract_strided_slice %23 {offsets = [1, 1, 0], sizes = [8, 16, 128], strides = [1, 1, 1]} : vector<10x24x128xbf16> to vector<8x16x128xbf16>
    %36 = vector.extract_strided_slice %23 {offsets = [1, 2, 0], sizes = [8, 16, 128], strides = [1, 1, 1]} : vector<10x24x128xbf16> to vector<8x16x128xbf16>
    %37 = tpu.concatenate %34, %35, %36 in 2 : vector<8x16x128xbf16>, vector<8x16x128xbf16>, vector<8x16x128xbf16> -> vector<8x16x384xbf16>
    %38 = vector.shape_cast %37 : vector<8x16x384xbf16> to vector<128x384xbf16>
    %c1 = arith.constant 1 : index
    %c0_22 = arith.constant 0 : index
    %c0_23 = arith.constant 0 : index
    %39 = vector.load %arg8[%c1, %c0_22, %c0_23] : memref<3x384x128xbf16, #tpu.memory_space<vmem>>, vector<1x384x128xbf16>
    %40 = vector.shape_cast %39 : vector<1x384x128xbf16> to vector<384x128xbf16>
    %cst_24 = arith.constant dense<0.000000e+00> : vector<128x128xf32>
    %41 = tpu.matmul %38, %40, %cst_24 {dimension_numbers = #tpu.dot_dimension_numbers<[1], [0], [0], [1], [0, 0, 1, 1], [], []>} : vector<128x384xbf16>, vector<384x128xbf16>, vector<128x128xf32> -> vector<128x128xf32>
    %42 = arith.addf %33, %41 : vector<128x128xf32>
    %43 = vector.extract_strided_slice %23 {offsets = [2, 0, 0], sizes = [8, 16, 128], strides = [1, 1, 1]} : vector<10x24x128xbf16> to vector<8x16x128xbf16>
    %44 = vector.extract_strided_slice %23 {offsets = [2, 1, 0], sizes = [8, 16, 128], strides = [1, 1, 1]} : vector<10x24x128xbf16> to vector<8x16x128xbf16>
    %45 = vector.extract_strided_slice %23 {offsets = [2, 2, 0], sizes = [8, 16, 128], strides = [1, 1, 1]} : vector<10x24x128xbf16> to vector<8x16x128xbf16>
    %46 = tpu.concatenate %43, %44, %45 in 2 : vector<8x16x128xbf16>, vector<8x16x128xbf16>, vector<8x16x128xbf16> -> vector<8x16x384xbf16>
    %47 = vector.shape_cast %46 : vector<8x16x384xbf16> to vector<128x384xbf16>
    %c2 = arith.constant 2 : index
    %c0_25 = arith.constant 0 : index
    %c0_26 = arith.constant 0 : index
    %48 = vector.load %arg8[%c2, %c0_25, %c0_26] : memref<3x384x128xbf16, #tpu.memory_space<vmem>>, vector<1x384x128xbf16>
    %49 = vector.shape_cast %48 : vector<1x384x128xbf16> to vector<384x128xbf16>
    %cst_27 = arith.constant dense<0.000000e+00> : vector<128x128xf32>
    %50 = tpu.matmul %47, %49, %cst_27 {dimension_numbers = #tpu.dot_dimension_numbers<[1], [0], [0], [1], [0, 0, 1, 1], [], []>} : vector<128x384xbf16>, vector<384x128xbf16>, vector<128x128xf32> -> vector<128x128xf32>
    %51 = arith.addf %42, %50 : vector<128x128xf32>
    %c0_28 = arith.constant 0 : index
    %c0_29 = arith.constant 0 : index
    %52 = vector.load %arg9[%c0_28, %c0_29] : memref<1x128xf32, #tpu.memory_space<vmem>>, vector<1x128xf32>
    %53 = vector.broadcast %52 : vector<1x128xf32> to vector<128x128xf32>
    %54 = arith.addf %51, %53 : vector<128x128xf32>
    %55 = vector.extract_strided_slice %54 {offsets = [0, 0], sizes = [128, 4], strides = [1, 1]} : vector<128x128xf32> to vector<128x4xf32>
    %56 = vector.shape_cast %55 : vector<128x4xf32> to vector<1x8x16x4xf32>
    %c0_30 = arith.constant 0 : index
    %c0_31 = arith.constant 0 : index
    %c0_32 = arith.constant 0 : index
    %c0_33 = arith.constant 0 : index
    %57 = vector.load %arg5[%c0_30, %c0_31, %c0_32, %c0_33] : memref<1x8x16x4xf32, #tpu.memory_space<vmem>>, vector<1x8x16x4xf32>
    %58 = arith.addf %56, %57 : vector<1x8x16x4xf32>
    %c0_34 = arith.constant 0 : index
    %c0_35 = arith.constant 0 : index
    %c0_36 = arith.constant 0 : index
    %c0_37 = arith.constant 0 : index
    %59 = vector.load %arg10[%c0_34, %c0_35, %c0_36, %c0_37] : memref<1x8x16x4xf32, #tpu.memory_space<vmem>>, vector<1x8x16x4xf32>
    tpu.vector_store %arg10[%c0_34, %c0_35, %c0_36, %c0_37], %58 {strides = array<i32>} : memref<1x8x16x4xf32, #tpu.memory_space<vmem>>, vector<1x8x16x4xf32>,
    return
  }
  func.func @transform_0(%arg0: i32, %arg1: i32) -> (i32, i32, i32, i32) {
    %c0_i32 = arith.constant 0 : i32
    %c0_i32_0 = arith.constant 0 : i32
    %c0_i32_1 = arith.constant 0 : i32
    return %arg0, %arg1, %c0_i32, %c0_i32_0 : i32, i32, i32, i32
  }
  func.func @transform_1(%arg0: i32, %arg1: i32) -> (i32, i32, i32, i32) {
    %c0_i32 = arith.constant 0 : i32
    %0 = arith.cmpi eq, %arg1, %c0_i32 : i32
    %c8_i32 = arith.constant 8 : i32
    %1 = arith.muli %arg1, %c8_i32 : i32
    %c1_i32 = arith.constant 1 : i32
    %2 = arith.subi %1, %c1_i32 : i32
    %c1_i32_0 = arith.constant 1 : i32
    %3 = arith.select %0, %c1_i32_0, %2 : i32
    %c0_i32_1 = arith.constant 0 : i32
    %c0_i32_2 = arith.constant 0 : i32
    %c0_i32_3 = arith.constant 0 : i32
    return %arg0, %3, %c0_i32_1, %c0_i32_2 : i32, i32, i32, i32
  }
  func.func @transform_2(%arg0: i32, %arg1: i32) -> (i32, i32, i32, i32) {
    %c1_i32 = arith.constant 1 : i32
    %0 = arith.cmpi eq, %arg1, %c1_i32 : i32
    %c1_i32_0 = arith.constant 1 : i32
    %1 = arith.addi %arg1, %c1_i32_0 : i32
    %c8_i32 = arith.constant 8 : i32
    %2 = arith.muli %1, %c8_i32 : i32
    %c14_i32 = arith.constant 14 : i32
    %3 = arith.select %0, %c14_i32, %2 : i32
    %c0_i32 = arith.constant 0 : i32
    %c0_i32_1 = arith.constant 0 : i32
    %c0_i32_2 = arith.constant 0 : i32
    return %arg0, %3, %c0_i32, %c0_i32_1 : i32, i32, i32, i32
  }
  func.func @transform_3(%arg0: i32, %arg1: i32) -> (i32, i32, i32, i32) {
    %c0_i32 = arith.constant 0 : i32
    %c0_i32_0 = arith.constant 0 : i32
    %c0_i32_1 = arith.constant 0 : i32
    return %arg0, %arg1, %c0_i32, %c0_i32_0 : i32, i32, i32, i32
  }
  func.func @transform_4(%arg0: i32, %arg1: i32) -> (i32, i32) {
    %c0_i32 = arith.constant 0 : i32
    %c0_i32_0 = arith.constant 0 : i32
    %c0_i32_1 = arith.constant 0 : i32
    return %c0_i32, %c0_i32_0 : i32, i32
  }
  func.func @transform_5(%arg0: i32, %arg1: i32) -> (i32, i32) {
    %c0_i32 = arith.constant 0 : i32
    %c0_i32_0 = arith.constant 0 : i32
    %c0_i32_1 = arith.constant 0 : i32
    return %c0_i32, %c0_i32_0 : i32, i32
  }
  func.func @transform_6(%arg0: i32, %arg1: i32) -> (i32, i32, i32) {
    %c0_i32 = arith.constant 0 : i32
    %c0_i32_0 = arith.constant 0 : i32
    %c0_i32_1 = arith.constant 0 : i32
    %c0_i32_2 = arith.constant 0 : i32
    return %c0_i32, %c0_i32_0, %c0_i32_1 : i32, i32, i32
  }
  func.func @transform_7(%arg0: i32, %arg1: i32) -> (i32, i32) {
    %c0_i32 = arith.constant 0 : i32
    %c0_i32_0 = arith.constant 0 : i32
    %c0_i32_1 = arith.constant 0 : i32
    return %c0_i32, %c0_i32_0 : i32, i32
  }
  func.func @transform_8(%arg0: i32, %arg1: i32) -> (i32, i32, i32, i32) {
    %c0_i32 = arith.constant 0 : i32
    %c0_i32_0 = arith.constant 0 : i32
    %c0_i32_1 = arith.constant 0 : i32
    return %arg0, %arg1, %c0_i32, %c0_i32_0 : i32, i32, i32, i32
  }
}

</mosaic_0001>

<bundles_post_ra>
// kernel: residual_block.2
= control target key start
LH: loop header
LB: loop body
LE: loop exit
PB: predicated region body
PF: predicated region fallthrough
CT: control target
= control target key end

     0   :  { %s3215_s27 = smov 0   ;;  %s3217_s28 = smov 0   ;;  %s4078_s0 = inlined_call_operand.vmem [shape: f32[2,16,16,4], index: 0, kind: input, shape index: {}, may-alias: {0,1,2}]   ;;  %s4079_s1 = inlined_call_operand.vmem [shape: f32[2,16,16,4], index: 1, kind: input, shape index: {}, may-alias: {0,1,2}]   ;;  %s4080_s2 = inlined_call_operand.vmem [shape: f32[2,16,16,4], index: 2, kind: input, shape index: {}, may-alias: {0,1,2}]   ;;  %s4081_s3 = inlined_call_operand.vmem [shape: f32[1,128], index: 3, kind: input, shape index: {}]   ;;  %s4082_s4 = inlined_call_operand.vmem [shape: f32[1,128], index: 4, kind: input, shape index: {}]   ;;  %s4083_s5 = inlined_call_operand.vmem [shape: bf16[3,384,128], index: 5, kind: input, shape index: {}]   ;;  %s4084_s6 = inlined_call_operand.vmem [shape: f32[1,128], index: 6, kind: input, shape index: {}]   ;;  %s4085_s7 = inlined_call_operand.vmem [shape: f32[2,16,16,4], index: 7, kind: output, shape index: {0}]   ;;  %s4086_s8 = inlined_call_operand.vmem [shape: f32[2,2,2,4], index: 8, kind: output, shape index: {1}]  }
   0x1   :  { %s3219_s29 = smov 0   ;;  %s3221_s30 = smov 0  }
   0x2   :  { %s3223_s9 = smov 0  }
   0x3 LB: > { %s28_s10 = sadd.s32 1, %s3160_s29  ;;  %s31_s11 = sadd.s32 1, %s3164_s30  ;;  %s3168_s9 = sphi %s3223_s9, %s19_s9   ;;  %s3164_s30 = sphi %s3221_s30, %s4128_s30   ;;  %s3160_s29 = sphi %s3219_s29, %s4127_s29   ;;  %s3156_s28 = sphi %s3217_s28, %s4126_s28   ;;  %s3152_s27 = sphi %s3215_s27, %s4125_s27  }
   0x4   : > { %p29_p0 = scmp.ge.s32.totalorder %s28_s10, 2  ;;  %p2481_p1 = scmp.ge.s32.totalorder %s3168_s9, 1 }
   0x5   : > { %p353_p2 = scmp.lt.s32.totalorder %s3168_s9, 5 }
   0x6   : > { %s4130_s10 = smov (%p29_p0, %s28_s10), 0  ;;  %s4132_s11 = smov (!%p29_p0, %s31_s11), %s3164_s30 }
   0x7   : > { %p354_p3 = pnand %p2481_p1, %p353_p2  ;;  %p33_p4 = scmp.ge.s32.totalorder %s4132_s11, 2 }
   0x9   : > { %s4134_s11 = smov (%p33_p4, %s4132_s11), 0  ;;  %357 = sbr.rel (%p354_p3) target bundleno = 426 (0x1aa), region = 48 }
   0xe   : > { %v3056_v0 = vld [vmem:[%s4083_s5 + $0x138] sm:$0xff]   ;;  %s3256_s16 = sshll.u32 %s3152_s27, 3  ;;  %v3059_v3 = vld [vmem:[%s4083_s5 + $0x130] sm:$0xff]   ;;  %p432_p5 = scmp.lt.s32.totalorder %s3156_s28, 1  ;;  %v3062_v6 = vld [vmem:[%s4083_s5 + $0x128] sm:$0xff]   ;;  %vm516_vm0 = vcmask 31744  }
   0xf   : > { %v3057_v1 = vld [vmem:[%s4083_s5 + $0x178] sm:$0xff]   ;;  %2680 = vmatprep.subr.bf16.mxu0 %v3056_v0  ;;  %v3060_v4 = vld [vmem:[%s4083_s5 + $0x170] sm:$0xff]   ;;  %p434_p6 = scmp.lt.s32.totalorder %s3256_s16, 15  ;;  %v3063_v7 = vld [vmem:[%s4083_s5 + $0x168] sm:$0xff]   ;;  %p442_p7 = scmp.eq.s32.totalorder %s3152_s27, 0  ;;  %vm651_vm1 = vcmask 1040384  }
  0x10   : > { %v3058_v2 = vld [vmem:[%s4083_s5 + $0xf8] sm:$0xff]   ;;  %2920 = vmatprep.subr.bf16.mxu1 %v3057_v1  ;;  %v3061_v5 = vld [vmem:[%s4083_s5 + $0xf0] sm:$0xff]   ;;  %s4136_s28 = smov (!%p432_p5, %s3156_s28), 1  ;;  %v3064_v8 = vld [vmem:[%s4083_s5 + $0xe8] sm:$0xff]   ;;  %s2487_s18 = sadd.s32 4294967295, %s3256_s16  ;;  %vm752_vm2 = vcmask 1041408  }
  0x11   : > { %2681 = vmatpush3.bf16.msra.mxu0 %v3058_v2  ;;  %2921 = vmatpush3.bf16.msra.mxu1 %v3057_v1  ;;  %s435_s17 = scalar_select %p434_p6, %s3256_s16, 15  ;;  %v3065_v9 = vld [vmem:[%s4083_s5 + $0x120] sm:$0xff]   ;;  %v3068_v12 = vld [vmem:[%s4083_s5 + $0x118] sm:$0xff]   ;;  %v3071_v15 = vld [vmem:[%s4083_s5 + $0x110] sm:$0xff]   ;;  %vm904_vm3 = vcmask 1046528   ;;  %vm2281_vm5 = vcmask 25600  }
  0x12   : > { %2682 = vmatprep.subr.bf16.mxu0 %v3059_v3  ;;  %2922 = vmatprep.subr.bf16.mxu1 %v3060_v4  ;;  %v3066_v10 = vld [vmem:[%s4083_s5 + $0x160] sm:$0xff]   ;;  %s3295_s24 = sshll.u32 %s4136_s28, 5  ;;  %v3069_v13 = vld [vmem:[%s4083_s5 + $0x158] sm:$0xff]   ;;  %v3072_v16 = vld [vmem:[%s4083_s5 + $0x150] sm:$0xff]   ;;  %s4138_s18 = smov (%p442_p7, %s2487_s18), 1 }
  0x13   : > { %v3067_v11 = vld [vmem:[%s4083_s5 + $0xe0] sm:$0xff]   ;;  %s2483_s12 = sshll.u32 %s435_s17, 1  ;;  %v3070_v14 = vld [vmem:[%s4083_s5 + $0xd8] sm:$0xff]   ;;  %v3073_v17 = vld [vmem:[%s4083_s5 + $0xd0] sm:$0xff]   ;;  %vm783_vm4 = vsmask.f32 7424 }
  0x14   : > { %s3307_s19 = sadd.s32 %s3295_s24, %s2483_s12  ;;  %v3074_v18 = vld [vmem:[%s4083_s5 + $0x108] sm:$0xff]   ;;  %v3077_v21 = vld [vmem:[%s4083_s5 + $0x100] sm:$0xff]   ;;  %v3080_v40 = vld [vmem:[%s4083_s5 + $0x78] sm:$0xff]   ;;  %p448_p8 = scmp.lt.s32.totalorder %s4138_s18, 15 }
  0x15   : > { %2683 = vmatpush3.bf16.msra.mxu0 %v3061_v5  ;;  %2923 = vmatpush3.bf16.msra.mxu1 %v3060_v4  ;;  %s2485_s23 = sshll.u32 %s3307_s19, 3  ;;  %v3075_v19 = vld [vmem:[%s4083_s5 + $0x148] sm:$0xff]   ;;  %v3078_v22 = vld [vmem:[%s4083_s5 + $0x140] sm:$0xff]   ;;  %v3382_v43 = vld [vmem:[%s4083_s5 + $0xb8] sm:$0xff]   ;;  %p459_p9 = scmp.eq.s32.totalorder %s3152_s27, 1 }
  0x16   : > { %2684 = vmatprep.subr.bf16.mxu0 %v3062_v6  ;;  %2924 = vmatprep.subr.bf16.mxu1 %v3063_v7  ;;  %s3330_s21 = scalar_lea.vmem %s4078_s0, %s2485_s23  ;;  %v3076_v20 = vld [vmem:[%s4083_s5 + $0xc8] sm:$0xff]   ;;  %v3346_v25 = vld [vmem:[%s4081_s3] ss:$0 sm:$0xff]  ;;  %s4140_s18 = smov (!%p448_p8, %s4138_s18), 15 }
  0x17   : > { %v498_v23 = vld [vmem:[%s3330_s21] sm:$0xff]  ;;  %v499_v24 = vld [vmem:[%s3330_s21 + $0x8] sm:$0xff]  ;;  %v500_v29 = vld [vmem:[%s3330_s21 + $0x10] sm:$0xff]  ;;  %s2488_s13 = sshll.u32 %s4140_s18, 1  ;;  %s2679_s22 = sadd.s32 8, %s3256_s16 }
  0x18   : > { %v519_v26 = vsel %vm516_vm0, %v498_v23, 0.0  ;;  %v520_v27 = vsel %vm516_vm0, %v499_v24, 0.0  ;;  %v3355_v28 = vld [vmem:[%s4082_s4] ss:$0 sm:$0xff]  ;;  %v501_v30 = vld [vmem:[%s3330_s21 + $0x18] sm:$0xff]  ;;  %v521_v33 = vsel %vm516_vm0, %v500_v29, 0.0  ;;  %s3521_s20 = sadd.s32 %s2488_s13, %s3295_s24 }
  0x19   : > { %2685 = vmatpush3.bf16.msra.mxu0 %v3064_v8  ;;  %2925 = vmatpush3.bf16.msra.mxu1 %v3063_v7  ;;  %v546_v31 = vmul.f32 %v3346_v25, %v519_v26  ;;  %v547_v32 = vmul.f32 %v3346_v25, %v520_v27  ;;  %v522_v34 = vsel %vm516_vm0, %v501_v30, 0.0  ;;  %v3079_v35 = vld [vmem:[%s4083_s5 + $0xc0] sm:$0xff]   ;;  %v548_v36 = vmul.f32 %v3346_v25, %v521_v33  ;;  %v503_v53 = vld [vmem:[%s3330_s21 + $0x28] sm:$0xff]  ;;  %v3082_v23 = vld [vmem:[%s4083_s5 + $0x38] sm:$0xff]   ;;  %s2490_s25 = sshll.u32 %s3521_s20, 3  ;;  %s4142_s22 = smov (%p459_p9, %s2679_s22), 14 }
  0x1a   : > { %2686 = vmatprep.subr.bf16.mxu0 %v3065_v9  ;;  %2926 = vmatprep.subr.bf16.mxu1 %v3066_v10  ;;  %v549_v37 = vmul.f32 %v3346_v25, %v522_v34  ;;  %v502_v48 = vld [vmem:[%s3330_s21 + $0x20] sm:$0xff]  ;;  %v524_v5 = vsel %vm516_vm0, %v503_v53, 0.0  ;;  %v3083_v24 = vld [vmem:[%s4083_s5 + $0x70] sm:$0xff]   ;;  %v507_v33 = vld [vmem:[%s3330_s21 + $0x48] sm:$0xff]  ;;  %s454_s15 = scalar_lea.vmem %s4079_s1, %s2490_s25  ;;  %p465_p10 = scmp.lt.s32.totalorder %s4142_s22, 15 }
  0x1b   : > { %v573_v38 = vadd.f32 %v3355_v28, %v546_v31  ;;  %v574_v39 = vadd.f32 %v3355_v28, %v547_v32  ;;  %v575_v41 = vadd.f32 %v3355_v28, %v548_v36  ;;  %v523_v61 = vsel %vm516_vm0, %v502_v48, 0.0  ;;  %v506_v27 = vld [vmem:[%s3330_s21 + $0x40] sm:$0xff]  ;;  %v3085_v48 = vld [vmem:[%s4083_s5 + $0x68] sm:$0xff]   ;;  %p489_p11 = scmp.lt.s32.totalorder %s3152_s27, 1  ;;  %s2499_s19 = sshll.u32 %s4136_s28, 1 }
  0x1c   : > { %v576_v42 = vadd.f32 %v3355_v28, %v549_v37  ;;  %v551_v31 = vmul.f32 %v3346_v25, %v524_v5  ;;  %s4144_s22 = smov (!%p465_p10, %s4142_s22), 15 }
  0x1d   : > { %2687 = vmatpush3.bf16.msra.mxu0 %v3067_v11  ;;  %2927 = vmatpush3.bf16.msra.mxu1 %v3066_v10  ;;  %v593_v44 = vmax.f32 %v573_v38, 0.0  ;;  %v594_v45 = vmax.f32 %v574_v39, 0.0  ;;  %v595_v46 = vmax.f32 %v575_v41, 0.0  ;;  %v3086_v38 = vld [vmem:[%s4083_s5 + $0xb0] sm:$0xff]   ;;  %s2492_s13 = sshll.u32 %s4144_s22, 1  ;;  %s4146_s27 = smov (!%p489_p11, %s3152_s27), 1 }
  0x1e   : > { %2688 = vmatprep.subr.bf16.mxu0 %v3068_v12  ;;  %2928 = vmatprep.subr.bf16.mxu1 %v3069_v13  ;;  %v596_v47 = vmax.f32 %v576_v42, 0.0  ;;  %v578_v41 = vadd.f32 %v3355_v28, %v551_v31  ;;  %s469_s14 = sadd.s32 %s2492_s13, %s3295_s24 }
  0x1f   : > { %v622_v49 = vrot.slane %v593_v44, 1  ;;  %v655_v50 = vrot.slane %v593_v44, 7  ;;  %v656_v51 = vrot.slane %v594_v45, 7  ;;  %v713_v52 = vrot.slane %v594_v45, 5  ;;  %v508_v44 = vld [vmem:[%s3330_s21 + $0x50] sm:$0xff] }
  0x20   : > { %v623_v54 = vrot.slane %v595_v46, 1  ;;  %v658_v55 = vrot.slane %v595_v46, 7  ;;  %v659_v56 = vrot.slane %v596_v47, 7  ;;  %v714_v57 = vrot.slane %v596_v47, 5  ;;  %v3084_v45 = vld [vmem:[%s4083_s5 + $0x30] sm:$0xff]  }
  0x21   : > { %2689 = vmatpush3.bf16.msra.mxu0 %v3070_v14  ;;  %2929 = vmatpush3.bf16.msra.mxu1 %v3069_v13  ;;  %v657_v58 = vsel %vm651_vm1, %v655_v50, %v656_v51  ;;  %v733_v59 = vsel %vm651_vm1, %v622_v49, %v655_v50  ;;  %v743_v60 = vsel %vm651_vm1, %v656_v51, %v713_v52  ;;  %v504_v14 = vld [vmem:[%s3330_s21 + $0x30] sm:$0xff]  ;;  %v527_v49 = vsel %vm516_vm0, %v506_v27, 0.0 }
  0x22   : > { %2690 = vmatprep.subr.bf16.mxu0 %v3071_v15  ;;  %2930 = vmatprep.subr.bf16.mxu1 %v3072_v16  ;;  %v754_v62 = vsel %vm752_vm2, %v743_v60, 0.0  ;;  %v3393_v63 = vpack.c.bf16 %v657_v58, %v733_v59  ;;  %v660_v0 = vsel %vm651_vm1, %v658_v55, %v659_v56  ;;  %v734_v1 = vsel %vm651_vm1, %v623_v54, %v658_v55  ;;  %v509_v55 = vld [vmem:[%s3330_s21 + $0x58] sm:$0xff] }
  0x23   : > { %v766_v2 = vpack.c.bf16 %v754_v62, %v754_v62  ;;  %v744_v3 = vsel %vm651_vm1, %v659_v56, %v714_v57  ;;  %v3398_v4 = vpack.c.bf16 %v660_v0, %v734_v1  ;;  %v525_v36 = vsel %vm516_vm0, %v504_v14, 0.0 }
  0x24   : > { %v797_v6 = vshrl.u32 %v3393_v63, 16  ;;  %v799_v7 = vshll.u32 %v3393_v63, 16  ;;  %v908_v8 = vrot.slane %v3393_v63, 1  ;;  %v755_v9 = vsel %vm752_vm2, %v744_v3, 0.0  ;;  %v3087_v3 = vld [vmem:[%s4083_s5 + $0x28] sm:$0xff]  }
  0x25   : > { %2691 = vmatpush3.bf16.msra.mxu0 %v3073_v17  ;;  %2931 = vmatpush3.bf16.msra.mxu1 %v3072_v16  ;;  %v804_v10 = vshll.u32 %v766_v2, 16  ;;  %v909_v11 = vrot.slane %v766_v2, 1  ;;  %v768_v12 = vpack.c.bf16 %v755_v9, %v755_v9  ;;  %v911_v13 = vrot.slane %v3398_v4, 1  ;;  %v3088_v9 = vld [vmem:[%s4083_s5 + $0x60] sm:$0xff]  }
  0x26   : > { %2692 = vmatprep.subr.bf16.mxu0 %v3074_v18  ;;  %2932 = vmatprep.subr.bf16.mxu1 %v3075_v19  ;;  %v801_v15 = vrot.slane %v799_v7, 1  ;;  %v809_v16 = vshrl.u32 %v3398_v4, 16  ;;  %v811_v17 = vshll.u32 %v3398_v4, 16  ;;  %v550_v18 = vmul.f32 %v3346_v25, %v523_v61 }
  0x27   : > { %v816_v26 = vshll.u32 %v768_v12, 16  ;;  %v552_v46 = vmul.f32 %v3346_v25, %v525_v36  ;;  %v528_v50 = vsel %vm516_vm0, %v507_v33, 0.0  ;;  %v598_v52 = vmax.f32 %v578_v41, 0.0 }
  0x28   : > { %v802_v29 = vor.u32 %v801_v15, %v797_v6  ;;  %v813_v30 = vrot.slane %v811_v17, 1  ;;  %v577_v32 = vadd.f32 %v3355_v28, %v550_v18  ;;  %v554_v58 = vmul.f32 %v3346_v25, %v527_v49 }
  0x29   : > { %2693 = vmatpush3.bf16.msra.mxu0 %v3076_v20  ;;  %2933 = vmatpush3.bf16.msra.mxu1 %v3075_v19  ;;  %v505_v19 = vld [vmem:[%s3330_s21 + $0x38] sm:$0xff]  ;;  %v806_v20 = vrot.slane %v804_v10, 1  ;;  %v579_v56 = vadd.f32 %v3355_v28, %v552_v46  ;;  %v529_v59 = vsel %vm516_vm0, %v508_v44, 0.0  ;;  %v662_v60 = vrot.slane %v598_v52, 7 }
  0x2a   : > { %2694 = vmatprep.subr.bf16.mxu0 %v3077_v21  ;;  %2934 = vmatprep.subr.bf16.mxu1 %v3078_v22  ;;  %v3417_v21 = vsel %vm904_vm3, %v908_v8, %v909_v11  ;;  %v526_v37 = vsel %vm516_vm0, %v505_v19, 0.0  ;;  %v597_v42 = vmax.f32 %v577_v32, 0.0  ;;  %v715_v61 = vrot.slane %v598_v52, 5  ;;  %v510_v52 = vld [vmem:[%s3330_s21 + $0x60] sm:$0xff] }
  0x2b   : > { %2936 = vmatprep.mubr.bf16.mxu1 %v3417_v21  ;;  %v3439_v39 = vsel %vm783_vm4, %v802_v29, %v806_v20  ;;  %v553_v47 = vmul.f32 %v3346_v25, %v526_v37  ;;  %v555_v0 = vmul.f32 %v3346_v25, %v528_v50  ;;  %v599_v1 = vmax.f32 %v579_v56, 0.0  ;;  %v3090_v29 = vld [vmem:[%s4083_s5 + $0x58] sm:$0xff]   ;;  %v3093_v50 = vld [vmem:[%s4083_s5 + $0x50] sm:$0xff]  }
  0x2c   : > { %1229 = vmatprep.mubr.bf16.mxu0 %v3439_v39  ;;  %v624_v53 = vrot.slane %v597_v42, 1  ;;  %v661_v54 = vrot.slane %v597_v42, 7  ;;  %v581_v5 = vadd.f32 %v3355_v28, %v554_v58  ;;  %v530_v6 = vsel %vm516_vm0, %v509_v55, 0.0 }
  0x2d   : > { %2695 = vmatpush3.bf16.msra.mxu0 %v3079_v35  ;;  %2935 = vmatpush3.bf16.msra.mxu1 %v3078_v22  ;;  %v912_v22 = vrot.slane %v768_v12, 1  ;;  %v818_v35 = vrot.slane %v816_v26, 1  ;;  %v580_v57 = vadd.f32 %v3355_v28, %v553_v47  ;;  %v745_v8 = vsel %vm651_vm1, %v662_v60, %v715_v61 }
  0x2e   : > { %2760 = vmatprep.subr.bf16.mxu1 %v3080_v40  ;;  %2952 = vmatprep.subr.bf16.mxu0 %v3382_v43  ;;  %v814_v40 = vor.u32 %v813_v30, %v809_v16  ;;  %v735_v62 = vsel %vm651_vm1, %v624_v53, %v661_v54  ;;  %v663_v7 = vsel %vm651_vm1, %v661_v54, %v662_v60  ;;  %v756_v12 = vsel %vm752_vm2, %v745_v8, 0.0  ;;  %v3089_v16 = vld [vmem:[%s4083_s5 + $0x20] sm:$0xff]   ;;  %v3100_v53 = vld [vmem:[%s4083_s5 + $0x98] sm:$0xff]  }
  0x2f   : > { %v3431_v34 = vsel %vm904_vm3, %v911_v13, %v912_v22  ;;  %v600_v2 = vmax.f32 %v580_v57, 0.0  ;;  %v582_v10 = vadd.f32 %v3355_v28, %v555_v0  ;;  %v556_v11 = vmul.f32 %v3346_v25, %v529_v59  ;;  %v3096_v22 = vld [vmem:[%s4083_s5 + $0xa0] sm:$0xff]  }
  0x30   : > { %2937 = vmatmul.mubr.bf16.vlgmr.msra.gmra.mxu1 %v3431_v34  ;;  %1230 = vmatmul.mubr.bf16.vlgmr.msra.gmra.mxu0 %v3393_v63  ;;  %v3457_v51 = vsel %vm783_vm4, %v814_v40, %v818_v35  ;;  %v3485_v13 = vpack.c.bf16 %v663_v7, %v735_v62  ;;  %v625_v14 = vrot.slane %v599_v1, 1  ;;  %v664_v15 = vrot.slane %v599_v1, 7  ;;  %v511_v62 = vld [vmem:[%s3330_s21 + $0x68] sm:$0xff] }
  0x31   : > { %2761 = vmatpush3.bf16.msra.mxu1 %v3082_v23  ;;  %2953 = vmatpush3.bf16.msra.mxu0 %v3382_v43  ;;  %v3091_v43 = vld [vmem:[%s4083_s5 + $0xa8] sm:$0xff]   ;;  %v770_v17 = vpack.c.bf16 %v756_v12, %v756_v12  ;;  %v665_v18 = vrot.slane %v600_v2, 7  ;;  %v716_v19 = vrot.slane %v600_v2, 5  ;;  %v601_v20 = vmax.f32 %v581_v5, 0.0  ;;  %v3101_v5 = vld [vmem:[%s4083_s5 + $0x90] sm:$0xff]  }
  0x32   : > { %2762 = vmatprep.subr.bf16.mxu1 %v3083_v24  ;;  %1237 = vmatprep.mubr.bf16.mxu0 %v3457_v51  ;;  %v914_v23 = vrot.slane %v3485_v13, 1  ;;  %v736_v24 = vsel %vm651_vm1, %v625_v14, %v664_v15  ;;  %v821_v26 = vshrl.u32 %v3485_v13, 16  ;;  %v823_v27 = vshll.u32 %v3485_v13, 16 }
  0x33   : > { %2954 = vmatprep.subr.bf16.mxu0 %v3086_v38  ;;  %v915_v30 = vrot.slane %v770_v17, 1  ;;  %v666_v31 = vsel %vm651_vm1, %v664_v15, %v665_v18  ;;  %v746_v32 = vsel %vm651_vm1, %v665_v18, %v716_v19  ;;  %v828_v33 = vshll.u32 %v770_v17, 16 }
  0x34   : > { %v757_v35 = vsel %vm752_vm2, %v746_v32, 0.0  ;;  %v3504_v36 = vpack.c.bf16 %v666_v31, %v736_v24  ;;  %v825_v37 = vrot.slane %v823_v27, 1  ;;  %v626_v44 = vrot.slane %v601_v20, 1  ;;  %v513_v27 = vld [vmem:[%s3330_s21 + $0x78] sm:$0xff] }
  0x35   : > { %2763 = vmatpush3.bf16.msra.mxu1 %v3084_v45  ;;  %2955 = vmatpush3.bf16.msra.mxu0 %v3086_v38  ;;  %v602_v38 = vmax.f32 %v582_v10, 0.0  ;;  %v3507_v40 = vsel %vm904_vm3, %v914_v23, %v915_v30  ;;  %v772_v41 = vpack.c.bf16 %v757_v35, %v757_v35  ;;  %v830_v42 = vrot.slane %v828_v33, 1  ;;  %v3092_v45 = vld [vmem:[%s4083_s5 + $0x18] sm:$0xff]   ;;  %v512_v10 = vld [vmem:[%s3330_s21 + $0x70] sm:$0xff] }
  0x36   : > { %2764 = vmatprep.subr.bf16.mxu1 %v3085_v48  ;;  %2956 = vmatprep.subr.bf16.mxu0 %v3091_v43  ;;  %v917_v46 = vrot.slane %v3504_v36, 1  ;;  %v826_v47 = vor.u32 %v825_v37, %v821_v26  ;;  %v667_v48 = vrot.slane %v601_v20, 7  ;;  %v557_v56 = vmul.f32 %v3346_v25, %v530_v6 }
  0x37   : > { %2940 = vmatprep.mubr.bf16.mxu1 %v3507_v40  ;;  %v668_v49 = vrot.slane %v602_v38, 7  ;;  %v918_v54 = vrot.slane %v772_v41, 1  ;;  %v717_v55 = vrot.slane %v602_v38, 5  ;;  %v583_v57 = vadd.f32 %v3355_v28, %v556_v11 }
  0x38   : > { %1238 = vmatmul.mubr.bf16.gmra.mxu0 %v3398_v4  ;;  %v3529_v58 = vsel %vm783_vm4, %v826_v47, %v830_v42  ;;  %v737_v60 = vsel %vm651_vm1, %v626_v44, %v667_v48  ;;  %v833_v61 = vshrl.u32 %v3504_v36, 16  ;;  %v584_v2 = vadd.f32 %v3355_v28, %v557_v56  ;;  %v3097_v42 = vld [vmem:[%s4083_s5 + $0x8] sm:$0xff]  }
  0x39   : > { %2765 = vmatpush3.bf16.msra.mxu1 %v3087_v3  ;;  %2957 = vmatpush3.bf16.msra.mxu0 %v3091_v43  ;;  %v669_v59 = vsel %vm651_vm1, %v667_v48, %v668_v49  ;;  %v3536_v0 = vsel %vm904_vm3, %v917_v46, %v918_v54  ;;  %v747_v43 = vsel %vm651_vm1, %v668_v49, %v717_v55  ;;  %v3094_v3 = vld [vmem:[%s4083_s5 + $0x10] sm:$0xff]   ;;  %v603_v7 = vmax.f32 %v583_v57, 0.0  ;;  %v3098_v48 = vld [vmem:[%s4083_s5 + $0x40] sm:$0xff]  }
  0x3a   : > { %2766 = vmatprep.subr.bf16.mxu1 %v3088_v9  ;;  %2958 = vmatprep.subr.bf16.mxu0 %v3096_v22  ;;  %v3540_v1 = vpack.c.bf16 %v669_v59, %v737_v60  ;;  %v758_v6 = vsel %vm752_vm2, %v747_v43, 0.0  ;;  %v835_v8 = vshll.u32 %v3504_v36, 16  ;;  %v840_v9 = vshll.u32 %v772_v41, 16  ;;  %v3103_v59 = vld [vmem:[%s4083_s5 + $0x80] sm:$0xff]  }
  0x3b   : > { %1245 = vmatprep.mubr.bf16.mxu0 %v3529_v58  ;;  %2941 = vmatmul.mubr.bf16.gmra.mxu1 %v3536_v0  ;;  %v3554_v11 = vpack.c.bf16 %v758_v6, %v758_v6  ;;  %v604_v14 = vmax.f32 %v584_v2, 0.0  ;;  %v531_v15 = vsel %vm516_vm0, %v510_v52, 0.0  ;;  %v627_v17 = vrot.slane %v603_v7, 1  ;;  %v3099_v43 = vld [vmem:[%s4083_s5] sm:$0xff]  }
  0x3c   : > { %v920_v12 = vrot.slane %v3540_v1, 1  ;;  %v670_v18 = vrot.slane %v603_v7, 7  ;;  %v837_v19 = vrot.slane %v835_v8, 1  ;;  %v842_v20 = vrot.slane %v840_v9, 1  ;;  %v496_v8 = vld [vmem:[%s454_s15] sm:$0xff]  ;;  %v3620_v9 = vld [vmem:[%s4083_s5 + $0x238] sm:$0xff]  }
  0x3d   : > { %2767 = vmatpush3.bf16.msra.mxu1 %v3089_v16  ;;  %2959 = vmatpush3.bf16.msra.mxu0 %v3096_v22  ;;  %v3095_v16 = vld [vmem:[%s4083_s5 + $0x48] sm:$0xff]   ;;  %v921_v22 = vrot.slane %v3554_v11, 1  ;;  %v671_v23 = vrot.slane %v604_v14, 7  ;;  %v718_v24 = vrot.slane %v604_v14, 5  ;;  %v532_v26 = vsel %vm516_vm0, %v511_v62, 0.0 }
  0x3e   : > { %2768 = vmatprep.subr.bf16.mxu1 %v3090_v29  ;;  %2960 = vmatprep.subr.bf16.mxu0 %v3100_v53  ;;  %v3102_v29 = vld [vmem:[%s4083_s5 + $0x88] sm:$0xff]   ;;  %v738_v30 = vsel %vm651_vm1, %v627_v17, %v670_v18  ;;  %v838_v31 = vor.u32 %v837_v19, %v833_v61  ;;  %v558_v32 = vmul.f32 %v3346_v25, %v531_v15  ;;  %v533_v41 = vsel %vm516_vm0, %v512_v10, 0.0 }
  0x3f   : > { %v559_v33 = vmul.f32 %v3346_v25, %v532_v26  ;;  %v3572_v35 = vsel %vm904_vm3, %v920_v12, %v921_v22  ;;  %v672_v37 = vsel %vm651_vm1, %v670_v18, %v671_v23  ;;  %v748_v38 = vsel %vm651_vm1, %v671_v23, %v718_v24 }
  0x40   : > { %1246 = vmatmul.mubr.bf16.gmra.mxu0 %v3485_v13  ;;  %2944 = vmatprep.mubr.bf16.mxu1 %v3572_v35  ;;  %v759_v44 = vsel %vm752_vm2, %v748_v38, 0.0  ;;  %v3585_v46 = vsel %vm783_vm4, %v838_v31, %v842_v20  ;;  %v585_v47 = vadd.f32 %v3355_v28, %v558_v32  ;;  %v534_v52 = vsel %vm516_vm0, %v513_v27, 0.0  ;;  %v3105_v20 = vld [vmem:[%s4083_s5 + $0x1f8] sm:$0xff]  }
  0x41   : > { %2769 = vmatpush3.bf16.msra.mxu1 %v3092_v45  ;;  %2961 = vmatpush3.bf16.msra.mxu0 %v3100_v53  ;;  %v3582_v45 = vpack.c.bf16 %v672_v37, %v738_v30  ;;  %v3591_v49 = vpack.c.bf16 %v759_v44, %v759_v44  ;;  %v560_v53 = vmul.f32 %v3346_v25, %v533_v41  ;;  %v845_v57 = vshrl.u32 %v3540_v1, 16 }
  0x42   : > { %2770 = vmatprep.subr.bf16.mxu1 %v3093_v50  ;;  %2962 = vmatprep.subr.bf16.mxu0 %v3101_v5  ;;  %v586_v50 = vadd.f32 %v3355_v28, %v559_v33  ;;  %v605_v55 = vmax.f32 %v585_v47, 0.0  ;;  %v561_v56 = vmul.f32 %v3346_v25, %v534_v52  ;;  %v847_v2 = vshll.u32 %v3540_v1, 16 }
  0x43   : > { %1253 = vmatprep.mubr.bf16.mxu0 %v3585_v46  ;;  %v923_v54 = vrot.slane %v3582_v45, 1  ;;  %v924_v60 = vrot.slane %v3591_v49, 1  ;;  %v587_v62 = vadd.f32 %v3355_v28, %v560_v53  ;;  %v852_v7 = vshll.u32 %v3554_v11, 16 }
  0x44   : > { %v606_v61 = vmax.f32 %v586_v50, 0.0  ;;  %v588_v6 = vadd.f32 %v3355_v28, %v561_v56  ;;  %v849_v11 = vrot.slane %v847_v2, 1  ;;  %v517_v38 = vsel %vm516_vm0, %v496_v8, 0.0 }
  0x45   : > { %2771 = vmatpush3.bf16.msra.mxu1 %v3094_v3  ;;  %2963 = vmatpush3.bf16.msra.mxu0 %v3101_v5  ;;  %v628_v3 = vrot.slane %v605_v55, 1  ;;  %v673_v5 = vrot.slane %v605_v55, 7  ;;  %v3623_v10 = vsel %vm904_vm3, %v923_v54, %v924_v60  ;;  %v607_v15 = vmax.f32 %v587_v62, 0.0 }
  0x46   : > { %2772 = vmatprep.subr.bf16.mxu1 %v3095_v16  ;;  %2964 = vmatprep.subr.bf16.mxu0 %v3102_v29  ;;  %v674_v12 = vrot.slane %v606_v61, 7  ;;  %v719_v14 = vrot.slane %v606_v61, 5  ;;  %v497_v16 = vld [vmem:[%s454_s15 + $0x8] sm:$0xff]  ;;  %v608_v18 = vmax.f32 %v588_v6, 0.0  ;;  %v854_v19 = vrot.slane %v852_v7, 1  ;;  %s2494_s15 = sshll.u32 %s469_s14, 3  ;;  %s3941_s14 = scalar_lea.vmem %s4085_s7, %s2485_s23 }
  0x47   : > { %2945 = vmatmul.mubr.bf16.gmra.mxu1 %v3623_v10  ;;  %v739_v17 = vsel %vm651_vm1, %v628_v3, %v673_v5  ;;  %v629_v24 = vrot.slane %v607_v15, 1  ;;  %v676_v26 = vrot.slane %v607_v15, 7  ;;  %v850_v37 = vor.u32 %v849_v11, %v845_v57  ;;  %s471_s20 = scalar_lea.vmem %s4080_s2, %s2494_s15  ;;  %s492_s23 = sadd.s32 %s2499_s19, %s4146_s27 }
  0x48   : > { %1254 = vmatmul.mubr.bf16.gmra.mxu0 %v3504_v36  ;;  %v675_v22 = vsel %vm651_vm1, %v673_v5, %v674_v12  ;;  %v749_v23 = vsel %vm651_vm1, %v674_v12, %v719_v14  ;;  %v677_v30 = vrot.slane %v608_v18, 7  ;;  %v720_v31 = vrot.slane %v608_v18, 5  ;;  %s2500_s15 = sshll.u32 %s492_s23, 1 }
  0x49   : > { %2773 = vmatpush3.bf16.msra.mxu1 %v3097_v42  ;;  %2965 = vmatpush3.bf16.msra.mxu0 %v3102_v29  ;;  %v760_v27 = vsel %vm752_vm2, %v749_v23, 0.0  ;;  %v3633_v29 = vpack.c.bf16 %v675_v22, %v739_v17  ;;  %v740_v33 = vsel %vm651_vm1, %v629_v24, %v676_v26  ;;  %v518_v47 = vsel %vm516_vm0, %v497_v16, 0.0 }
  0x4a   : > { %2774 = vmatprep.subr.bf16.mxu1 %v3098_v48  ;;  %2966 = vmatprep.subr.bf16.mxu0 %v3103_v59  ;;  %v778_v32 = vpack.c.bf16 %v760_v27, %v760_v27  ;;  %v678_v42 = vsel %vm651_vm1, %v676_v26, %v677_v30  ;;  %v750_v44 = vsel %vm651_vm1, %v677_v30, %v720_v31  ;;  %v857_v57 = vshrl.u32 %v3582_v45, 16 }
  0x4b   : > { %v926_v41 = vrot.slane %v3633_v29, 1  ;;  %v761_v50 = vsel %vm752_vm2, %v750_v44, 0.0  ;;  %v3643_v52 = vpack.c.bf16 %v678_v42, %v740_v33  ;;  %v3646_v53 = vsel %vm783_vm4, %v850_v37, %v854_v19 }
  0x4c   : > { %v927_v48 = vrot.slane %v778_v32, 1  ;;  %v780_v54 = vpack.c.bf16 %v761_v50, %v761_v50  ;;  %1261 = vmatprep.mubr.bf16.mxu0 %v3646_v53  ;;  %v544_v55 = vmul.f32 %v3346_v25, %v517_v38  ;;  %v545_v56 = vmul.f32 %v3346_v25, %v518_v47 }
  0x4d   : > { %2775 = vmatpush3.bf16.msra.mxu1 %v3099_v43  ;;  %2967 = vmatpush3.bf16.msra.mxu0 %v3103_v59  ;;  %v1000_v60 = vrot.slane %v3643_v52, 1  ;;  %v859_v61 = vshll.u32 %v3582_v45, 16  ;;  %v864_v62 = vshll.u32 %v3591_v49, 16  ;;  %v869_v3 = vshrl.u32 %v3633_v29, 16 }
  0x4e   : > { %2984 = vmatprep.subr.bf16.mxu1 %v3620_v9  ;;  %2840 = vmatprep.subr.bf16.mxu0 %v3105_v20  ;;  %v3653_v59 = vsel %vm904_vm3, %v926_v41, %v927_v48  ;;  %v1001_v43 = vrot.slane %v780_v54, 1  ;;  %v571_v2 = vadd.f32 %v3355_v28, %v544_v55  ;;  %v572_v25 = vadd.f32 %v3355_v28, %v545_v56 }
  0x4f   : > { %2948 = vmatprep.mubr.bf16.mxu1 %v3653_v59  ;;  %v861_v5 = vrot.slane %v859_v61, 1  ;;  %v866_v6 = vrot.slane %v864_v62, 1  ;;  %v871_v7 = vshll.u32 %v3633_v29, 16  ;;  %v876_v8 = vshll.u32 %v778_v32, 16  ;;  %v3109_v61 = vld [vmem:[%s4083_s5 + $0x230] sm:$0xff]  }
  0x50   : > { %1262 = vmatmul.mubr.bf16.gmra.mxu0 %v3540_v1  ;;  %v3665_v12 = vsel %vm904_vm3, %v1000_v60, %v1001_v43  ;;  %v591_v14 = vmax.f32 %v571_v2, 0.0  ;;  %v592_v15 = vmax.f32 %v572_v25, 0.0  ;;  %v986_v49 = vshrl.u32 %v3643_v52, 16  ;;  %v3112_v2 = vld [vmem:[%s4083_s5 + $0x228] sm:$0xff]  }
  0x51   : > { %2949 = vmatmul.mubr.bf16.gmra.mxu1 %v3665_v12  ;;  %v862_v16 = vor.u32 %v861_v5, %v857_v57  ;;  %v873_v17 = vrot.slane %v871_v7, 1  ;;  %v878_v18 = vrot.slane %v876_v8, 1  ;;  %v988_v28 = vshll.u32 %v3643_v52, 16  ;;  %v3107_v5 = vld [vmem:[%s4083_s5 + $0x1f0] sm:$0xff]   ;;  %v3124_v7 = vld [vmem:[%s4083_s5 + $0x208] sm:$0xff]  }
  0x52   : > { %v621_v11 = vrot.slane %v591_v14, 1  ;;  %v652_v19 = vrot.slane %v591_v14, 7  ;;  %v653_v20 = vrot.slane %v592_v15, 7  ;;  %v712_v22 = vrot.slane %v592_v15, 5  ;;  %v3111_v8 = vld [vmem:[%s4083_s5 + $0x1a8] sm:$0xff]   ;;  %v3113_v14 = vld [vmem:[%s4083_s5 + $0x1e0] sm:$0xff]  }
  0x53   : > { %v3671_v23 = vsel %vm783_vm4, %v862_v16, %v866_v6  ;;  %v874_v24 = vor.u32 %v873_v17, %v869_v3  ;;  %v990_v26 = vrot.slane %v988_v28, 1  ;;  %v993_v27 = vshll.u32 %v780_v54, 16  ;;  %v3115_v3 = vld [vmem:[%s4083_s5 + $0x220] sm:$0xff]   ;;  %v3108_v6 = vld [vmem:[%s4083_s5 + $0x1b0] sm:$0xff]   ;;  %v3116_v16 = vld [vmem:[%s4083_s5 + $0x1d8] sm:$0xff]  }
  0x54   : > { %v654_v30 = vsel %vm651_vm1, %v652_v19, %v653_v20  ;;  %v732_v31 = vsel %vm651_vm1, %v621_v11, %v652_v19  ;;  %v742_v32 = vsel %vm651_vm1, %v653_v20, %v712_v22  ;;  %1269 = vmatprep.mubr.bf16.mxu0 %v3671_v23  ;;  %v3127_v15 = vld [vmem:[%s4083_s5 + $0x200] sm:$0xff]   ;;  %v3117_v17 = vld [vmem:[%s4083_s5 + $0x198] sm:$0xff]   ;;  %v3120_v28 = vld [vmem:[%s4083_s5 + $0x190] sm:$0xff]  }
  0x55   : > { %v753_v33 = vsel %vm752_vm2, %v742_v32, 0.0  ;;  %v763_v37 = vpack.c.bf16 %v654_v30, %v732_v31  ;;  %v3680_v38 = vsel %vm783_vm4, %v874_v24, %v878_v18  ;;  %v991_v47 = vor.u32 %v990_v26, %v986_v49  ;;  %v3114_v49 = vld [vmem:[%s4083_s5 + $0x1a0] sm:$0xff]   ;;  %v3119_v18 = vld [vmem:[%s4083_s5 + $0x1d0] sm:$0xff]   ;;  %v3122_v11 = vld [vmem:[%s4083_s5 + $0x1c8] sm:$0xff]  }
  0x56   : > { %v764_v41 = vpack.c.bf16 %v753_v33, %v753_v33  ;;  %v995_v48 = vrot.slane %v993_v27, 1  ;;  %v3123_v19 = vld [vmem:[%s4083_s5 + $0x188] sm:$0xff]   ;;  %v3125_v20 = vld [vmem:[%s4083_s5 + $0x1c0] sm:$0xff]  }
  0x57   : > { %v785_v42 = vshrl.u32 %v763_v37, 16  ;;  %v787_v44 = vshll.u32 %v763_v37, 16  ;;  %v905_v62 = vrot.slane %v763_v37, 1  ;;  %v3126_v22 = vld [vmem:[%s4083_s5 + $0x180] sm:$0xff]  }
  0x58   : > { %1270 = vmatmul.mubr.bf16.gmra.mxu0 %v3582_v45  ;;  %v792_v50 = vshll.u32 %v764_v41, 16  ;;  %v3684_v57 = vsel %vm783_vm4, %v991_v47, %v995_v48  ;;  %v906_v43 = vrot.slane %v764_v41, 1  ;;  %v514_v24 = vld [vmem:[%s471_s20] sm:$0xff] }
  0x59   : > { %1277 = vmatprep.mubr.bf16.mxu0 %v3680_v38  ;;  %v789_v54 = vrot.slane %v787_v44, 1  ;;  %v3128_v27 = vld [vmem:[%s4081_s3] ss:$0 sm:$0xff] }
  0x5a   : > { %v794_v55 = vrot.slane %v792_v50, 1  ;;  %v907_v25 = vsel %vm904_vm3, %v905_v62, %v906_v43  ;;  %v3129_v31 = vld [vmem:[%s4082_s4] ss:$0 sm:$0xff] }
  0x5b   : > { %v790_v56 = vor.u32 %v789_v54, %v785_v42 }
  0x5d   : > { %v795_v60 = vsel %vm783_vm4, %v790_v56, %v794_v55 }
  0x5e   : > { %1567 = vmatprep.mubr.bf16.mxu1 %v795_v60 }
  0x5f   : > { %1568 = vmatmul.mubr.bf16.vlgmr.msra.gmra.mxu1 %v763_v37 }
  0x60   : > { %1278 = vmatmul.mubr.bf16.gmra.mxu0 %v3633_v29  ;;  %1575 = vmatprep.mubr.bf16.mxu1 %v3439_v39  ;;  %v3118_v39 = vld [vmem:[%s4083_s5 + $0x218] sm:$0xff]  }
  0x61   : > { %1285 = vmatprep.mubr.bf16.mxu0 %v3684_v57  ;;  %2985 = vmatpush3.bf16.msra.mxu1 %v3620_v9  ;;  %v3106_v9 = vld [vmem:[%s4083_s5 + $0x1b8] sm:$0xff]  }
  0x62   : > { %2986 = vmatprep.subr.bf16.mxu1 %v3109_v61 }
  0x65   : > { %2987 = vmatpush3.bf16.msra.mxu1 %v3109_v61 }
  0x66   : > { %2988 = vmatprep.subr.bf16.mxu1 %v3112_v2 }
  0x67   : > { %1576 = vmatmul.mubr.bf16.gmra.mxu1 %v3393_v63  ;;  %v3121_v63 = vld [vmem:[%s4083_s5 + $0x210] sm:$0xff]  }
  0x68   : > { %1286 = vmatmul.mubr.bf16.gmra.mxu0 %v3643_v52  ;;  %1583 = vmatprep.mubr.bf16.mxu1 %v3457_v51 }
  0x69   : > { %2968 = vmatprep.mubr.bf16.mxu0 %v907_v25  ;;  %2989 = vmatpush3.bf16.msra.mxu1 %v3112_v2 }
  0x6a   : > { %2990 = vmatprep.subr.bf16.mxu1 %v3115_v3 }
  0x6d   : > { %2991 = vmatpush3.bf16.msra.mxu1 %v3115_v3 }
  0x6e   : > { %2992 = vmatprep.subr.bf16.mxu1 %v3118_v39 }
  0x6f   : > { %1584 = vmatmul.mubr.bf16.gmra.mxu1 %v3398_v4 }
  0x70   : > { %2969 = vmatmul.mubr.bf16.vlgmr.msra.gmra.mxu0 %v3417_v21  ;;  %v3110_v21 = vld [vmem:[%s4083_s5 + $0x1e8] sm:$0xff]   ;;  %1591 = vmatprep.mubr.bf16.mxu1 %v3529_v58 }
  0x71   : > { %2841 = vmatpush3.bf16.msra.mxu0 %v3106_v9  ;;  %2972 = vmatprep.mubr.bf16.mxu0 %v3431_v34 }
  0x72   : > { %2842 = vmatprep.subr.bf16.mxu0 %v3107_v5  ;;  %2993 = vmatpush3.bf16.msra.mxu1 %v3118_v39 }
  0x73   : > { %2994 = vmatprep.subr.bf16.mxu1 %v3121_v63 }
  0x75   : > { %2843 = vmatpush3.bf16.msra.mxu0 %v3108_v6 }
  0x76   : > { %2844 = vmatprep.subr.bf16.mxu0 %v3110_v21  ;;  %2995 = vmatpush3.bf16.msra.mxu1 %v3121_v63 }
  0x77   : > { %2996 = vmatprep.subr.bf16.mxu1 %v3124_v7  ;;  %1592 = vmatmul.mubr.bf16.gmra.mxu1 %v3485_v13 }
  0x78   : > { %2973 = vmatmul.mubr.bf16.gmra.mxu0 %v3507_v40  ;;  %1599 = vmatprep.mubr.bf16.mxu1 %v3585_v46 }
  0x79   : > { %2845 = vmatpush3.bf16.msra.mxu0 %v3111_v8  ;;  %2976 = vmatprep.mubr.bf16.mxu0 %v3536_v0 }
  0x7a   : > { %2846 = vmatprep.subr.bf16.mxu0 %v3113_v14  ;;  %2997 = vmatpush3.bf16.msra.mxu1 %v3124_v7 }
  0x7b   : > { %2998 = vmatprep.subr.bf16.mxu1 %v3127_v15 }
  0x7d   : > { %2847 = vmatpush3.bf16.msra.mxu0 %v3114_v49 }
  0x7e   : > { %2848 = vmatprep.subr.bf16.mxu0 %v3116_v16  ;;  %2999 = vmatpush3.bf16.msra.mxu1 %v3127_v15 }
  0x7f   : > { %1600 = vmatmul.mubr.bf16.gmra.mxu1 %v3504_v36 }
  0x80   : > { %2977 = vmatmul.mubr.bf16.gmra.mxu0 %v3572_v35  ;;  %1607 = vmatprep.mubr.bf16.mxu1 %v3646_v53 }
  0x81   : > { %2849 = vmatpush3.bf16.msra.mxu0 %v3117_v17  ;;  %2980 = vmatprep.mubr.bf16.mxu0 %v3623_v10 }
  0x82   : > { %2850 = vmatprep.subr.bf16.mxu0 %v3119_v18 }
  0x85   : > { %2851 = vmatpush3.bf16.msra.mxu0 %v3120_v28 }
  0x86   : > { %2852 = vmatprep.subr.bf16.mxu0 %v3122_v11 }
  0x87   : > { %1608 = vmatmul.mubr.bf16.gmra.mxu1 %v3540_v1 }
  0x88   : > { %2981 = vmatmul.mubr.bf16.gmra.mxu0 %v3653_v59  ;;  %1615 = vmatprep.mubr.bf16.mxu1 %v3671_v23 }
  0x89   : > { %2853 = vmatpush3.bf16.msra.mxu0 %v3123_v19  ;;  %1973 = vmatprep.mubr.bf16.mxu0 %v3457_v51  ;;  %v515_v51 = vld [vmem:[%s471_s20 + $0x8] sm:$0xff]  ;;  %s494_s20 = scalar_lea.vmem %s4086_s8, %s2500_s15 }
  0x8a   : > { %2854 = vmatprep.subr.bf16.mxu0 %v3125_v20  ;;  %v536_v26 = vsel %vm516_vm0, %v515_v51, 0.0 }
  0x8b   : > { %v563_v30 = vmul.f32 %v3128_v27, %v536_v26 }
  0x8d   : > { %2855 = vmatpush3.bf16.msra.mxu0 %v3126_v22  ;;  %v590_v32 = vadd.f32 %v3129_v31, %v563_v30 }
  0x8f   : > { %1616 = vmatmul.mubr.bf16.gmra.mxu1 %v3582_v45 }
  0x90   : > { %1974 = vmatmul.mubr.bf16.vlgmr.msra.gmra.mxu0 %v3398_v4  ;;  %1623 = vmatprep.mubr.bf16.mxu1 %v3680_v38  ;;  %v535_v4 = vsel %vm516_vm0, %v514_v24, 0.0 }
  0x91   : > { %1981 = vmatprep.mubr.bf16.mxu0 %v3529_v58  ;;  %v562_v58 = vmul.f32 %v3128_v27, %v535_v4 }
  0x97   : > { %1624 = vmatmul.mubr.bf16.gmra.mxu1 %v3633_v29 }
  0x98   : > { %1982 = vmatmul.mubr.bf16.gmra.mxu0 %v3485_v13  ;;  %3000 = vmatprep.mubr.bf16.mxu1 %v3431_v34  ;;  %v589_v13 = vadd.f32 %v3129_v31, %v562_v58 }
  0x99   : > { %1989 = vmatprep.mubr.bf16.mxu0 %v3585_v46  ;;  %v610_v46 = vmax.f32 %v590_v32, 0.0 }
  0x9a   : > { %v609_v33 = vmax.f32 %v589_v13, 0.0 }
  0x9b   : > { %v680_v37 = vrot.slane %v610_v46, 7  ;;  %v721_v41 = vrot.slane %v610_v46, 5 }
  0x9c   : > { %v630_v34 = vrot.slane %v609_v33, 1  ;;  %v679_v42 = vrot.slane %v609_v33, 7 }
  0x9d   : > { %v751_v44 = vsel %vm651_vm1, %v680_v37, %v721_v41 }
  0x9f   : > { %3001 = vmatmul.mubr.bf16.vlgmr.msra.gmra.mxu1 %v3507_v40  ;;  %v741_v40 = vsel %vm651_vm1, %v630_v34, %v679_v42 }
  0xa0   : > { %1990 = vmatmul.mubr.bf16.gmra.mxu0 %v3504_v36  ;;  %3004 = vmatprep.mubr.bf16.mxu1 %v3536_v0  ;;  %v681_v36 = vsel %vm651_vm1, %v679_v42, %v680_v37  ;;  %v762_v0 = vsel %vm752_vm2, %v751_v44, 0.0 }
  0xa1   : > { %1997 = vmatprep.mubr.bf16.mxu0 %v3646_v53  ;;  %v781_v53 = vpack.c.bf16 %v681_v36, %v741_v40  ;;  %v782_v47 = vpack.c.bf16 %v762_v0, %v762_v0 }
  0xa3   : > { %v1737_v50 = vshll.u32 %v782_v47, 16 }
  0xa5   : > { %v1739_v55 = vrot.slane %v1737_v50, 1 }
  0xa7   : > { %3005 = vmatmul.mubr.bf16.gmra.mxu1 %v3572_v35  ;;  %v1744_v35 = vrot.slane %v781_v53, 1 }
  0xa8   : > { %1998 = vmatmul.mubr.bf16.gmra.mxu0 %v3540_v1  ;;  %3008 = vmatprep.mubr.bf16.mxu1 %v3623_v10  ;;  %v1732_v1 = vshll.u32 %v781_v53, 16  ;;  %v1730_v10 = vshrl.u32 %v781_v53, 16 }
  0xa9   : > { %2005 = vmatprep.mubr.bf16.mxu0 %v3671_v23  ;;  %v1745_v23 = vrot.slane %v782_v47, 1 }
  0xaa   : > { %v1734_v48 = vrot.slane %v1732_v1, 1 }
  0xab   : > { %v1746_v54 = vsel %vm904_vm3, %v1744_v35, %v1745_v23 }
  0xaf   : > { %3009 = vmatmul.mubr.bf16.gmra.mxu1 %v3653_v59 }
  0xb0   : > { %2006 = vmatmul.mubr.bf16.gmra.mxu0 %v3582_v45  ;;  %3012 = vmatprep.mubr.bf16.mxu1 %v3665_v12  ;;  %v1735_v45 = vor.u32 %v1734_v48, %v1730_v10 }
  0xb1   : > { %2013 = vmatprep.mubr.bf16.mxu0 %v3680_v38 }
  0xb2   : > { %v1740_v38 = vsel %vm783_vm4, %v1735_v45, %v1739_v55 }
  0xb7   : > { %3013 = vmatmul.mubr.bf16.gmra.mxu1 %v1746_v54 }
  0xb8   : > { %2014 = vmatmul.mubr.bf16.gmra.mxu0 %v3633_v29 }
  0xb9   : > { %2021 = vmatprep.mubr.bf16.mxu0 %v3684_v57 }
  0xc0   : > { %2022 = vmatmul.mubr.bf16.gmra.mxu0 %v3643_v52 }
  0xc1   : > { %2029 = vmatprep.mubr.bf16.mxu0 %v1740_v38 }
  0xc8   : > { %2030 = vmatmul.mubr.bf16.gmra.mxu0 %v781_v53 }
  0xf0   : > { %v2938_v59 = vpop.f32.mrf.mxu1  ;;  %v2696_v12 = vpop.f32.mrf.mxu0 }
  0xf2   : > { %v1328_v56 = vpop.f32.mrf.mxu1  ;;  %v2697_v60 = vpop.f32.mrf.mxu0 }
  0xf3   : > { %v2698_v61 = vadd.f32 %v2697_v60, %v2696_v12 }
  0xf4   : > { %v2699_v62 = vpop.f32.mrf.mxu0  ;;  %v2939_v43 = vpop.f32.mrf.mxu1 }
  0xf5   : > { %v3820_v2 = vadd.f32 %v2698_v61, %v1328_v56 }
  0xf6   : > { %v2700_v29 = vpop.f32.mrf.mxu0  ;;  %v1331_v25 = vpop.f32.mrf.mxu1 }
  0xf7   : > { %v2701_v57 = vadd.f32 %v2700_v29, %v2699_v62 }
  0xf8   : > { %v2702_v3 = vpop.f32.mrf.mxu0 }
  0xf9   : > { %v3822_v39 = vadd.f32 %v2701_v57, %v1331_v25 }
  0xfa   : > { %v2703_v9 = vpop.f32.mrf.mxu0 }
  0xfb   : > { %v2704_v5 = vadd.f32 %v2703_v9, %v2702_v3  ;;  %v2942_v21 = vpop.f32.mrf.mxu1 }
  0xfc   : > { %v2705_v52 = vpop.f32.mrf.mxu0 }
  0xfd   : > { %v3824_v63 = vadd.f32 %v2938_v59, %v2704_v5  ;;  %v1344_v14 = vpop.f32.mrf.mxu1 }
  0xfe   : > { %v2706_v6 = vpop.f32.mrf.mxu0 }
  0xff   : > { %v2707_v7 = vadd.f32 %v2706_v6, %v2705_v52  ;;  %v2943_v16 = vpop.f32.mrf.mxu1 }
 0x100   : > { %v2708_v8 = vpop.f32.mrf.mxu0 }
 0x101   : > { %v3826_v15 = vadd.f32 %v2939_v43, %v2707_v7  ;;  %v1347_v19 = vpop.f32.mrf.mxu1 }
 0x102   : > { %v2709_v49 = vpop.f32.mrf.mxu0 }
 0x103   : > { %v2710_v17 = vadd.f32 %v2709_v49, %v2708_v8 }
 0x104   : > { %v2711_v18 = vpop.f32.mrf.mxu0 }
 0x105   : > { %v3828_v28 = vadd.f32 %v2710_v17, %v1344_v14 }
 0x106   : > { %v2712_v11 = vpop.f32.mrf.mxu0 }
 0x107   : > { %v2713_v20 = vadd.f32 %v2712_v11, %v2711_v18  ;;  %v2946_v26 = vpop.f32.mrf.mxu1 }
 0x108   : > { %v2714_v22 = vpop.f32.mrf.mxu0 }
 0x109   : > { %v3830_v51 = vadd.f32 %v2713_v20, %v1347_v19  ;;  %v1360_v30 = vpop.f32.mrf.mxu1 }
 0x10a   : > { %v2715_v24 = vpop.f32.mrf.mxu0 }
 0x10b   : > { %v2716_v4 = vadd.f32 %v2715_v24, %v2714_v22  ;;  %v2947_v32 = vpop.f32.mrf.mxu1 }
 0x10c   : > { %v2717_v27 = vpop.f32.mrf.mxu0 }
 0x10d   : > { %v3832_v58 = vadd.f32 %v2942_v21, %v2716_v4  ;;  %v1363_v33 = vpop.f32.mrf.mxu1 }
 0x10e   : > { %v2718_v31 = vpop.f32.mrf.mxu0 }
 0x10f   : > { %v2719_v13 = vadd.f32 %v2718_v31, %v2717_v27 }
 0x110   : > { %v2720_v37 = vpop.f32.mrf.mxu0 }
 0x111   : > { %v3834_v46 = vadd.f32 %v2943_v16, %v2719_v13  ;;  %v2950_v42 = vpop.f32.mrf.mxu1 }
 0x112   : > { %v2721_v41 = vpop.f32.mrf.mxu0 }
 0x113   : > { %v2722_v34 = vadd.f32 %v2721_v41, %v2720_v37  ;;  %v1376_v40 = vpop.f32.mrf.mxu1 }
 0x114   : > { %v2723_v44 = vpop.f32.mrf.mxu0 }
 0x115   : > { %v3836_v36 = vadd.f32 %v2722_v34, %v1360_v30  ;;  %v2951_v35 = vpop.f32.mrf.mxu1 }
 0x116   : > { %v2724_v0 = vpop.f32.mrf.mxu0 }
 0x117   : > { %v2725_v53 = vadd.f32 %v2724_v0, %v2723_v44  ;;  %v1379_v54 = vpop.f32.mrf.mxu1 }
 0x118   : > { %v2726_v47 = vpop.f32.mrf.mxu0 }
 0x119   : > { %v3838_v1 = vadd.f32 %v2725_v53, %v1363_v33 }
 0x11a   : > { %v2727_v23 = vpop.f32.mrf.mxu0 }
 0x11b   : > { %4087 = vst [vmem:[#allocation2_spill] sm:$0xff] %v3838_v1  ;;  %v2728_v10 = vadd.f32 %v2727_v23, %v2726_v47 }
 0x11c   : > { %v2729_v48 = vpop.f32.mrf.mxu0 }
 0x11d   : > { %v3840_v50 = vadd.f32 %v2946_v26, %v2728_v10 }
 0x11e   : > { %v2730_v45 = vpop.f32.mrf.mxu0 }
 0x11f   : > { %4088 = vst [vmem:[#allocation3_spill] sm:$0xff] %v3840_v50  ;;  %v2731_v55 = vadd.f32 %v2730_v45, %v2729_v48  ;;  %v3844_v12 = vpop.f32.mrf.mxu1 }
 0x120   : > { %v2732_v38 = vpop.f32.mrf.mxu0 }
 0x121   : > { %v3842_v59 = vadd.f32 %v2947_v32, %v2731_v55  ;;  %v3846_v61 = vpop.f32.mrf.mxu1 }
 0x122   : > { %v2733_v56 = vpop.f32.mrf.mxu0 }
 0x123   : > { %4089 = vst [vmem:[#allocation4_spill] sm:$0xff] %v3842_v59  ;;  %v2734_v60 = vadd.f32 %v2733_v56, %v2732_v38  ;;  %v3850_v29 = vpop.f32.mrf.mxu1 }
 0x124   : > { %v2735_v62 = vpop.f32.mrf.mxu0 }
 0x125   : > { %v3848_v43 = vadd.f32 %v2734_v60, %v1376_v40  ;;  %v3852_v3 = vpop.f32.mrf.mxu1 }
 0x126   : > { %v2736_v57 = vpop.f32.mrf.mxu0 }
 0x127   : > { %4090 = vst [vmem:[#allocation5_spill] sm:$0xff] %v3848_v43  ;;  %v2737_v25 = vadd.f32 %v2736_v57, %v2735_v62  ;;  %v2782_v52 = vpop.f32.mrf.mxu1 }
 0x128   : > { %v2738_v9 = vpop.f32.mrf.mxu0 }
 0x129   : > { %v3854_v5 = vadd.f32 %v2737_v25, %v1379_v54  ;;  %v2783_v7 = vpop.f32.mrf.mxu1 }
 0x12a   : > { %v2739_v6 = vpop.f32.mrf.mxu0 }
 0x12b   : > { %4091 = vst [vmem:[#allocation6_spill] sm:$0xff] %v3854_v5  ;;  %v2740_v21 = vadd.f32 %v2739_v6, %v2738_v9  ;;  %v2785_v49 = vpop.f32.mrf.mxu1 }
 0x12c   : > { %v2741_v8 = vpop.f32.mrf.mxu0 }
 0x12d   : > { %v1385_v14 = vadd.f32 %v2950_v42, %v2740_v21  ;;  %v2786_v18 = vpop.f32.mrf.mxu1 }
 0x12e   : > { %v2742_v16 = vpop.f32.mrf.mxu0 }
 0x12f   : > { %v2743_v17 = vadd.f32 %v2742_v16, %v2741_v8  ;;  %v2788_v20 = vpop.f32.mrf.mxu1 }
 0x130   : > { %v3856_v11 = vpop.f32.mrf.mxu0 }
 0x131   : > { %v3858_v19 = vadd.f32 %v2951_v35, %v2743_v17  ;;  %v2789_v24 = vpop.f32.mrf.mxu1 }
 0x132   : > { %v3860_v22 = vpop.f32.mrf.mxu0 }
 0x133   : > { %v3864_v4 = vpop.f32.mrf.mxu1 }
 0x134   : > { %v3862_v26 = vpop.f32.mrf.mxu0 }
 0x135   : > { %v2792_v30 = vpop.f32.mrf.mxu1 }
 0x136   : > { %v3866_v27 = vpop.f32.mrf.mxu0 }
 0x137   : > { %v2794_v32 = vpop.f32.mrf.mxu1 }
 0x138   : > { %v3868_v31 = vpop.f32.mrf.mxu0 }
 0x139   : > { %v2795_v33 = vpop.f32.mrf.mxu1 }
 0x13a   : > { %v3870_v13 = vpop.f32.mrf.mxu0 }
 0x13b   : > { %v2797_v41 = vpop.f32.mrf.mxu1 }
 0x13c   : > { %v3872_v37 = vpop.f32.mrf.mxu0 }
 0x13d   : > { %v2798_v42 = vpop.f32.mrf.mxu1 }
 0x13e   : > { %v3874_v34 = vpop.f32.mrf.mxu0 }
 0x13f   : > { %v2800_v40 = vpop.f32.mrf.mxu1 }
 0x140   : > { %v3876_v44 = vpop.f32.mrf.mxu0 }
 0x141   : > { %4092 = vst [vmem:[#allocation7_spill] sm:$0xff] %v3876_v44  ;;  %v2801_v53 = vpop.f32.mrf.mxu1  ;;  %v2778_v44 = vadd.f32 %v3846_v61, %v3844_v12  ;;  %v2790_v12 = vadd.f32 %v2789_v24, %v2788_v20 }
 0x142   : > { %v3878_v0 = vpop.f32.mrf.mxu0  ;;  %v2802_v24 = vadd.f32 %v2801_v53, %v2800_v40 }
 0x143   : > { %4093 = vst [vmem:[#allocation8_spill] sm:$0xff] %v3878_v0  ;;  %v3882_v35 = vpop.f32.mrf.mxu1  ;;  %v2781_v0 = vadd.f32 %v3852_v3, %v3850_v29 }
 0x144   : > { %v3880_v47 = vpop.f32.mrf.mxu0 }
 0x145   : > { %4094 = vst [vmem:[#allocation9_spill] sm:$0xff] %v3880_v47  ;;  %v3886_v10 = vpop.f32.mrf.mxu1  ;;  %v2784_v47 = vadd.f32 %v2783_v7, %v2782_v52 }
 0x146   : > { %v3884_v23 = vpop.f32.mrf.mxu0 }
 0x147   : > { %4095 = vst [vmem:[#allocation10_spill] sm:$0xff] %v3884_v23  ;;  %v3888_v54 = vpop.f32.mrf.mxu1  ;;  %v2787_v23 = vadd.f32 %v2786_v18, %v2785_v49  ;;  %v2796_v49 = vadd.f32 %v2795_v33, %v2794_v32  ;;  %v2799_v18 = vadd.f32 %v2798_v42, %v2797_v41 }
 0x148   : > { %v2982_v48 = vpop.f32.mrf.mxu0  ;;  %4096 = vst [vmem:[#allocation11_spill] sm:$0xff] %v3888_v54 }
 0x149   : > { %v3892_v55 = vpop.f32.mrf.mxu1  ;;  %v1594_v40 = vadd.f32 %v2796_v49, %v3832_v58  ;;  %v1597_v53 = vadd.f32 %v2799_v18, %v3834_v46 }
 0x14a   : > { %v3890_v45 = vpop.f32.mrf.mxu0  ;;  %4098 = vst [vmem:[#allocation13_spill] sm:$0xff] %v3892_v55 }
 0x14b   : > { %4097 = vst [vmem:[#allocation12_spill] sm:$0xff] %v3890_v45  ;;  %v3894_v56 = vpop.f32.mrf.mxu1  ;;  %v1694_v46 = vadd.f32 %v3872_v37, %v1597_v53 }
 0x14c   : > { %v2983_v38 = vpop.f32.mrf.mxu0  ;;  %4099 = vst [vmem:[#allocation14_spill] sm:$0xff] %v3894_v56 }
 0x14d   : > { %v3898_v62 = vpop.f32.mrf.mxu1 }
 0x14e   : > { %v3896_v60 = vpop.f32.mrf.mxu0  ;;  %4101 = vst [vmem:[#allocation16_spill] sm:$0xff] %v3898_v62 }
 0x14f   : > { %4100 = vst [vmem:[#allocation15_spill] sm:$0xff] %v3896_v60  ;;  %v3900_v25 = vpop.f32.mrf.mxu1 }
 0x150   : > { %v2856_v57 = vpop.f32.mrf.mxu0  ;;  %4102 = vst [vmem:[#allocation17_spill] sm:$0xff] %v3900_v25 }
 0x151   : > { %v3902_v6 = vpop.f32.mrf.mxu1 }
 0x152   : > { %v2857_v9 = vpop.f32.mrf.mxu0  ;;  %4103 = vst [vmem:[#allocation18_spill] sm:$0xff] %v3902_v6 }
 0x153   : > { %v3904_v8 = vpop.f32.mrf.mxu1  ;;  %v2858_v7 = vadd.f32 %v2857_v9, %v2856_v57  ;;  %v1691_v57 = vadd.f32 %v3868_v31, %v1594_v40 }
 0x154   : > { %v2859_v21 = vpop.f32.mrf.mxu0  ;;  %4104 = vst [vmem:[#allocation19_spill] sm:$0xff] %v3904_v8  ;;  %v1578_v8 = vadd.f32 %v2784_v47, %v3824_v63 }
 0x155   : > { %v3906_v17 = vpop.f32.mrf.mxu1 }
 0x156   : > { %v2860_v16 = vpop.f32.mrf.mxu0  ;;  %4105 = vst [vmem:[#allocation20_spill] sm:$0xff] %v3906_v17  ;;  %v1570_v17 = vadd.f32 %v2778_v44, %v3820_v2  ;;  %v2793_v2 = vadd.f32 %v2792_v30, %v3864_v4  ;;  %v1581_v44 = vadd.f32 %v2787_v23, %v3826_v15  ;;  %v3928_v4 = vld [vmem:[%s4084_s6] ss:$0 sm:$0xff] }
 0x157   : > { %v2818_v45 = vpop.f32.mrf.mxu1 }
 0x158   : > { %v2862_v5 = vpop.f32.mrf.mxu0  ;;  %v1678_v32 = vadd.f32 %v3862_v26, %v1581_v44 }
 0x159   : > { %v2819_v59 = vpop.f32.mrf.mxu1 }
 0x15a   : > { %v2863_v43 = vpop.f32.mrf.mxu0  ;;  %v2820_v50 = vadd.f32 %v2819_v59, %v2818_v45  ;;  %v1675_v59 = vadd.f32 %v3856_v11, %v1578_v8  ;;  %v2861_v11 = vadd.f32 %v2860_v16, %v2859_v21 }
 0x15b   : > { %v2821_v25 = vpop.f32.mrf.mxu1  ;;  %v2864_v6 = vadd.f32 %v2863_v43, %v2862_v5  ;;  %v1667_v43 = vadd.f32 %v3860_v22, %v1570_v17  ;;  %v1573_v22 = vadd.f32 %v2781_v0, %v3822_v39 }
 0x15c   : > { %v2865_v60 = vpop.f32.mrf.mxu0  ;;  %v1626_v56 = vadd.f32 %v2820_v50, %v1385_v14 }
 0x15d   : > { %v2822_v55 = vpop.f32.mrf.mxu1  ;;  %v1670_v23 = vadd.f32 %v3866_v27, %v1573_v22 }
 0x15e   : > { %v2866_v62 = vpop.f32.mrf.mxu0  ;;  %v3912_v1 = vadd.f32 %v2982_v48, %v1626_v56  ;;  %v2823_v52 = vadd.f32 %v2822_v55, %v2821_v25 }
 0x15f   : > { %v3002_v61 = vpop.f32.mrf.mxu1  ;;  %v2867_v14 = vadd.f32 %v2866_v62, %v2865_v60  ;;  %v2805_v62 = vadd.f32 %v3886_v10, %v3882_v35 }
 0x160   : > { %v2868_v54 = vpop.f32.mrf.mxu0  ;;  %v1629_v63 = vadd.f32 %v2823_v52, %v3858_v19  ;;  %v2081_v5 = vadd.f32 %v3002_v61, %v2864_v6  ;;  %v1586_v19 = vadd.f32 %v2790_v12, %v3828_v28  ;;  %v1589_v28 = vadd.f32 %v2793_v2, %v3830_v51 }
 0x161   : > { %v2072_v47 = vpop.f32.mrf.mxu1 }
 0x162   : > { %v2869_v50 = vpop.f32.mrf.mxu0  ;;  %v3921_v29 = vadd.f32 %v2983_v38, %v1629_v63  ;;  %v2073_v3 = vadd.f32 %v2858_v7, %v2072_v47  ;;  %v2137_v20 = vadd.f32 %v2081_v5, %v1675_v59  ;;  %v1683_v39 = vadd.f32 %v3870_v13, %v1586_v19 }
 0x163   : > { %v3003_v30 = vpop.f32.mrf.mxu1  ;;  %v2870_v58 = vadd.f32 %v2869_v50, %v2868_v54  ;;  %v1686_v51 = vadd.f32 %v3874_v34, %v1589_v28  ;;  %v1602_v13 = vadd.f32 %v2802_v24, %v3836_v36  ;;  %v4106_v54 = vld [vmem:[#allocation8_spill] sm:$0xff] }
 0x164   : > { %v2871_v48 = vpop.f32.mrf.mxu0  ;;  %v2135_v33 = vadd.f32 %v2073_v3, %v1667_v43  ;;  %v2160_v41 = vadd.f32 %v3928_v4, %v2137_v20  ;;  %v2084_v42 = vadd.f32 %v3003_v30, %v2867_v14 }
 0x165   : > { %v2075_v26 = vpop.f32.mrf.mxu1  ;;  %v3956_v9 = vadd.f32 %v4106_v54, %v1602_v13 }
 0x166   : > { %v2872_v15 = vpop.f32.mrf.mxu0  ;;  %v2158_v27 = vadd.f32 %v3928_v4, %v2135_v33  ;;  %v2076_v45 = vadd.f32 %v2861_v11, %v2075_v26  ;;  %2176 = vst.msk [vmem:[%s3941_s14 + $0x10] sm:$0xff] %vm516_vm0, %v2160_v41  ;;  %v2229_v55 = vmul.f32 %v2160_v41, %v2160_v41  ;;  %v2138_v38 = vadd.f32 %v2084_v42, %v1678_v32 }
 0x167   : > { %v3006_v56 = vpop.f32.mrf.mxu1  ;;  %v2193_v31 = vsel %vm516_vm0, %v2160_v41, 0.0  ;;  %v2873_v16 = vadd.f32 %v2872_v15, %v2871_v48 }
 0x168   : > { %v2874_v0 = vpop.f32.mrf.mxu0  ;;  %2174 = vst.msk [vmem:[%s3941_s14] sm:$0xff] %vm516_vm0, %v2158_v27  ;;  %v2136_v25 = vadd.f32 %v2076_v45, %v1670_v23  ;;  %v2227_v34 = vmul.f32 %v2158_v27, %v2158_v27  ;;  %v2161_v36 = vadd.f32 %v3928_v4, %v2138_v38  ;;  %v2190_v37 = vsel %vm516_vm0, %v2158_v27, 0.0  ;;  %v4107_v23 = vld [vmem:[#allocation2_spill] sm:$0xff] }
 0x169   : > { %v2088_v6 = vpop.f32.mrf.mxu1  ;;  %v2246_v17 = vsel %vm516_vm0, %v2229_v55, 0.0  ;;  %v1605_v40 = vadd.f32 %v2805_v62, %v4107_v23  ;;  %v4109_v55 = vld [vmem:[#allocation13_spill] sm:$0xff] }
 0x16a   : > { %v2875_v60 = vpop.f32.mrf.mxu0  ;;  %v2159_v35 = vadd.f32 %v3928_v4, %v2136_v25  ;;  %v2089_v10 = vadd.f32 %v2870_v58, %v2088_v6  ;;  %2177 = vst.msk [vmem:[%s3941_s14 + $0x18] sm:$0xff] %vm516_vm0, %v2161_v36  ;;  %v2230_v52 = vmul.f32 %v2161_v36, %v2161_v36  ;;  %v2243_v5 = vsel %vm516_vm0, %v2227_v34, 0.0 }
 0x16b   : > { %v2876_v21 = vadd.f32 %v2875_v60, %v2874_v0  ;;  %v3007_v7 = vpop.f32.mrf.mxu1  ;;  %v2195_v2 = vsel %vm516_vm0, %v2161_v36, 0.0 }
 0x16c   : > { %v2877_v8 = vpop.f32.mrf.mxu0  ;;  %2175 = vst.msk [vmem:[%s3941_s14 + $0x8] sm:$0xff] %vm516_vm0, %v2159_v35  ;;  %v2191_v61 = vsel %vm516_vm0, %v2159_v35, 0.0  ;;  %v2228_v50 = vmul.f32 %v2159_v35, %v2159_v35  ;;  %v2139_v43 = vadd.f32 %v2089_v10, %v1683_v39  ;;  %v2248_v22 = vsel %vm516_vm0, %v2230_v52, 0.0 }
 0x16d   : > { %v2097_v12 = vadd.f32 %v3006_v56, %v2876_v21  ;;  %v2192_v14 = vadd.f32 %v2191_v61, %v2190_v37  ;;  %v2091_v49 = vpop.f32.mrf.mxu1  ;;  %v4110_v56 = vld [vmem:[#allocation10_spill] sm:$0xff] }
 0x16e   : > { %v2878_v59 = vpop.f32.mrf.mxu0  ;;  %v2244_v47 = vsel %vm516_vm0, %v2228_v50, 0.0  ;;  %v2162_v48 = vadd.f32 %v3928_v4, %v2139_v43  ;;  %v2092_v3 = vadd.f32 %v2873_v16, %v2091_v49  ;;  %v1702_v60 = vadd.f32 %v4110_v56, %v1605_v40  ;;  %v4111_v37 = vld [vmem:[#allocation14_spill] sm:$0xff]  ;;  %v4116_v40 = vld [vmem:[#allocation17_spill] sm:$0xff] }
 0x16f   : > { %v2879_v63 = vadd.f32 %v2878_v59, %v2877_v8  ;;  %v2141_v18 = vadd.f32 %v2097_v12, %v1691_v57  ;;  %v2245_v20 = vadd.f32 %v2244_v47, %v2243_v5  ;;  %v2194_v24 = vadd.f32 %v2193_v31, %v2192_v14  ;;  %v3010_v15 = vpop.f32.mrf.mxu1  ;;  %v4113_v14 = vld [vmem:[#allocation3_spill] sm:$0xff] }
 0x170   : > { %v2880_v44 = vpop.f32.mrf.mxu0  ;;  %2178 = vst.msk [vmem:[%s3941_s14 + $0x20] sm:$0xff] %vm516_vm0, %v2162_v48  ;;  %v2197_v32 = vsel %vm516_vm0, %v2162_v48, 0.0  ;;  %v2231_v33 = vmul.f32 %v2162_v48, %v2162_v48  ;;  %v2140_v41 = vadd.f32 %v2092_v3, %v1686_v51  ;;  %v4108_v51 = vld [vmem:[#allocation11_spill] sm:$0xff] }
 0x171   : > { %v2100_v11 = vadd.f32 %v3007_v7, %v2879_v63  ;;  %v2164_v19 = vadd.f32 %v3928_v4, %v2141_v18  ;;  %v2247_v39 = vadd.f32 %v2246_v17, %v2245_v20  ;;  %v2196_v28 = vadd.f32 %v2195_v2, %v2194_v24  ;;  %v2104_v53 = vpop.f32.mrf.mxu1  ;;  %v4112_v17 = vld [vmem:[#allocation16_spill] sm:$0xff]  ;;  %v4114_v24 = vld [vmem:[#allocation7_spill] sm:$0xff] }
 0x172   : > { %v2881_v30 = vpop.f32.mrf.mxu0  ;;  %v2250_v27 = vsel %vm516_vm0, %v2231_v33, 0.0  ;;  %v2163_v45 = vadd.f32 %v3928_v4, %v2140_v41  ;;  %v2808_v38 = vadd.f32 %v4109_v55, %v4108_v51  ;;  %v2811_v52 = vadd.f32 %v4112_v17, %v4111_v37 }
 0x173   : > { %v2142_v42 = vadd.f32 %v2100_v11, %v1694_v46  ;;  %2180 = vst.msk [vmem:[%s3941_s14 + $0x30] sm:$0xff] %vm516_vm0, %v2164_v19  ;;  %v2233_v26 = vmul.f32 %v2164_v19, %v2164_v19  ;;  %v2882_v13 = vadd.f32 %v2881_v30, %v2880_v44  ;;  %v2198_v62 = vadd.f32 %v2197_v32, %v2196_v28  ;;  %v3011_v25 = vpop.f32.mrf.mxu1 }
 0x174   : > { %v2883_v0 = vpop.f32.mrf.mxu0  ;;  %v2249_v57 = vadd.f32 %v2248_v22, %v2247_v39  ;;  %2179 = vst.msk [vmem:[%s3941_s14 + $0x28] sm:$0xff] %vm516_vm0, %v2163_v45  ;;  %v2199_v54 = vsel %vm516_vm0, %v2163_v45, 0.0  ;;  %v2232_v34 = vmul.f32 %v2163_v45, %v2163_v45  ;;  %v2201_v36 = vsel %vm516_vm0, %v2164_v19, 0.0  ;;  %v4115_v19 = vld [vmem:[#allocation4_spill] sm:$0xff]  ;;  %v4117_v39 = vld [vmem:[#allocation18_spill] sm:$0xff] }
 0x175   : > { %v2165_v58 = vadd.f32 %v3928_v4, %v2142_v42  ;;  %v2200_v8 = vadd.f32 %v2199_v54, %v2198_v62  ;;  %v2105_v35 = vadd.f32 %v2882_v13, %v2104_v53  ;;  %v2107_v16 = vpop.f32.mrf.mxu1  ;;  %v2254_v12 = vsel %vm516_vm0, %v2233_v26, 0.0 }
 0x176   : > { %v2884_v46 = vpop.f32.mrf.mxu0  ;;  %v2251_v21 = vadd.f32 %v2250_v27, %v2249_v57  ;;  %v2252_v7 = vsel %vm516_vm0, %v2232_v34, 0.0  ;;  %v1610_v2 = vadd.f32 %v2808_v38, %v4113_v14  ;;  %v2814_v28 = vadd.f32 %v4117_v39, %v4116_v40  ;;  %v4118_v27 = vld [vmem:[#allocation9_spill] sm:$0xff]  ;;  %v4119_v57 = vld [vmem:[#allocation19_spill] sm:$0xff] }
 0x177   : > { %2181 = vst.msk [vmem:[%s3941_s14 + $0x38] sm:$0xff] %vm516_vm0, %v2165_v58  ;;  %v2234_v6 = vmul.f32 %v2165_v58, %v2165_v58  ;;  %v2885_v31 = vadd.f32 %v2884_v46, %v2883_v0  ;;  %v2203_v59 = vsel %vm516_vm0, %v2165_v58, 0.0  ;;  %v2202_v50 = vadd.f32 %v2201_v36, %v2200_v8  ;;  %v4001_v20 = vpop.f32.mrf.mxu1  ;;  %v4120_v46 = vld [vmem:[#allocation20_spill] sm:$0xff] }
 0x178   : > { %v2886_v10 = vpop.f32.mrf.mxu0  ;;  %v2253_v61 = vadd.f32 %v2252_v7, %v2251_v21  ;;  %v2143_v43 = vadd.f32 %v2105_v35, %v3956_v9  ;;  %v1707_v22 = vadd.f32 %v4114_v24, %v1610_v2  ;;  %v1613_v9 = vadd.f32 %v2811_v52, %v4115_v19 }
 0x179   : > { %v2108_v63 = vadd.f32 %v2885_v31, %v2107_v16  ;;  %v2256_v49 = vsel %vm516_vm0, %v2234_v6, 0.0  ;;  %v2204_v48 = vadd.f32 %v2203_v59, %v2202_v50  ;;  %v2120_v55 = vpop.f32.mrf.mxu1  ;;  %v2817_v54 = vadd.f32 %v4120_v46, %v4119_v57  ;;  %v4121_v31 = vld [vmem:[#allocation5_spill] sm:$0xff] }
 0x17a   : > { %v2887_v5 = vpop.f32.mrf.mxu0  ;;  %v2255_v44 = vadd.f32 %v2254_v12, %v2253_v61  ;;  %v2166_v47 = vadd.f32 %v3928_v4, %v2143_v43  ;;  %v1710_v45 = vadd.f32 %v4118_v27, %v1613_v9  ;;  %v4122_v12 = vld [vmem:[#allocation12_spill] sm:$0xff] }
 0x17b   : > { %v2888_v18 = vadd.f32 %v2887_v5, %v2886_v10  ;;  %v2144_v3 = vadd.f32 %v2108_v63, %v1702_v60  ;;  %v1618_v10 = vadd.f32 %v2814_v28, %v4121_v31  ;;  %v4123_v63 = vld [vmem:[#allocation6_spill] sm:$0xff] }
 0x17c   : > { %v2889_v11 = vpop.f32.mrf.mxu0  ;;  %2182 = vst.msk [vmem:[%s3941_s14 + $0x40] sm:$0xff] %vm516_vm0, %v2166_v47  ;;  %v2205_v32 = vsel %vm516_vm0, %v2166_v47, 0.0  ;;  %v2235_v33 = vmul.f32 %v2166_v47, %v2166_v47  ;;  %v2257_v41 = vadd.f32 %v2256_v49, %v2255_v44  ;;  %v1621_v5 = vadd.f32 %v2817_v54, %v4123_v63 }
 0x17d   : > { %v2113_v30 = vadd.f32 %v3010_v15, %v2888_v18  ;;  %v2167_v42 = vadd.f32 %v3928_v4, %v2144_v3  ;;  %v2206_v26 = vadd.f32 %v2205_v32, %v2204_v48  ;;  %v1715_v59 = vadd.f32 %v4122_v12, %v1618_v10  ;;  %v4124_v3 = vld [vmem:[#allocation15_spill] sm:$0xff] }
 0x17e   : > { %v2890_v23 = vpop.f32.mrf.mxu0  ;;  %v2258_v15 = vsel %vm516_vm0, %v2235_v33, 0.0 }
 0x17f   : > { %v2145_v0 = vadd.f32 %v2113_v30, %v1707_v22  ;;  %v2891_v53 = vadd.f32 %v2890_v23, %v2889_v11  ;;  %2183 = vst.msk [vmem:[%s3941_s14 + $0x48] sm:$0xff] %vm516_vm0, %v2167_v42  ;;  %v2207_v58 = vsel %vm516_vm0, %v2167_v42, 0.0  ;;  %v2236_v13 = vmul.f32 %v2167_v42, %v2167_v42 }
 0x180   : > { %v2892_v51 = vpop.f32.mrf.mxu0  ;;  %v2259_v38 = vadd.f32 %v2258_v15, %v2257_v41  ;;  %v2208_v56 = vadd.f32 %v2207_v58, %v2206_v26  ;;  %v1718_v11 = vadd.f32 %v4124_v3, %v1621_v5 }
 0x181   : > { %v2168_v60 = vadd.f32 %v3928_v4, %v2145_v0  ;;  %v2116_v62 = vadd.f32 %v3011_v25, %v2891_v53  ;;  %v2260_v34 = vsel %vm516_vm0, %v2236_v13, 0.0  ;;  %v3015_v25 = vpop.f32.mrf.mxu1 }
 0x182   : > { %v2893_v36 = vpop.f32.mrf.mxu0  ;;  %v2261_v6 = vadd.f32 %v2260_v34, %v2259_v38 }
 0x183   : > { %2184 = vst.msk [vmem:[%s3941_s14 + $0x50] sm:$0xff] %vm516_vm0, %v2168_v60  ;;  %v2209_v21 = vsel %vm516_vm0, %v2168_v60, 0.0  ;;  %v2237_v8 = vmul.f32 %v2168_v60, %v2168_v60  ;;  %v2146_v35 = vadd.f32 %v2116_v62, %v1710_v45  ;;  %v2894_v37 = vadd.f32 %v2893_v36, %v2892_v51  ;;  %v2123_v47 = vpop.f32.mrf.mxu1 }
 0x184   : > { %v2210_v16 = vadd.f32 %v2209_v21, %v2208_v56  ;;  %v2895_v17 = vpop.f32.mrf.mxu0 }
 0x185   : > { %v2262_v52 = vsel %vm516_vm0, %v2237_v8, 0.0  ;;  %v2169_v7 = vadd.f32 %v3928_v4, %v2146_v35  ;;  %v2121_v50 = vadd.f32 %v2894_v37, %v2120_v55 }
 0x186   : > { %v2263_v61 = vadd.f32 %v2262_v52, %v2261_v6  ;;  %v2896_v43 = vpop.f32.mrf.mxu0 }
 0x187   : > { %2185 = vst.msk [vmem:[%s3941_s14 + $0x58] sm:$0xff] %vm516_vm0, %v2169_v7  ;;  %v2211_v14 = vsel %vm516_vm0, %v2169_v7, 0.0  ;;  %v2238_v2 = vmul.f32 %v2169_v7, %v2169_v7  ;;  %v2897_v49 = vadd.f32 %v2896_v43, %v2895_v17  ;;  %v2147_v18 = vadd.f32 %v2121_v50, %v1715_v59 }
 0x188   : > { %v2212_v44 = vadd.f32 %v2211_v14, %v2210_v16  ;;  %v2898_v48 = vpop.f32.mrf.mxu0 }
 0x189   : > { %v2264_v24 = vsel %vm516_vm0, %v2238_v2, 0.0  ;;  %v2124_v22 = vadd.f32 %v2897_v49, %v2123_v47  ;;  %v2170_v19 = vadd.f32 %v3928_v4, %v2147_v18 }
 0x18a   : > { %v2265_v9 = vadd.f32 %v2264_v24, %v2263_v61  ;;  %v2899_v30 = vpop.f32.mrf.mxu0 }
 0x18b   : > { %v2148_v32 = vadd.f32 %v2124_v22, %v1718_v11  ;;  %v2900_v33 = vadd.f32 %v2899_v30, %v2898_v48  ;;  %2186 = vst.msk [vmem:[%s3941_s14 + $0x60] sm:$0xff] %vm516_vm0, %v2170_v19  ;;  %v2213_v41 = vsel %vm516_vm0, %v2170_v19, 0.0  ;;  %v2239_v42 = vmul.f32 %v2170_v19, %v2170_v19 }
 0x18c   : > { %v2901_v23 = vpop.f32.mrf.mxu0  ;;  %v2214_v40 = vadd.f32 %v2213_v41, %v2212_v44 }
 0x18d   : > { %v2171_v39 = vadd.f32 %v3928_v4, %v2148_v32  ;;  %v2129_v28 = vadd.f32 %v4001_v20, %v2900_v33  ;;  %v2266_v26 = vsel %vm516_vm0, %v2239_v42, 0.0 }
 0x18e   : > { %v2902_v0 = vpop.f32.mrf.mxu0  ;;  %v2267_v53 = vadd.f32 %v2266_v26, %v2265_v9 }
 0x18f   : > { %2187 = vst.msk [vmem:[%s3941_s14 + $0x68] sm:$0xff] %vm516_vm0, %v2171_v39  ;;  %v2215_v27 = vsel %vm516_vm0, %v2171_v39, 0.0  ;;  %v2240_v45 = vmul.f32 %v2171_v39, %v2171_v39  ;;  %v2149_v15 = vadd.f32 %v2129_v28, %v3912_v1  ;;  %v2903_v13 = vadd.f32 %v2902_v0, %v2901_v23 }
 0x190   : > { %v2216_v58 = vadd.f32 %v2215_v27, %v2214_v40 }
 0x191   : > { %v2268_v51 = vsel %vm516_vm0, %v2240_v45, 0.0  ;;  %v2172_v55 = vadd.f32 %v3928_v4, %v2149_v15  ;;  %v2132_v38 = vadd.f32 %v3015_v25, %v2903_v13 }
 0x192   : > { %v2269_v20 = vadd.f32 %v2268_v51, %v2267_v53 }
 0x193   : > { %2188 = vst.msk [vmem:[%s3941_s14 + $0x70] sm:$0xff] %vm516_vm0, %v2172_v55  ;;  %v2217_v56 = vsel %vm516_vm0, %v2172_v55, 0.0  ;;  %v2241_v60 = vmul.f32 %v2172_v55, %v2172_v55  ;;  %v2150_v57 = vadd.f32 %v2132_v38, %v3921_v29 }
 0x194   : > { %v2218_v62 = vadd.f32 %v2217_v56, %v2216_v58 }
 0x195   : > { %v2270_v1 = vsel %vm516_vm0, %v2241_v60, 0.0  ;;  %v2173_v54 = vadd.f32 %v3928_v4, %v2150_v57 }
 0x196   : > { %v2271_v46 = vadd.f32 %v2270_v1, %v2269_v20 }
 0x197   : > { %2189 = vst.msk [vmem:[%s3941_s14 + $0x78] sm:$0xff] %vm516_vm0, %v2173_v54  ;;  %v2219_v34 = vsel %vm516_vm0, %v2173_v54, 0.0  ;;  %v2242_v36 = vmul.f32 %v2173_v54, %v2173_v54 }
 0x198   : > { %v2220_v6 = vadd.f32 %v2219_v34, %v2218_v62 }
 0x199   : > { %v2272_v21 = vsel %vm516_vm0, %v2242_v36, 0.0 }
 0x19a   : > { %v2221_v8 = vrot.slane %v2220_v6, 4  ;;  %v2273_v35 = vadd.f32 %v2272_v21, %v2271_v46 }
 0x19c   : > { %v2222_v31 = vadd.f32 %v2221_v8, %v2220_v6  ;;  %v2274_v10 = vrot.slane %v2273_v35, 4 }
 0x19e   : > { %v2223_v29 = vrot.slane %v2222_v31, 2  ;;  %v2275_v16 = vadd.f32 %v2274_v10, %v2273_v35 }
 0x1a0   : > { %v2224_v37 = vadd.f32 %v2223_v29, %v2222_v31  ;;  %v2276_v4 = vrot.slane %v2275_v16, 2 }
 0x1a2   : > { %v2225_v17 = vrot.slane %v2224_v37, 1  ;;  %v2277_v25 = vadd.f32 %v2276_v4, %v2275_v16 }
 0x1a4   : > { %v2278_v52 = vrot.slane %v2277_v25, 1  ;;  %v2226_v7 = vadd.f32 %v2225_v17, %v2224_v37 }
 0x1a6   : > { %v2279_v12 = vadd.f32 %v2278_v52, %v2277_v25 }
 0x1a8   : > { %v2280_v59 = vsel %vm651_vm1, %v2226_v7, %v2279_v12 }
 0x1a9   : > { %2282 = vst.msk [vmem:[%s494_s20] sm:$0x3] %vm2281_vm5, %v2280_v59 }
 0x1aa PF: > { %s19_s9 = sadd.s32 1, %s3168_s9   ;;  %s4125_s27 = smov %s3160_s29 }
 0x1ab   : > { %p16_p12 = scmp.ge.s32.totalorder %s19_s9, 6   ;;  %s4126_s28 = smov %s3164_s30 }
 0x1ac   : > { %s4127_s29 = smov %s4130_s10  ;;  %s4128_s30 = smov %s4134_s11 }
 0x1ad   :  { %18 = sbr.rel (!%p16_p12) target bundleno = 3 (0x3), region = 98 }

// kernel: residual_block.3
= control target key start
LH: loop header
LB: loop body
LE: loop exit
PB: predicated region body
PF: predicated region fallthrough
CT: control target
= control target key end

     0   :  { %s3148_s27 = smov 0   ;;  %s3150_s28 = smov 0   ;;  %s4039_s0 = inlined_call_operand.vmem [shape: f32[2,16,16,4], index: 0, kind: input, shape index: {}, may-alias: {0,1,2}]   ;;  %s4040_s1 = inlined_call_operand.vmem [shape: f32[2,16,16,4], index: 1, kind: input, shape index: {}, may-alias: {0,1,2}]   ;;  %s4041_s2 = inlined_call_operand.vmem [shape: f32[2,16,16,4], index: 2, kind: input, shape index: {}, may-alias: {0,1,2}]   ;;  %s4042_s3 = inlined_call_operand.vmem [shape: f32[2,16,16,4], index: 3, kind: input, shape index: {}, may-alias: {3,8}]   ;;  %s4043_s4 = inlined_call_operand.vmem [shape: f32[1,128], index: 4, kind: input, shape index: {}]   ;;  %s4044_s5 = inlined_call_operand.vmem [shape: f32[1,128], index: 5, kind: input, shape index: {}]   ;;  %s4045_s6 = inlined_call_operand.vmem [shape: bf16[3,384,128], index: 6, kind: input, shape index: {}]   ;;  %s4046_s7 = inlined_call_operand.vmem [shape: f32[1,128], index: 7, kind: input, shape index: {}]   ;;  %s4047_s8 = inlined_call_operand.vmem [shape: f32[2,16,16,4], index: 8, kind: output, shape index: {}, may-alias: {3,8}]  }
   0x1   :  { %s3152_s29 = smov 0   ;;  %s3154_s30 = smov 0  }
   0x2   :  { %s3156_s9 = smov 0  }
   0x3 LB: > { %s27_s10 = sadd.s32 1, %s3093_s29  ;;  %s30_s11 = sadd.s32 1, %s3097_s30  ;;  %s3101_s9 = sphi %s3156_s9, %s18_s9   ;;  %s3097_s30 = sphi %s3154_s30, %s4089_s30   ;;  %s3093_s29 = sphi %s3152_s29, %s4088_s29   ;;  %s3089_s28 = sphi %s3150_s28, %s4087_s28   ;;  %s3085_s27 = sphi %s3148_s27, %s4086_s27  }
   0x4   : > { %p28_p0 = scmp.ge.s32.totalorder %s27_s10, 2  ;;  %p2412_p1 = scmp.ge.s32.totalorder %s3101_s9, 1 }
   0x5   : > { %p366_p2 = scmp.lt.s32.totalorder %s3101_s9, 5 }
   0x6   : > { %s4091_s10 = smov (%p28_p0, %s27_s10), 0  ;;  %s4093_s11 = smov (!%p28_p0, %s30_s11), %s3097_s30 }
   0x7   : > { %p367_p3 = pnand %p2412_p1, %p366_p2  ;;  %p32_p4 = scmp.ge.s32.totalorder %s4093_s11, 2 }
   0x9   : > { %s4095_s11 = smov (%p32_p4, %s4093_s11), 0  ;;  %370 = sbr.rel (%p367_p3) target bundleno = 410 (0x19a), region = 52 }
   0xe   : > { %v2989_v0 = vld [vmem:[%s4045_s6 + $0x138] sm:$0xff]   ;;  %s3189_s16 = sshll.u32 %s3085_s27, 3  ;;  %v2992_v3 = vld [vmem:[%s4045_s6 + $0x130] sm:$0xff]   ;;  %p447_p5 = scmp.lt.s32.totalorder %s3089_s28, 1  ;;  %v2995_v6 = vld [vmem:[%s4045_s6 + $0x128] sm:$0xff]   ;;  %vm534_vm0 = vcmask 31744  }
   0xf   : > { %v2990_v1 = vld [vmem:[%s4045_s6 + $0x178] sm:$0xff]   ;;  %2613 = vmatprep.subr.bf16.mxu0 %v2989_v0  ;;  %v2993_v4 = vld [vmem:[%s4045_s6 + $0x170] sm:$0xff]   ;;  %p449_p6 = scmp.lt.s32.totalorder %s3189_s16, 15  ;;  %v2996_v7 = vld [vmem:[%s4045_s6 + $0x168] sm:$0xff]   ;;  %p457_p7 = scmp.eq.s32.totalorder %s3085_s27, 0  ;;  %vm669_vm1 = vcmask 1040384  }
  0x10   : > { %v2991_v2 = vld [vmem:[%s4045_s6 + $0xf8] sm:$0xff]   ;;  %2853 = vmatprep.subr.bf16.mxu1 %v2990_v1  ;;  %v2994_v5 = vld [vmem:[%s4045_s6 + $0xf0] sm:$0xff]   ;;  %s4097_s28 = smov (!%p447_p5, %s3089_s28), 1  ;;  %v2997_v8 = vld [vmem:[%s4045_s6 + $0xe8] sm:$0xff]   ;;  %s2418_s13 = sadd.s32 4294967295, %s3189_s16  ;;  %vm770_vm2 = vcmask 1041408  }
  0x11   : > { %2614 = vmatpush3.bf16.msra.mxu0 %v2991_v2  ;;  %2854 = vmatpush3.bf16.msra.mxu1 %v2990_v1  ;;  %s450_s17 = scalar_select %p449_p6, %s3189_s16, 15  ;;  %v2998_v9 = vld [vmem:[%s4045_s6 + $0x120] sm:$0xff]   ;;  %v3001_v12 = vld [vmem:[%s4045_s6 + $0x118] sm:$0xff]   ;;  %v3004_v15 = vld [vmem:[%s4045_s6 + $0x110] sm:$0xff]   ;;  %vm922_vm3 = vcmask 1046528  }
  0x12   : > { %2615 = vmatprep.subr.bf16.mxu0 %v2992_v3  ;;  %2855 = vmatprep.subr.bf16.mxu1 %v2993_v4  ;;  %v2999_v10 = vld [vmem:[%s4045_s6 + $0x160] sm:$0xff]   ;;  %s3225_s24 = sshll.u32 %s4097_s28, 5  ;;  %v3002_v13 = vld [vmem:[%s4045_s6 + $0x158] sm:$0xff]   ;;  %v3005_v16 = vld [vmem:[%s4045_s6 + $0x150] sm:$0xff]   ;;  %s4099_s13 = smov (%p457_p7, %s2418_s13), 1 }
  0x13   : > { %v3000_v11 = vld [vmem:[%s4045_s6 + $0xe0] sm:$0xff]   ;;  %s2414_s12 = sshll.u32 %s450_s17, 1  ;;  %v3003_v14 = vld [vmem:[%s4045_s6 + $0xd8] sm:$0xff]   ;;  %v3006_v17 = vld [vmem:[%s4045_s6 + $0xd0] sm:$0xff]   ;;  %vm801_vm4 = vsmask.f32 7424 }
  0x14   : > { %s453_s28 = sadd.s32 %s3225_s24, %s2414_s12  ;;  %v3007_v18 = vld [vmem:[%s4045_s6 + $0x108] sm:$0xff]   ;;  %v3010_v21 = vld [vmem:[%s4045_s6 + $0x100] sm:$0xff]   ;;  %v3013_v40 = vld [vmem:[%s4045_s6 + $0x78] sm:$0xff]   ;;  %p463_p8 = scmp.lt.s32.totalorder %s4099_s13, 15 }
  0x15   : > { %2616 = vmatpush3.bf16.msra.mxu0 %v2994_v5  ;;  %2856 = vmatpush3.bf16.msra.mxu1 %v2993_v4  ;;  %s3243_s22 = sshll.u32 %s453_s28, 3  ;;  %v3008_v19 = vld [vmem:[%s4045_s6 + $0x148] sm:$0xff]   ;;  %v3011_v22 = vld [vmem:[%s4045_s6 + $0x140] sm:$0xff]   ;;  %v3310_v43 = vld [vmem:[%s4045_s6 + $0xb8] sm:$0xff]   ;;  %p474_p9 = scmp.eq.s32.totalorder %s3085_s27, 1 }
  0x16   : > { %2617 = vmatprep.subr.bf16.mxu0 %v2995_v6  ;;  %2857 = vmatprep.subr.bf16.mxu1 %v2996_v7  ;;  %s3258_s28 = scalar_lea.vmem %s4039_s0, %s3243_s22  ;;  %v3009_v20 = vld [vmem:[%s4045_s6 + $0xc8] sm:$0xff]   ;;  %v3274_v25 = vld [vmem:[%s4043_s4] ss:$0 sm:$0xff]  ;;  %s4101_s13 = smov (!%p463_p8, %s4099_s13), 15 }
  0x17   : > { %v516_v23 = vld [vmem:[%s3258_s28] sm:$0xff]  ;;  %v517_v24 = vld [vmem:[%s3258_s28 + $0x8] sm:$0xff]  ;;  %v518_v29 = vld [vmem:[%s3258_s28 + $0x10] sm:$0xff]  ;;  %s2419_s18 = sshll.u32 %s4101_s13, 1  ;;  %s2612_s17 = sadd.s32 8, %s3189_s16 }
  0x18   : > { %v537_v26 = vsel %vm534_vm0, %v516_v23, 0.0  ;;  %v538_v27 = vsel %vm534_vm0, %v517_v24, 0.0  ;;  %v3283_v28 = vld [vmem:[%s4044_s5] ss:$0 sm:$0xff]  ;;  %v519_v30 = vld [vmem:[%s3258_s28 + $0x18] sm:$0xff]  ;;  %v539_v33 = vsel %vm534_vm0, %v518_v29, 0.0  ;;  %s3449_s19 = sadd.s32 %s2419_s18, %s3225_s24  ;;  %s3868_s13 = scalar_lea.vmem %s4042_s3, %s3243_s22 }
  0x19   : > { %2618 = vmatpush3.bf16.msra.mxu0 %v2997_v8  ;;  %2858 = vmatpush3.bf16.msra.mxu1 %v2996_v7  ;;  %v564_v31 = vmul.f32 %v3274_v25, %v537_v26  ;;  %v565_v32 = vmul.f32 %v3274_v25, %v538_v27  ;;  %v540_v34 = vsel %vm534_vm0, %v519_v30, 0.0  ;;  %v3012_v35 = vld [vmem:[%s4045_s6 + $0xc0] sm:$0xff]   ;;  %v566_v36 = vmul.f32 %v3274_v25, %v539_v33  ;;  %v521_v53 = vld [vmem:[%s3258_s28 + $0x28] sm:$0xff]  ;;  %v3015_v23 = vld [vmem:[%s4045_s6 + $0x38] sm:$0xff]   ;;  %s2421_s21 = sshll.u32 %s3449_s19, 3  ;;  %s4103_s17 = smov (%p474_p9, %s2612_s17), 14 }
  0x1a   : > { %2619 = vmatprep.subr.bf16.mxu0 %v2998_v9  ;;  %2859 = vmatprep.subr.bf16.mxu1 %v2999_v10  ;;  %v567_v37 = vmul.f32 %v3274_v25, %v540_v34  ;;  %v520_v48 = vld [vmem:[%s3258_s28 + $0x20] sm:$0xff]  ;;  %v542_v5 = vsel %vm534_vm0, %v521_v53, 0.0  ;;  %v3016_v24 = vld [vmem:[%s4045_s6 + $0x70] sm:$0xff]   ;;  %v525_v33 = vld [vmem:[%s3258_s28 + $0x48] sm:$0xff]  ;;  %s469_s25 = scalar_lea.vmem %s4040_s1, %s2421_s21  ;;  %p480_p10 = scmp.lt.s32.totalorder %s4103_s17, 15 }
  0x1b   : > { %v591_v38 = vadd.f32 %v3283_v28, %v564_v31  ;;  %v592_v39 = vadd.f32 %v3283_v28, %v565_v32  ;;  %v593_v41 = vadd.f32 %v3283_v28, %v566_v36  ;;  %v541_v61 = vsel %vm534_vm0, %v520_v48, 0.0  ;;  %v524_v27 = vld [vmem:[%s3258_s28 + $0x40] sm:$0xff]  ;;  %v3018_v48 = vld [vmem:[%s4045_s6 + $0x68] sm:$0xff]  }
  0x1c   : > { %v594_v42 = vadd.f32 %v3283_v28, %v567_v37  ;;  %v569_v31 = vmul.f32 %v3274_v25, %v542_v5  ;;  %s4105_s17 = smov (!%p480_p10, %s4103_s17), 15 }
  0x1d   : > { %2620 = vmatpush3.bf16.msra.mxu0 %v3000_v11  ;;  %2860 = vmatpush3.bf16.msra.mxu1 %v2999_v10  ;;  %v611_v44 = vmax.f32 %v591_v38, 0.0  ;;  %v612_v45 = vmax.f32 %v592_v39, 0.0  ;;  %v613_v46 = vmax.f32 %v593_v41, 0.0  ;;  %v3019_v38 = vld [vmem:[%s4045_s6 + $0xb0] sm:$0xff]   ;;  %s2423_s23 = sshll.u32 %s4105_s17, 1 }
  0x1e   : > { %2621 = vmatprep.subr.bf16.mxu0 %v3001_v12  ;;  %2861 = vmatprep.subr.bf16.mxu1 %v3002_v13  ;;  %v614_v47 = vmax.f32 %v594_v42, 0.0  ;;  %v596_v41 = vadd.f32 %v3283_v28, %v569_v31 }
  0x1f   : > { %v640_v49 = vrot.slane %v611_v44, 1  ;;  %v673_v50 = vrot.slane %v611_v44, 7  ;;  %v674_v51 = vrot.slane %v612_v45, 7  ;;  %v731_v52 = vrot.slane %v612_v45, 5  ;;  %v526_v44 = vld [vmem:[%s3258_s28 + $0x50] sm:$0xff] }
  0x20   : > { %v641_v54 = vrot.slane %v613_v46, 1  ;;  %v676_v55 = vrot.slane %v613_v46, 7  ;;  %v677_v56 = vrot.slane %v614_v47, 7  ;;  %v732_v57 = vrot.slane %v614_v47, 5  ;;  %v3017_v45 = vld [vmem:[%s4045_s6 + $0x30] sm:$0xff]  }
  0x21   : > { %2622 = vmatpush3.bf16.msra.mxu0 %v3003_v14  ;;  %2862 = vmatpush3.bf16.msra.mxu1 %v3002_v13  ;;  %v675_v58 = vsel %vm669_vm1, %v673_v50, %v674_v51  ;;  %v751_v59 = vsel %vm669_vm1, %v640_v49, %v673_v50  ;;  %v761_v60 = vsel %vm669_vm1, %v674_v51, %v731_v52  ;;  %v522_v14 = vld [vmem:[%s3258_s28 + $0x30] sm:$0xff]  ;;  %v545_v49 = vsel %vm534_vm0, %v524_v27, 0.0 }
  0x22   : > { %2623 = vmatprep.subr.bf16.mxu0 %v3004_v15  ;;  %2863 = vmatprep.subr.bf16.mxu1 %v3005_v16  ;;  %v772_v62 = vsel %vm770_vm2, %v761_v60, 0.0  ;;  %v3321_v63 = vpack.c.bf16 %v675_v58, %v751_v59  ;;  %v678_v0 = vsel %vm669_vm1, %v676_v55, %v677_v56  ;;  %v752_v1 = vsel %vm669_vm1, %v641_v54, %v676_v55  ;;  %v527_v55 = vld [vmem:[%s3258_s28 + $0x58] sm:$0xff] }
  0x23   : > { %v784_v2 = vpack.c.bf16 %v772_v62, %v772_v62  ;;  %v762_v3 = vsel %vm669_vm1, %v677_v56, %v732_v57  ;;  %v3326_v4 = vpack.c.bf16 %v678_v0, %v752_v1  ;;  %v543_v36 = vsel %vm534_vm0, %v522_v14, 0.0 }
  0x24   : > { %v815_v6 = vshrl.u32 %v3321_v63, 16  ;;  %v817_v7 = vshll.u32 %v3321_v63, 16  ;;  %v926_v8 = vrot.slane %v3321_v63, 1  ;;  %v773_v9 = vsel %vm770_vm2, %v762_v3, 0.0  ;;  %v3020_v3 = vld [vmem:[%s4045_s6 + $0x28] sm:$0xff]  }
  0x25   : > { %2624 = vmatpush3.bf16.msra.mxu0 %v3006_v17  ;;  %2864 = vmatpush3.bf16.msra.mxu1 %v3005_v16  ;;  %v822_v10 = vshll.u32 %v784_v2, 16  ;;  %v927_v11 = vrot.slane %v784_v2, 1  ;;  %v786_v12 = vpack.c.bf16 %v773_v9, %v773_v9  ;;  %v929_v13 = vrot.slane %v3326_v4, 1  ;;  %v3021_v9 = vld [vmem:[%s4045_s6 + $0x60] sm:$0xff]  }
  0x26   : > { %2625 = vmatprep.subr.bf16.mxu0 %v3007_v18  ;;  %2865 = vmatprep.subr.bf16.mxu1 %v3008_v19  ;;  %v819_v15 = vrot.slane %v817_v7, 1  ;;  %v827_v16 = vshrl.u32 %v3326_v4, 16  ;;  %v829_v17 = vshll.u32 %v3326_v4, 16  ;;  %v568_v18 = vmul.f32 %v3274_v25, %v541_v61 }
  0x27   : > { %v834_v26 = vshll.u32 %v786_v12, 16  ;;  %v570_v46 = vmul.f32 %v3274_v25, %v543_v36  ;;  %v546_v50 = vsel %vm534_vm0, %v525_v33, 0.0  ;;  %v616_v52 = vmax.f32 %v596_v41, 0.0 }
  0x28   : > { %v820_v29 = vor.u32 %v819_v15, %v815_v6  ;;  %v831_v30 = vrot.slane %v829_v17, 1  ;;  %v595_v32 = vadd.f32 %v3283_v28, %v568_v18  ;;  %v572_v58 = vmul.f32 %v3274_v25, %v545_v49 }
  0x29   : > { %2626 = vmatpush3.bf16.msra.mxu0 %v3009_v20  ;;  %2866 = vmatpush3.bf16.msra.mxu1 %v3008_v19  ;;  %v523_v19 = vld [vmem:[%s3258_s28 + $0x38] sm:$0xff]  ;;  %v824_v20 = vrot.slane %v822_v10, 1  ;;  %v597_v56 = vadd.f32 %v3283_v28, %v570_v46  ;;  %v547_v59 = vsel %vm534_vm0, %v526_v44, 0.0  ;;  %v680_v60 = vrot.slane %v616_v52, 7 }
  0x2a   : > { %2627 = vmatprep.subr.bf16.mxu0 %v3010_v21  ;;  %2867 = vmatprep.subr.bf16.mxu1 %v3011_v22  ;;  %v3345_v21 = vsel %vm922_vm3, %v926_v8, %v927_v11  ;;  %v544_v37 = vsel %vm534_vm0, %v523_v19, 0.0  ;;  %v615_v42 = vmax.f32 %v595_v32, 0.0  ;;  %v733_v61 = vrot.slane %v616_v52, 5  ;;  %v528_v52 = vld [vmem:[%s3258_s28 + $0x60] sm:$0xff] }
  0x2b   : > { %2869 = vmatprep.mubr.bf16.mxu1 %v3345_v21  ;;  %v3367_v39 = vsel %vm801_vm4, %v820_v29, %v824_v20  ;;  %v571_v47 = vmul.f32 %v3274_v25, %v544_v37  ;;  %v573_v0 = vmul.f32 %v3274_v25, %v546_v50  ;;  %v617_v1 = vmax.f32 %v597_v56, 0.0  ;;  %v3023_v29 = vld [vmem:[%s4045_s6 + $0x58] sm:$0xff]   ;;  %v3026_v50 = vld [vmem:[%s4045_s6 + $0x50] sm:$0xff]  }
  0x2c   : > { %1247 = vmatprep.mubr.bf16.mxu0 %v3367_v39  ;;  %v642_v53 = vrot.slane %v615_v42, 1  ;;  %v679_v54 = vrot.slane %v615_v42, 7  ;;  %v599_v5 = vadd.f32 %v3283_v28, %v572_v58  ;;  %v548_v6 = vsel %vm534_vm0, %v527_v55, 0.0 }
  0x2d   : > { %2628 = vmatpush3.bf16.msra.mxu0 %v3012_v35  ;;  %2868 = vmatpush3.bf16.msra.mxu1 %v3011_v22  ;;  %v930_v22 = vrot.slane %v786_v12, 1  ;;  %v836_v35 = vrot.slane %v834_v26, 1  ;;  %v598_v57 = vadd.f32 %v3283_v28, %v571_v47  ;;  %v763_v8 = vsel %vm669_vm1, %v680_v60, %v733_v61 }
  0x2e   : > { %2693 = vmatprep.subr.bf16.mxu1 %v3013_v40  ;;  %2885 = vmatprep.subr.bf16.mxu0 %v3310_v43  ;;  %v832_v40 = vor.u32 %v831_v30, %v827_v16  ;;  %v753_v62 = vsel %vm669_vm1, %v642_v53, %v679_v54  ;;  %v681_v7 = vsel %vm669_vm1, %v679_v54, %v680_v60  ;;  %v774_v12 = vsel %vm770_vm2, %v763_v8, 0.0  ;;  %v3022_v16 = vld [vmem:[%s4045_s6 + $0x20] sm:$0xff]   ;;  %v3033_v53 = vld [vmem:[%s4045_s6 + $0x98] sm:$0xff]  }
  0x2f   : > { %v3359_v34 = vsel %vm922_vm3, %v929_v13, %v930_v22  ;;  %v618_v2 = vmax.f32 %v598_v57, 0.0  ;;  %v600_v10 = vadd.f32 %v3283_v28, %v573_v0  ;;  %v574_v11 = vmul.f32 %v3274_v25, %v547_v59  ;;  %v3029_v22 = vld [vmem:[%s4045_s6 + $0xa0] sm:$0xff]  }
  0x30   : > { %2870 = vmatmul.mubr.bf16.vlgmr.msra.gmra.mxu1 %v3359_v34  ;;  %1248 = vmatmul.mubr.bf16.vlgmr.msra.gmra.mxu0 %v3321_v63  ;;  %v3385_v51 = vsel %vm801_vm4, %v832_v40, %v836_v35  ;;  %v3413_v13 = vpack.c.bf16 %v681_v7, %v753_v62  ;;  %v643_v14 = vrot.slane %v617_v1, 1  ;;  %v682_v15 = vrot.slane %v617_v1, 7  ;;  %v529_v62 = vld [vmem:[%s3258_s28 + $0x68] sm:$0xff] }
  0x31   : > { %2694 = vmatpush3.bf16.msra.mxu1 %v3015_v23  ;;  %2886 = vmatpush3.bf16.msra.mxu0 %v3310_v43  ;;  %v3024_v43 = vld [vmem:[%s4045_s6 + $0xa8] sm:$0xff]   ;;  %v788_v17 = vpack.c.bf16 %v774_v12, %v774_v12  ;;  %v683_v18 = vrot.slane %v618_v2, 7  ;;  %v734_v19 = vrot.slane %v618_v2, 5  ;;  %v619_v20 = vmax.f32 %v599_v5, 0.0  ;;  %v3034_v5 = vld [vmem:[%s4045_s6 + $0x90] sm:$0xff]  }
  0x32   : > { %2695 = vmatprep.subr.bf16.mxu1 %v3016_v24  ;;  %1255 = vmatprep.mubr.bf16.mxu0 %v3385_v51  ;;  %v932_v23 = vrot.slane %v3413_v13, 1  ;;  %v754_v24 = vsel %vm669_vm1, %v643_v14, %v682_v15  ;;  %v839_v26 = vshrl.u32 %v3413_v13, 16  ;;  %v841_v27 = vshll.u32 %v3413_v13, 16 }
  0x33   : > { %2887 = vmatprep.subr.bf16.mxu0 %v3019_v38  ;;  %v933_v30 = vrot.slane %v788_v17, 1  ;;  %v684_v31 = vsel %vm669_vm1, %v682_v15, %v683_v18  ;;  %v764_v32 = vsel %vm669_vm1, %v683_v18, %v734_v19  ;;  %v846_v33 = vshll.u32 %v788_v17, 16 }
  0x34   : > { %v775_v35 = vsel %vm770_vm2, %v764_v32, 0.0  ;;  %v3432_v36 = vpack.c.bf16 %v684_v31, %v754_v24  ;;  %v843_v37 = vrot.slane %v841_v27, 1  ;;  %v644_v44 = vrot.slane %v619_v20, 1  ;;  %v531_v27 = vld [vmem:[%s3258_s28 + $0x78] sm:$0xff] }
  0x35   : > { %2696 = vmatpush3.bf16.msra.mxu1 %v3017_v45  ;;  %2888 = vmatpush3.bf16.msra.mxu0 %v3019_v38  ;;  %v620_v38 = vmax.f32 %v600_v10, 0.0  ;;  %v3435_v40 = vsel %vm922_vm3, %v932_v23, %v933_v30  ;;  %v790_v41 = vpack.c.bf16 %v775_v35, %v775_v35  ;;  %v848_v42 = vrot.slane %v846_v33, 1  ;;  %v3025_v45 = vld [vmem:[%s4045_s6 + $0x18] sm:$0xff]   ;;  %v530_v10 = vld [vmem:[%s3258_s28 + $0x70] sm:$0xff] }
  0x36   : > { %2697 = vmatprep.subr.bf16.mxu1 %v3018_v48  ;;  %2889 = vmatprep.subr.bf16.mxu0 %v3024_v43  ;;  %v935_v46 = vrot.slane %v3432_v36, 1  ;;  %v844_v47 = vor.u32 %v843_v37, %v839_v26  ;;  %v685_v48 = vrot.slane %v619_v20, 7  ;;  %v575_v56 = vmul.f32 %v3274_v25, %v548_v6 }
  0x37   : > { %2873 = vmatprep.mubr.bf16.mxu1 %v3435_v40  ;;  %v686_v49 = vrot.slane %v620_v38, 7  ;;  %v936_v54 = vrot.slane %v790_v41, 1  ;;  %v735_v55 = vrot.slane %v620_v38, 5  ;;  %v601_v57 = vadd.f32 %v3283_v28, %v574_v11 }
  0x38   : > { %1256 = vmatmul.mubr.bf16.gmra.mxu0 %v3326_v4  ;;  %v3457_v58 = vsel %vm801_vm4, %v844_v47, %v848_v42  ;;  %v755_v60 = vsel %vm669_vm1, %v644_v44, %v685_v48  ;;  %v851_v61 = vshrl.u32 %v3432_v36, 16  ;;  %v602_v2 = vadd.f32 %v3283_v28, %v575_v56  ;;  %v3030_v42 = vld [vmem:[%s4045_s6 + $0x8] sm:$0xff]  }
  0x39   : > { %2698 = vmatpush3.bf16.msra.mxu1 %v3020_v3  ;;  %2890 = vmatpush3.bf16.msra.mxu0 %v3024_v43  ;;  %v687_v59 = vsel %vm669_vm1, %v685_v48, %v686_v49  ;;  %v3464_v0 = vsel %vm922_vm3, %v935_v46, %v936_v54  ;;  %v765_v43 = vsel %vm669_vm1, %v686_v49, %v735_v55  ;;  %v3027_v3 = vld [vmem:[%s4045_s6 + $0x10] sm:$0xff]   ;;  %v621_v7 = vmax.f32 %v601_v57, 0.0  ;;  %v3031_v48 = vld [vmem:[%s4045_s6 + $0x40] sm:$0xff]  }
  0x3a   : > { %2699 = vmatprep.subr.bf16.mxu1 %v3021_v9  ;;  %2891 = vmatprep.subr.bf16.mxu0 %v3029_v22  ;;  %v3468_v1 = vpack.c.bf16 %v687_v59, %v755_v60  ;;  %v776_v6 = vsel %vm770_vm2, %v765_v43, 0.0  ;;  %v853_v8 = vshll.u32 %v3432_v36, 16  ;;  %v858_v9 = vshll.u32 %v790_v41, 16  ;;  %v3036_v59 = vld [vmem:[%s4045_s6 + $0x80] sm:$0xff]  }
  0x3b   : > { %1263 = vmatprep.mubr.bf16.mxu0 %v3457_v58  ;;  %2874 = vmatmul.mubr.bf16.gmra.mxu1 %v3464_v0  ;;  %v3482_v11 = vpack.c.bf16 %v776_v6, %v776_v6  ;;  %v622_v14 = vmax.f32 %v602_v2, 0.0  ;;  %v549_v15 = vsel %vm534_vm0, %v528_v52, 0.0  ;;  %v645_v17 = vrot.slane %v621_v7, 1  ;;  %v3032_v43 = vld [vmem:[%s4045_s6] sm:$0xff]  }
  0x3c   : > { %v938_v12 = vrot.slane %v3468_v1, 1  ;;  %v688_v18 = vrot.slane %v621_v7, 7  ;;  %v855_v19 = vrot.slane %v853_v8, 1  ;;  %v860_v20 = vrot.slane %v858_v9, 1  ;;  %v514_v8 = vld [vmem:[%s469_s25] sm:$0xff]  ;;  %v3548_v9 = vld [vmem:[%s4045_s6 + $0x238] sm:$0xff]  }
  0x3d   : > { %2700 = vmatpush3.bf16.msra.mxu1 %v3022_v16  ;;  %2892 = vmatpush3.bf16.msra.mxu0 %v3029_v22  ;;  %v3028_v16 = vld [vmem:[%s4045_s6 + $0x48] sm:$0xff]   ;;  %v939_v22 = vrot.slane %v3482_v11, 1  ;;  %v689_v23 = vrot.slane %v622_v14, 7  ;;  %v736_v24 = vrot.slane %v622_v14, 5  ;;  %v550_v26 = vsel %vm534_vm0, %v529_v62, 0.0 }
  0x3e   : > { %2701 = vmatprep.subr.bf16.mxu1 %v3023_v29  ;;  %2893 = vmatprep.subr.bf16.mxu0 %v3033_v53  ;;  %v3035_v29 = vld [vmem:[%s4045_s6 + $0x88] sm:$0xff]   ;;  %v756_v30 = vsel %vm669_vm1, %v645_v17, %v688_v18  ;;  %v856_v31 = vor.u32 %v855_v19, %v851_v61  ;;  %v576_v32 = vmul.f32 %v3274_v25, %v549_v15  ;;  %v551_v41 = vsel %vm534_vm0, %v530_v10, 0.0 }
  0x3f   : > { %v577_v33 = vmul.f32 %v3274_v25, %v550_v26  ;;  %v3500_v35 = vsel %vm922_vm3, %v938_v12, %v939_v22  ;;  %v690_v37 = vsel %vm669_vm1, %v688_v18, %v689_v23  ;;  %v766_v38 = vsel %vm669_vm1, %v689_v23, %v736_v24 }
  0x40   : > { %1264 = vmatmul.mubr.bf16.gmra.mxu0 %v3413_v13  ;;  %2877 = vmatprep.mubr.bf16.mxu1 %v3500_v35  ;;  %v777_v44 = vsel %vm770_vm2, %v766_v38, 0.0  ;;  %v3513_v46 = vsel %vm801_vm4, %v856_v31, %v860_v20  ;;  %v603_v47 = vadd.f32 %v3283_v28, %v576_v32  ;;  %v552_v52 = vsel %vm534_vm0, %v531_v27, 0.0  ;;  %v3037_v20 = vld [vmem:[%s4045_s6 + $0x1f8] sm:$0xff]  }
  0x41   : > { %2702 = vmatpush3.bf16.msra.mxu1 %v3025_v45  ;;  %2894 = vmatpush3.bf16.msra.mxu0 %v3033_v53  ;;  %v3510_v45 = vpack.c.bf16 %v690_v37, %v756_v30  ;;  %v3519_v49 = vpack.c.bf16 %v777_v44, %v777_v44  ;;  %v578_v53 = vmul.f32 %v3274_v25, %v551_v41  ;;  %v863_v57 = vshrl.u32 %v3468_v1, 16 }
  0x42   : > { %2703 = vmatprep.subr.bf16.mxu1 %v3026_v50  ;;  %2895 = vmatprep.subr.bf16.mxu0 %v3034_v5  ;;  %v604_v50 = vadd.f32 %v3283_v28, %v577_v33  ;;  %v623_v55 = vmax.f32 %v603_v47, 0.0  ;;  %v579_v56 = vmul.f32 %v3274_v25, %v552_v52  ;;  %v865_v2 = vshll.u32 %v3468_v1, 16 }
  0x43   : > { %1271 = vmatprep.mubr.bf16.mxu0 %v3513_v46  ;;  %v941_v54 = vrot.slane %v3510_v45, 1  ;;  %v942_v60 = vrot.slane %v3519_v49, 1  ;;  %v605_v62 = vadd.f32 %v3283_v28, %v578_v53  ;;  %v870_v7 = vshll.u32 %v3482_v11, 16 }
  0x44   : > { %v624_v61 = vmax.f32 %v604_v50, 0.0  ;;  %v606_v6 = vadd.f32 %v3283_v28, %v579_v56  ;;  %v867_v11 = vrot.slane %v865_v2, 1  ;;  %v535_v38 = vsel %vm534_vm0, %v514_v8, 0.0 }
  0x45   : > { %2704 = vmatpush3.bf16.msra.mxu1 %v3027_v3  ;;  %2896 = vmatpush3.bf16.msra.mxu0 %v3034_v5  ;;  %v646_v3 = vrot.slane %v623_v55, 1  ;;  %v691_v5 = vrot.slane %v623_v55, 7  ;;  %v3551_v10 = vsel %vm922_vm3, %v941_v54, %v942_v60  ;;  %v625_v15 = vmax.f32 %v605_v62, 0.0 }
  0x46   : > { %2705 = vmatprep.subr.bf16.mxu1 %v3028_v16  ;;  %2897 = vmatprep.subr.bf16.mxu0 %v3035_v29  ;;  %v692_v12 = vrot.slane %v624_v61, 7  ;;  %v737_v14 = vrot.slane %v624_v61, 5  ;;  %v515_v16 = vld [vmem:[%s469_s25 + $0x8] sm:$0xff]  ;;  %v626_v18 = vmax.f32 %v606_v6, 0.0  ;;  %v872_v19 = vrot.slane %v870_v7, 1  ;;  %s484_s25 = sadd.s32 %s2423_s23, %s3225_s24 }
  0x47   : > { %2878 = vmatmul.mubr.bf16.gmra.mxu1 %v3551_v10  ;;  %v757_v17 = vsel %vm669_vm1, %v646_v3, %v691_v5  ;;  %v647_v24 = vrot.slane %v625_v15, 1  ;;  %v694_v26 = vrot.slane %v625_v15, 7  ;;  %v868_v37 = vor.u32 %v867_v11, %v863_v57  ;;  %s2425_s26 = sshll.u32 %s484_s25, 3  ;;  %s3919_s25 = scalar_lea.vmem %s4047_s8, %s3243_s22 }
  0x48   : > { %1272 = vmatmul.mubr.bf16.gmra.mxu0 %v3432_v36  ;;  %v693_v22 = vsel %vm669_vm1, %v691_v5, %v692_v12  ;;  %v767_v23 = vsel %vm669_vm1, %v692_v12, %v737_v14  ;;  %v695_v30 = vrot.slane %v626_v18, 7  ;;  %v738_v31 = vrot.slane %v626_v18, 5  ;;  %s486_s19 = scalar_lea.vmem %s4041_s2, %s2425_s26 }
  0x49   : > { %2706 = vmatpush3.bf16.msra.mxu1 %v3030_v42  ;;  %2898 = vmatpush3.bf16.msra.mxu0 %v3035_v29  ;;  %v778_v27 = vsel %vm770_vm2, %v767_v23, 0.0  ;;  %v3561_v29 = vpack.c.bf16 %v693_v22, %v757_v17  ;;  %v758_v33 = vsel %vm669_vm1, %v647_v24, %v694_v26  ;;  %v536_v47 = vsel %vm534_vm0, %v515_v16, 0.0 }
  0x4a   : > { %2707 = vmatprep.subr.bf16.mxu1 %v3031_v48  ;;  %2899 = vmatprep.subr.bf16.mxu0 %v3036_v59  ;;  %v796_v32 = vpack.c.bf16 %v778_v27, %v778_v27  ;;  %v696_v42 = vsel %vm669_vm1, %v694_v26, %v695_v30  ;;  %v768_v44 = vsel %vm669_vm1, %v695_v30, %v738_v31  ;;  %v875_v57 = vshrl.u32 %v3510_v45, 16 }
  0x4b   : > { %v944_v41 = vrot.slane %v3561_v29, 1  ;;  %v779_v50 = vsel %vm770_vm2, %v768_v44, 0.0  ;;  %v3571_v52 = vpack.c.bf16 %v696_v42, %v758_v33  ;;  %v3574_v53 = vsel %vm801_vm4, %v868_v37, %v872_v19 }
  0x4c   : > { %v945_v48 = vrot.slane %v796_v32, 1  ;;  %v798_v54 = vpack.c.bf16 %v779_v50, %v779_v50  ;;  %1279 = vmatprep.mubr.bf16.mxu0 %v3574_v53  ;;  %v562_v55 = vmul.f32 %v3274_v25, %v535_v38  ;;  %v563_v56 = vmul.f32 %v3274_v25, %v536_v47 }
  0x4d   : > { %2708 = vmatpush3.bf16.msra.mxu1 %v3032_v43  ;;  %2900 = vmatpush3.bf16.msra.mxu0 %v3036_v59  ;;  %v1018_v60 = vrot.slane %v3571_v52, 1  ;;  %v877_v61 = vshll.u32 %v3510_v45, 16  ;;  %v882_v62 = vshll.u32 %v3519_v49, 16  ;;  %v887_v3 = vshrl.u32 %v3561_v29, 16 }
  0x4e   : > { %2917 = vmatprep.subr.bf16.mxu1 %v3548_v9  ;;  %2773 = vmatprep.subr.bf16.mxu0 %v3037_v20  ;;  %v3581_v59 = vsel %vm922_vm3, %v944_v41, %v945_v48  ;;  %v1019_v43 = vrot.slane %v798_v54, 1  ;;  %v589_v2 = vadd.f32 %v3283_v28, %v562_v55  ;;  %v590_v25 = vadd.f32 %v3283_v28, %v563_v56 }
  0x4f   : > { %2881 = vmatprep.mubr.bf16.mxu1 %v3581_v59  ;;  %v879_v5 = vrot.slane %v877_v61, 1  ;;  %v884_v6 = vrot.slane %v882_v62, 1  ;;  %v889_v7 = vshll.u32 %v3561_v29, 16  ;;  %v894_v8 = vshll.u32 %v796_v32, 16  ;;  %v3042_v61 = vld [vmem:[%s4045_s6 + $0x230] sm:$0xff]  }
  0x50   : > { %1280 = vmatmul.mubr.bf16.gmra.mxu0 %v3468_v1  ;;  %v3593_v12 = vsel %vm922_vm3, %v1018_v60, %v1019_v43  ;;  %v609_v14 = vmax.f32 %v589_v2, 0.0  ;;  %v610_v15 = vmax.f32 %v590_v25, 0.0  ;;  %v1004_v49 = vshrl.u32 %v3571_v52, 16  ;;  %v3045_v2 = vld [vmem:[%s4045_s6 + $0x228] sm:$0xff]  }
  0x51   : > { %2882 = vmatmul.mubr.bf16.gmra.mxu1 %v3593_v12  ;;  %v880_v16 = vor.u32 %v879_v5, %v875_v57  ;;  %v891_v17 = vrot.slane %v889_v7, 1  ;;  %v896_v18 = vrot.slane %v894_v8, 1  ;;  %v1006_v28 = vshll.u32 %v3571_v52, 16  ;;  %v3040_v5 = vld [vmem:[%s4045_s6 + $0x1f0] sm:$0xff]   ;;  %v3057_v7 = vld [vmem:[%s4045_s6 + $0x208] sm:$0xff]  }
  0x52   : > { %v639_v11 = vrot.slane %v609_v14, 1  ;;  %v670_v19 = vrot.slane %v609_v14, 7  ;;  %v671_v20 = vrot.slane %v610_v15, 7  ;;  %v730_v22 = vrot.slane %v610_v15, 5  ;;  %v3044_v8 = vld [vmem:[%s4045_s6 + $0x1a8] sm:$0xff]   ;;  %v3046_v14 = vld [vmem:[%s4045_s6 + $0x1e0] sm:$0xff]  }
  0x53   : > { %v3599_v23 = vsel %vm801_vm4, %v880_v16, %v884_v6  ;;  %v892_v24 = vor.u32 %v891_v17, %v887_v3  ;;  %v1008_v26 = vrot.slane %v1006_v28, 1  ;;  %v1011_v27 = vshll.u32 %v798_v54, 16  ;;  %v3048_v3 = vld [vmem:[%s4045_s6 + $0x220] sm:$0xff]   ;;  %v3041_v6 = vld [vmem:[%s4045_s6 + $0x1b0] sm:$0xff]   ;;  %v3049_v16 = vld [vmem:[%s4045_s6 + $0x1d8] sm:$0xff]  }
  0x54   : > { %v672_v30 = vsel %vm669_vm1, %v670_v19, %v671_v20  ;;  %v750_v31 = vsel %vm669_vm1, %v639_v11, %v670_v19  ;;  %v760_v32 = vsel %vm669_vm1, %v671_v20, %v730_v22  ;;  %1287 = vmatprep.mubr.bf16.mxu0 %v3599_v23  ;;  %v3060_v15 = vld [vmem:[%s4045_s6 + $0x200] sm:$0xff]   ;;  %v3050_v17 = vld [vmem:[%s4045_s6 + $0x198] sm:$0xff]   ;;  %v3053_v28 = vld [vmem:[%s4045_s6 + $0x190] sm:$0xff]  }
  0x55   : > { %v771_v33 = vsel %vm770_vm2, %v760_v32, 0.0  ;;  %v781_v37 = vpack.c.bf16 %v672_v30, %v750_v31  ;;  %v3608_v38 = vsel %vm801_vm4, %v892_v24, %v896_v18  ;;  %v1009_v47 = vor.u32 %v1008_v26, %v1004_v49  ;;  %v3047_v49 = vld [vmem:[%s4045_s6 + $0x1a0] sm:$0xff]   ;;  %v3052_v18 = vld [vmem:[%s4045_s6 + $0x1d0] sm:$0xff]   ;;  %v3055_v11 = vld [vmem:[%s4045_s6 + $0x1c8] sm:$0xff]  }
  0x56   : > { %v782_v41 = vpack.c.bf16 %v771_v33, %v771_v33  ;;  %v1013_v48 = vrot.slane %v1011_v27, 1  ;;  %v3056_v19 = vld [vmem:[%s4045_s6 + $0x188] sm:$0xff]   ;;  %v3058_v20 = vld [vmem:[%s4045_s6 + $0x1c0] sm:$0xff]  }
  0x57   : > { %v803_v42 = vshrl.u32 %v781_v37, 16  ;;  %v805_v44 = vshll.u32 %v781_v37, 16  ;;  %v923_v62 = vrot.slane %v781_v37, 1  ;;  %v3059_v22 = vld [vmem:[%s4045_s6 + $0x180] sm:$0xff]  }
  0x58   : > { %1288 = vmatmul.mubr.bf16.gmra.mxu0 %v3510_v45  ;;  %v810_v50 = vshll.u32 %v782_v41, 16  ;;  %v3612_v57 = vsel %vm801_vm4, %v1009_v47, %v1013_v48  ;;  %v924_v43 = vrot.slane %v782_v41, 1  ;;  %v532_v24 = vld [vmem:[%s486_s19] sm:$0xff] }
  0x59   : > { %1295 = vmatprep.mubr.bf16.mxu0 %v3608_v38  ;;  %v807_v54 = vrot.slane %v805_v44, 1  ;;  %v553_v27 = vsel %vm534_vm0, %v532_v24, 0.0  ;;  %v3062_v31 = vld [vmem:[%s4044_s5] ss:$0 sm:$0xff] }
  0x5a   : > { %v812_v55 = vrot.slane %v810_v50, 1  ;;  %v925_v25 = vsel %vm922_vm3, %v923_v62, %v924_v43 }
  0x5b   : > { %v808_v56 = vor.u32 %v807_v54, %v803_v42 }
  0x5d   : > { %v813_v60 = vsel %vm801_vm4, %v808_v56, %v812_v55 }
  0x5e   : > { %1585 = vmatprep.mubr.bf16.mxu1 %v813_v60 }
  0x5f   : > { %1586 = vmatmul.mubr.bf16.vlgmr.msra.gmra.mxu1 %v781_v37 }
  0x60   : > { %1296 = vmatmul.mubr.bf16.gmra.mxu0 %v3561_v29  ;;  %1593 = vmatprep.mubr.bf16.mxu1 %v3367_v39  ;;  %v3051_v39 = vld [vmem:[%s4045_s6 + $0x218] sm:$0xff]  }
  0x61   : > { %1303 = vmatprep.mubr.bf16.mxu0 %v3612_v57  ;;  %2918 = vmatpush3.bf16.msra.mxu1 %v3548_v9  ;;  %v3038_v9 = vld [vmem:[%s4045_s6 + $0x1b8] sm:$0xff]  }
  0x62   : > { %2919 = vmatprep.subr.bf16.mxu1 %v3042_v61 }
  0x65   : > { %2920 = vmatpush3.bf16.msra.mxu1 %v3042_v61 }
  0x66   : > { %2921 = vmatprep.subr.bf16.mxu1 %v3045_v2 }
  0x67   : > { %1594 = vmatmul.mubr.bf16.gmra.mxu1 %v3321_v63  ;;  %v3054_v63 = vld [vmem:[%s4045_s6 + $0x210] sm:$0xff]  }
  0x68   : > { %1304 = vmatmul.mubr.bf16.gmra.mxu0 %v3571_v52  ;;  %1601 = vmatprep.mubr.bf16.mxu1 %v3385_v51 }
  0x69   : > { %2901 = vmatprep.mubr.bf16.mxu0 %v925_v25  ;;  %2922 = vmatpush3.bf16.msra.mxu1 %v3045_v2 }
  0x6a   : > { %2923 = vmatprep.subr.bf16.mxu1 %v3048_v3 }
  0x6d   : > { %2924 = vmatpush3.bf16.msra.mxu1 %v3048_v3 }
  0x6e   : > { %2925 = vmatprep.subr.bf16.mxu1 %v3051_v39 }
  0x6f   : > { %1602 = vmatmul.mubr.bf16.gmra.mxu1 %v3326_v4 }
  0x70   : > { %2902 = vmatmul.mubr.bf16.vlgmr.msra.gmra.mxu0 %v3345_v21  ;;  %v3043_v21 = vld [vmem:[%s4045_s6 + $0x1e8] sm:$0xff]   ;;  %1609 = vmatprep.mubr.bf16.mxu1 %v3457_v58 }
  0x71   : > { %2774 = vmatpush3.bf16.msra.mxu0 %v3038_v9  ;;  %2905 = vmatprep.mubr.bf16.mxu0 %v3359_v34 }
  0x72   : > { %2775 = vmatprep.subr.bf16.mxu0 %v3040_v5  ;;  %2926 = vmatpush3.bf16.msra.mxu1 %v3051_v39 }
  0x73   : > { %2927 = vmatprep.subr.bf16.mxu1 %v3054_v63 }
  0x75   : > { %2776 = vmatpush3.bf16.msra.mxu0 %v3041_v6 }
  0x76   : > { %2777 = vmatprep.subr.bf16.mxu0 %v3043_v21  ;;  %2928 = vmatpush3.bf16.msra.mxu1 %v3054_v63 }
  0x77   : > { %2929 = vmatprep.subr.bf16.mxu1 %v3057_v7  ;;  %1610 = vmatmul.mubr.bf16.gmra.mxu1 %v3413_v13 }
  0x78   : > { %2906 = vmatmul.mubr.bf16.gmra.mxu0 %v3435_v40  ;;  %1617 = vmatprep.mubr.bf16.mxu1 %v3513_v46 }
  0x79   : > { %2778 = vmatpush3.bf16.msra.mxu0 %v3044_v8  ;;  %2909 = vmatprep.mubr.bf16.mxu0 %v3464_v0 }
  0x7a   : > { %2779 = vmatprep.subr.bf16.mxu0 %v3046_v14  ;;  %2930 = vmatpush3.bf16.msra.mxu1 %v3057_v7 }
  0x7b   : > { %2931 = vmatprep.subr.bf16.mxu1 %v3060_v15 }
  0x7d   : > { %2780 = vmatpush3.bf16.msra.mxu0 %v3047_v49 }
  0x7e   : > { %2781 = vmatprep.subr.bf16.mxu0 %v3049_v16  ;;  %2932 = vmatpush3.bf16.msra.mxu1 %v3060_v15 }
  0x7f   : > { %1618 = vmatmul.mubr.bf16.gmra.mxu1 %v3432_v36 }
  0x80   : > { %2910 = vmatmul.mubr.bf16.gmra.mxu0 %v3500_v35  ;;  %1625 = vmatprep.mubr.bf16.mxu1 %v3574_v53 }
  0x81   : > { %2782 = vmatpush3.bf16.msra.mxu0 %v3050_v17  ;;  %2913 = vmatprep.mubr.bf16.mxu0 %v3551_v10 }
  0x82   : > { %2783 = vmatprep.subr.bf16.mxu0 %v3052_v18 }
  0x85   : > { %2784 = vmatpush3.bf16.msra.mxu0 %v3053_v28 }
  0x86   : > { %2785 = vmatprep.subr.bf16.mxu0 %v3055_v11 }
  0x87   : > { %1626 = vmatmul.mubr.bf16.gmra.mxu1 %v3468_v1 }
  0x88   : > { %2914 = vmatmul.mubr.bf16.gmra.mxu0 %v3581_v59  ;;  %1633 = vmatprep.mubr.bf16.mxu1 %v3599_v23 }
  0x89   : > { %2786 = vmatpush3.bf16.msra.mxu0 %v3056_v19  ;;  %1991 = vmatprep.mubr.bf16.mxu0 %v3385_v51  ;;  %v533_v51 = vld [vmem:[%s486_s19 + $0x8] sm:$0xff] }
  0x8a   : > { %2787 = vmatprep.subr.bf16.mxu0 %v3058_v20  ;;  %v554_v26 = vsel %vm534_vm0, %v533_v51, 0.0 }
  0x8d   : > { %2788 = vmatpush3.bf16.msra.mxu0 %v3059_v22 }
  0x8f   : > { %1634 = vmatmul.mubr.bf16.gmra.mxu1 %v3510_v45 }
  0x90   : > { %1992 = vmatmul.mubr.bf16.vlgmr.msra.gmra.mxu0 %v3326_v4  ;;  %1641 = vmatprep.mubr.bf16.mxu1 %v3608_v38  ;;  %v3061_v4 = vld [vmem:[%s4043_s4] ss:$0 sm:$0xff] }
  0x91   : > { %1999 = vmatprep.mubr.bf16.mxu0 %v3457_v58  ;;  %v581_v30 = vmul.f32 %v3061_v4, %v554_v26  ;;  %v580_v58 = vmul.f32 %v3061_v4, %v553_v27 }
  0x93   : > { %v608_v32 = vadd.f32 %v3062_v31, %v581_v30 }
  0x97   : > { %1642 = vmatmul.mubr.bf16.gmra.mxu1 %v3561_v29 }
  0x98   : > { %2000 = vmatmul.mubr.bf16.gmra.mxu0 %v3413_v13  ;;  %2933 = vmatprep.mubr.bf16.mxu1 %v3359_v34  ;;  %v607_v13 = vadd.f32 %v3062_v31, %v580_v58 }
  0x99   : > { %2007 = vmatprep.mubr.bf16.mxu0 %v3513_v46  ;;  %v628_v46 = vmax.f32 %v608_v32, 0.0 }
  0x9a   : > { %v627_v33 = vmax.f32 %v607_v13, 0.0 }
  0x9b   : > { %v698_v37 = vrot.slane %v628_v46, 7  ;;  %v739_v41 = vrot.slane %v628_v46, 5 }
  0x9c   : > { %v648_v34 = vrot.slane %v627_v33, 1  ;;  %v697_v42 = vrot.slane %v627_v33, 7 }
  0x9d   : > { %v769_v44 = vsel %vm669_vm1, %v698_v37, %v739_v41 }
  0x9f   : > { %2934 = vmatmul.mubr.bf16.vlgmr.msra.gmra.mxu1 %v3435_v40  ;;  %v759_v40 = vsel %vm669_vm1, %v648_v34, %v697_v42 }
  0xa0   : > { %2008 = vmatmul.mubr.bf16.gmra.mxu0 %v3432_v36  ;;  %2937 = vmatprep.mubr.bf16.mxu1 %v3464_v0  ;;  %v699_v36 = vsel %vm669_vm1, %v697_v42, %v698_v37  ;;  %v780_v0 = vsel %vm770_vm2, %v769_v44, 0.0 }
  0xa1   : > { %2015 = vmatprep.mubr.bf16.mxu0 %v3574_v53  ;;  %v799_v53 = vpack.c.bf16 %v699_v36, %v759_v40  ;;  %v800_v47 = vpack.c.bf16 %v780_v0, %v780_v0 }
  0xa3   : > { %v1755_v50 = vshll.u32 %v800_v47, 16 }
  0xa5   : > { %v1757_v55 = vrot.slane %v1755_v50, 1 }
  0xa7   : > { %2938 = vmatmul.mubr.bf16.gmra.mxu1 %v3500_v35  ;;  %v1762_v35 = vrot.slane %v799_v53, 1 }
  0xa8   : > { %2016 = vmatmul.mubr.bf16.gmra.mxu0 %v3468_v1  ;;  %2941 = vmatprep.mubr.bf16.mxu1 %v3551_v10  ;;  %v1750_v1 = vshll.u32 %v799_v53, 16  ;;  %v1748_v10 = vshrl.u32 %v799_v53, 16 }
  0xa9   : > { %2023 = vmatprep.mubr.bf16.mxu0 %v3599_v23  ;;  %v1763_v23 = vrot.slane %v800_v47, 1 }
  0xaa   : > { %v1752_v48 = vrot.slane %v1750_v1, 1 }
  0xab   : > { %v1764_v54 = vsel %vm922_vm3, %v1762_v35, %v1763_v23 }
  0xaf   : > { %2942 = vmatmul.mubr.bf16.gmra.mxu1 %v3581_v59 }
  0xb0   : > { %2024 = vmatmul.mubr.bf16.gmra.mxu0 %v3510_v45  ;;  %2945 = vmatprep.mubr.bf16.mxu1 %v3593_v12  ;;  %v1753_v45 = vor.u32 %v1752_v48, %v1748_v10 }
  0xb1   : > { %2031 = vmatprep.mubr.bf16.mxu0 %v3608_v38 }
  0xb2   : > { %v1758_v38 = vsel %vm801_vm4, %v1753_v45, %v1757_v55 }
  0xb7   : > { %2946 = vmatmul.mubr.bf16.gmra.mxu1 %v1764_v54 }
  0xb8   : > { %2032 = vmatmul.mubr.bf16.gmra.mxu0 %v3561_v29 }
  0xb9   : > { %2039 = vmatprep.mubr.bf16.mxu0 %v3612_v57 }
  0xc0   : > { %2040 = vmatmul.mubr.bf16.gmra.mxu0 %v3571_v52 }
  0xc1   : > { %2047 = vmatprep.mubr.bf16.mxu0 %v1758_v38 }
  0xc8   : > { %2048 = vmatmul.mubr.bf16.gmra.mxu0 %v799_v53 }
  0xf0   : > { %v2871_v59 = vpop.f32.mrf.mxu1  ;;  %v2629_v12 = vpop.f32.mrf.mxu0 }
  0xf2   : > { %v1346_v56 = vpop.f32.mrf.mxu1  ;;  %v2630_v60 = vpop.f32.mrf.mxu0 }
  0xf3   : > { %v2631_v61 = vadd.f32 %v2630_v60, %v2629_v12 }
  0xf4   : > { %v2632_v62 = vpop.f32.mrf.mxu0  ;;  %v2872_v43 = vpop.f32.mrf.mxu1 }
  0xf5   : > { %v3748_v2 = vadd.f32 %v2631_v61, %v1346_v56 }
  0xf6   : > { %v2633_v29 = vpop.f32.mrf.mxu0  ;;  %v1349_v25 = vpop.f32.mrf.mxu1 }
  0xf7   : > { %v2634_v57 = vadd.f32 %v2633_v29, %v2632_v62 }
  0xf8   : > { %v2635_v3 = vpop.f32.mrf.mxu0 }
  0xf9   : > { %v3750_v39 = vadd.f32 %v2634_v57, %v1349_v25 }
  0xfa   : > { %v2636_v9 = vpop.f32.mrf.mxu0 }
  0xfb   : > { %v2637_v5 = vadd.f32 %v2636_v9, %v2635_v3  ;;  %v2875_v21 = vpop.f32.mrf.mxu1 }
  0xfc   : > { %v2638_v52 = vpop.f32.mrf.mxu0 }
  0xfd   : > { %v3752_v63 = vadd.f32 %v2871_v59, %v2637_v5  ;;  %v1362_v14 = vpop.f32.mrf.mxu1 }
  0xfe   : > { %v2639_v6 = vpop.f32.mrf.mxu0 }
  0xff   : > { %v2640_v7 = vadd.f32 %v2639_v6, %v2638_v52  ;;  %v2876_v16 = vpop.f32.mrf.mxu1 }
 0x100   : > { %v2641_v8 = vpop.f32.mrf.mxu0 }
 0x101   : > { %v3754_v15 = vadd.f32 %v2872_v43, %v2640_v7  ;;  %v1365_v19 = vpop.f32.mrf.mxu1 }
 0x102   : > { %v2642_v49 = vpop.f32.mrf.mxu0 }
 0x103   : > { %v2643_v17 = vadd.f32 %v2642_v49, %v2641_v8 }
 0x104   : > { %v2644_v18 = vpop.f32.mrf.mxu0 }
 0x105   : > { %v3756_v28 = vadd.f32 %v2643_v17, %v1362_v14 }
 0x106   : > { %v2645_v11 = vpop.f32.mrf.mxu0 }
 0x107   : > { %v2646_v20 = vadd.f32 %v2645_v11, %v2644_v18  ;;  %v2879_v26 = vpop.f32.mrf.mxu1 }
 0x108   : > { %v2647_v22 = vpop.f32.mrf.mxu0 }
 0x109   : > { %v3758_v51 = vadd.f32 %v2646_v20, %v1365_v19  ;;  %v1378_v30 = vpop.f32.mrf.mxu1 }
 0x10a   : > { %v2648_v24 = vpop.f32.mrf.mxu0 }
 0x10b   : > { %v2649_v27 = vadd.f32 %v2648_v24, %v2647_v22  ;;  %v2880_v32 = vpop.f32.mrf.mxu1 }
 0x10c   : > { %v2650_v4 = vpop.f32.mrf.mxu0 }
 0x10d   : > { %v3760_v58 = vadd.f32 %v2875_v21, %v2649_v27  ;;  %v1381_v33 = vpop.f32.mrf.mxu1 }
 0x10e   : > { %v2651_v31 = vpop.f32.mrf.mxu0 }
 0x10f   : > { %v2652_v13 = vadd.f32 %v2651_v31, %v2650_v4 }
 0x110   : > { %v2653_v37 = vpop.f32.mrf.mxu0 }
 0x111   : > { %v3762_v46 = vadd.f32 %v2876_v16, %v2652_v13  ;;  %v2883_v42 = vpop.f32.mrf.mxu1 }
 0x112   : > { %v2654_v41 = vpop.f32.mrf.mxu0 }
 0x113   : > { %v2655_v34 = vadd.f32 %v2654_v41, %v2653_v37  ;;  %v1394_v40 = vpop.f32.mrf.mxu1 }
 0x114   : > { %v2656_v44 = vpop.f32.mrf.mxu0 }
 0x115   : > { %v3764_v36 = vadd.f32 %v2655_v34, %v1378_v30  ;;  %v2884_v35 = vpop.f32.mrf.mxu1 }
 0x116   : > { %v2657_v0 = vpop.f32.mrf.mxu0 }
 0x117   : > { %v2658_v53 = vadd.f32 %v2657_v0, %v2656_v44  ;;  %v1397_v54 = vpop.f32.mrf.mxu1 }
 0x118   : > { %v2659_v47 = vpop.f32.mrf.mxu0 }
 0x119   : > { %v3766_v1 = vadd.f32 %v2658_v53, %v1381_v33 }
 0x11a   : > { %v2660_v23 = vpop.f32.mrf.mxu0 }
 0x11b   : > { %4048 = vst [vmem:[#allocation2_spill] sm:$0xff] %v3766_v1  ;;  %v2661_v10 = vadd.f32 %v2660_v23, %v2659_v47 }
 0x11c   : > { %v2662_v48 = vpop.f32.mrf.mxu0 }
 0x11d   : > { %v3768_v50 = vadd.f32 %v2879_v26, %v2661_v10 }
 0x11e   : > { %v2663_v45 = vpop.f32.mrf.mxu0 }
 0x11f   : > { %4049 = vst [vmem:[#allocation3_spill] sm:$0xff] %v3768_v50  ;;  %v2664_v55 = vadd.f32 %v2663_v45, %v2662_v48  ;;  %v3772_v12 = vpop.f32.mrf.mxu1 }
 0x120   : > { %v2665_v38 = vpop.f32.mrf.mxu0 }
 0x121   : > { %v3770_v59 = vadd.f32 %v2880_v32, %v2664_v55  ;;  %v3774_v61 = vpop.f32.mrf.mxu1 }
 0x122   : > { %v2666_v56 = vpop.f32.mrf.mxu0  ;;  %v2711_v50 = vadd.f32 %v3774_v61, %v3772_v12 }
 0x123   : > { %4050 = vst [vmem:[#allocation4_spill] sm:$0xff] %v3770_v59  ;;  %v2667_v60 = vadd.f32 %v2666_v56, %v2665_v38  ;;  %v3778_v29 = vpop.f32.mrf.mxu1 }
 0x124   : > { %v2668_v62 = vpop.f32.mrf.mxu0 }
 0x125   : > { %v3776_v43 = vadd.f32 %v2667_v60, %v1394_v40  ;;  %v3780_v3 = vpop.f32.mrf.mxu1 }
 0x126   : > { %v2669_v57 = vpop.f32.mrf.mxu0 }
 0x127   : > { %4051 = vst [vmem:[#allocation5_spill] sm:$0xff] %v3776_v43  ;;  %v2670_v25 = vadd.f32 %v2669_v57, %v2668_v62  ;;  %v2715_v52 = vpop.f32.mrf.mxu1 }
 0x128   : > { %v2671_v9 = vpop.f32.mrf.mxu0 }
 0x129   : > { %v3782_v5 = vadd.f32 %v2670_v25, %v1397_v54  ;;  %v2716_v7 = vpop.f32.mrf.mxu1 }
 0x12a   : > { %v2672_v6 = vpop.f32.mrf.mxu0 }
 0x12b   : > { %4052 = vst [vmem:[#allocation6_spill] sm:$0xff] %v3782_v5  ;;  %v2673_v21 = vadd.f32 %v2672_v6, %v2671_v9  ;;  %v2718_v49 = vpop.f32.mrf.mxu1 }
 0x12c   : > { %v2674_v8 = vpop.f32.mrf.mxu0 }
 0x12d   : > { %v1403_v14 = vadd.f32 %v2883_v42, %v2673_v21  ;;  %v2719_v18 = vpop.f32.mrf.mxu1 }
 0x12e   : > { %v2675_v16 = vpop.f32.mrf.mxu0 }
 0x12f   : > { %v2676_v17 = vadd.f32 %v2675_v16, %v2674_v8  ;;  %v3788_v20 = vpop.f32.mrf.mxu1 }
 0x130   : > { %v3784_v11 = vpop.f32.mrf.mxu0 }
 0x131   : > { %v3786_v19 = vadd.f32 %v2884_v35, %v2676_v17  ;;  %v3792_v24 = vpop.f32.mrf.mxu1 }
 0x132   : > { %v3790_v22 = vpop.f32.mrf.mxu0 }
 0x133   : > { %v3796_v27 = vpop.f32.mrf.mxu1 }
 0x134   : > { %v3794_v26 = vpop.f32.mrf.mxu0 }
 0x135   : > { %v3800_v30 = vpop.f32.mrf.mxu1 }
 0x136   : > { %v3798_v4 = vpop.f32.mrf.mxu0 }
 0x137   : > { %v3804_v32 = vpop.f32.mrf.mxu1 }
 0x138   : > { %v3802_v31 = vpop.f32.mrf.mxu0 }
 0x139   : > { %v3808_v33 = vpop.f32.mrf.mxu1 }
 0x13a   : > { %v3806_v13 = vpop.f32.mrf.mxu0 }
 0x13b   : > { %v3812_v41 = vpop.f32.mrf.mxu1 }
 0x13c   : > { %v3810_v37 = vpop.f32.mrf.mxu0 }
 0x13d   : > { %v3816_v42 = vpop.f32.mrf.mxu1 }
 0x13e   : > { %v3814_v34 = vpop.f32.mrf.mxu0 }
 0x13f   : > { %v3820_v40 = vpop.f32.mrf.mxu1 }
 0x140   : > { %v3818_v44 = vpop.f32.mrf.mxu0 }
 0x141   : > { %4053 = vst [vmem:[#allocation7_spill] sm:$0xff] %v3818_v44  ;;  %v3824_v53 = vpop.f32.mrf.mxu1 }
 0x142   : > { %v3822_v0 = vpop.f32.mrf.mxu0 }
 0x143   : > { %4054 = vst [vmem:[#allocation8_spill] sm:$0xff] %v3822_v0  ;;  %v3828_v35 = vpop.f32.mrf.mxu1 }
 0x144   : > { %v3826_v47 = vpop.f32.mrf.mxu0 }
 0x145   : > { %4055 = vst [vmem:[#allocation9_spill] sm:$0xff] %v3826_v47  ;;  %v3832_v10 = vpop.f32.mrf.mxu1 }
 0x146   : > { %v3830_v23 = vpop.f32.mrf.mxu0 }
 0x147   : > { %4056 = vst [vmem:[#allocation10_spill] sm:$0xff] %v3830_v23  ;;  %v3834_v54 = vpop.f32.mrf.mxu1  ;;  %v2720_v23 = vadd.f32 %v2719_v18, %v2718_v49 }
 0x148   : > { %v2915_v48 = vpop.f32.mrf.mxu0  ;;  %4057 = vst [vmem:[#allocation11_spill] sm:$0xff] %v3834_v54 }
 0x149   : > { %v3838_v55 = vpop.f32.mrf.mxu1 }
 0x14a   : > { %v3836_v45 = vpop.f32.mrf.mxu0  ;;  %4059 = vst [vmem:[#allocation13_spill] sm:$0xff] %v3838_v55 }
 0x14b   : > { %4058 = vst [vmem:[#allocation12_spill] sm:$0xff] %v3836_v45  ;;  %v3840_v56 = vpop.f32.mrf.mxu1 }
 0x14c   : > { %v2916_v38 = vpop.f32.mrf.mxu0  ;;  %4060 = vst [vmem:[#allocation14_spill] sm:$0xff] %v3840_v56 }
 0x14d   : > { %v3844_v62 = vpop.f32.mrf.mxu1 }
 0x14e   : > { %v3842_v60 = vpop.f32.mrf.mxu0  ;;  %4062 = vst [vmem:[#allocation16_spill] sm:$0xff] %v3844_v62 }
 0x14f   : > { %4061 = vst [vmem:[#allocation15_spill] sm:$0xff] %v3842_v60  ;;  %v3846_v25 = vpop.f32.mrf.mxu1  ;;  %v2717_v60 = vadd.f32 %v2716_v7, %v2715_v52  ;;  %v2714_v52 = vadd.f32 %v3780_v3, %v3778_v29  ;;  %v1588_v7 = vadd.f32 %v2711_v50, %v3748_v2  ;;  %v1599_v29 = vadd.f32 %v2720_v23, %v3754_v15  ;;  %v3882_v15 = vld [vmem:[%s4046_s7] ss:$0 sm:$0xff] }
 0x150   : > { %v2789_v57 = vpop.f32.mrf.mxu0  ;;  %4063 = vst [vmem:[#allocation17_spill] sm:$0xff] %v3846_v25 }
 0x151   : > { %v3848_v6 = vpop.f32.mrf.mxu1 }
 0x152   : > { %v2790_v9 = vpop.f32.mrf.mxu0  ;;  %4064 = vst [vmem:[#allocation18_spill] sm:$0xff] %v3848_v6 }
 0x153   : > { %v3850_v8 = vpop.f32.mrf.mxu1  ;;  %v2791_v0 = vadd.f32 %v2790_v9, %v2789_v57  ;;  %v2198_v57 = vld [vmem:[%s3868_s13 + $0x30] sm:$0xff]  ;;  %v3900_v9 = vld [vmem:[%s3868_s13 + $0x40] sm:$0xff] }
 0x154   : > { %v2792_v21 = vpop.f32.mrf.mxu0  ;;  %4065 = vst [vmem:[#allocation19_spill] sm:$0xff] %v3850_v8 }
 0x155   : > { %v3852_v17 = vpop.f32.mrf.mxu1 }
 0x156   : > { %v2793_v16 = vpop.f32.mrf.mxu0  ;;  %4066 = vst [vmem:[#allocation20_spill] sm:$0xff] %v3852_v17  ;;  %v1596_v17 = vadd.f32 %v2717_v60, %v3752_v63  ;;  %v1685_v63 = vadd.f32 %v3790_v22, %v1588_v7  ;;  %v1591_v22 = vadd.f32 %v2714_v52, %v3750_v39  ;;  %v2196_v60 = vld [vmem:[%s3868_s13 + $0x20] sm:$0xff]  ;;  %v2726_v7 = vadd.f32 %v3800_v30, %v3796_v27 }
 0x157   : > { %v2751_v45 = vpop.f32.mrf.mxu1  ;;  %v3913_v52 = vld [vmem:[%s3868_s13 + $0x60] sm:$0xff] }
 0x158   : > { %v2795_v5 = vpop.f32.mrf.mxu0  ;;  %v1688_v23 = vadd.f32 %v3798_v4, %v1591_v22 }
 0x159   : > { %v2752_v47 = vpop.f32.mrf.mxu1 }
 0x15a   : > { %v2796_v43 = vpop.f32.mrf.mxu0  ;;  %v2753_v44 = vadd.f32 %v2752_v47, %v2751_v45  ;;  %v1696_v47 = vadd.f32 %v3794_v26, %v1599_v29  ;;  %v2193_v45 = vld [vmem:[%s3868_s13 + $0x8] sm:$0xff]  ;;  %v3934_v29 = vld [vmem:[%s3868_s13 + $0x78] sm:$0xff] }
 0x15b   : > { %v2754_v25 = vpop.f32.mrf.mxu1  ;;  %v2797_v6 = vadd.f32 %v2796_v43, %v2795_v5 }
 0x15c   : > { %v2798_v59 = vpop.f32.mrf.mxu0  ;;  %v1644_v56 = vadd.f32 %v2753_v44, %v1403_v14  ;;  %v1693_v14 = vadd.f32 %v3784_v11, %v1596_v17  ;;  %v2794_v11 = vadd.f32 %v2793_v16, %v2792_v21  ;;  %v3910_v17 = vld [vmem:[%s3868_s13 + $0x58] sm:$0xff] }
 0x15d   : > { %v2755_v8 = vpop.f32.mrf.mxu1 }
 0x15e   : > { %v2799_v62 = vpop.f32.mrf.mxu0  ;;  %v3857_v54 = vadd.f32 %v2915_v48, %v1644_v56  ;;  %v2756_v1 = vadd.f32 %v2755_v8, %v2754_v25  ;;  %v3897_v25 = vld [vmem:[%s3868_s13 + $0x38] sm:$0xff] }
 0x15f   : > { %v2935_v12 = vpop.f32.mrf.mxu1  ;;  %v2800_v49 = vadd.f32 %v2799_v62, %v2798_v59  ;;  %v2723_v59 = vadd.f32 %v3792_v24, %v3788_v20  ;;  %v2192_v24 = vld [vmem:[%s3868_s13] sm:$0xff]  ;;  %v3893_v62 = vld [vmem:[%s3868_s13 + $0x28] sm:$0xff] }
 0x160   : > { %v2801_v55 = vpop.f32.mrf.mxu0  ;;  %v1647_v43 = vadd.f32 %v2756_v1, %v3786_v19  ;;  %v2099_v5 = vadd.f32 %v2935_v12, %v2797_v6  ;;  %v2729_v19 = vadd.f32 %v3808_v33, %v3804_v32  ;;  %v2194_v33 = vld [vmem:[%s3868_s13 + $0x10] sm:$0xff]  ;;  %v3903_v6 = vld [vmem:[%s3868_s13 + $0x48] sm:$0xff]  ;;  %v2732_v12 = vadd.f32 %v3816_v42, %v3812_v41 }
 0x161   : > { %v2090_v3 = vpop.f32.mrf.mxu1 }
 0x162   : > { %v2802_v61 = vpop.f32.mrf.mxu0  ;;  %v3872_v50 = vadd.f32 %v2916_v38, %v1647_v43  ;;  %v2091_v18 = vadd.f32 %v2791_v0, %v2090_v3  ;;  %v2155_v1 = vadd.f32 %v2099_v5, %v1693_v14  ;;  %v2195_v38 = vld [vmem:[%s3868_s13 + $0x18] sm:$0xff]  ;;  %v1604_v14 = vadd.f32 %v2723_v59, %v3756_v28 }
 0x163   : > { %v2936_v44 = vpop.f32.mrf.mxu1  ;;  %v2803_v56 = vadd.f32 %v2802_v61, %v2801_v55  ;;  %v3907_v55 = vld [vmem:[%s3868_s13 + $0x50] sm:$0xff]  ;;  %v1612_v61 = vadd.f32 %v2729_v19, %v3760_v58 }
 0x164   : > { %v2804_v2 = vpop.f32.mrf.mxu0  ;;  %v2153_v20 = vadd.f32 %v2091_v18, %v1685_v63  ;;  %v2178_v32 = vadd.f32 %v3882_v15, %v2155_v1  ;;  %v2102_v39 = vadd.f32 %v2936_v44, %v2800_v49  ;;  %v3928_v49 = vld [vmem:[%s3868_s13 + $0x68] sm:$0xff]  ;;  %v3931_v63 = vld [vmem:[%s3868_s13 + $0x70] sm:$0xff]  ;;  %v1701_v28 = vadd.f32 %v3806_v13, %v1604_v14 }
 0x165   : > { %v2093_v48 = vpop.f32.mrf.mxu1  ;;  %v1709_v58 = vadd.f32 %v3802_v31, %v1612_v61  ;;  %v1615_v44 = vadd.f32 %v2732_v12, %v3762_v46 }
 0x166   : > { %v2805_v0 = vpop.f32.mrf.mxu0  ;;  %v2176_v4 = vadd.f32 %v3882_v15, %v2153_v20  ;;  %v2094_v21 = vadd.f32 %v2794_v11, %v2093_v48  ;;  %v2210_v8 = vadd.f32 %v2194_v33, %v2178_v32  ;;  %v2156_v16 = vadd.f32 %v2102_v39, %v1696_v47 }
 0x167   : > { %v2939_v43 = vpop.f32.mrf.mxu1  ;;  %v2806_v42 = vadd.f32 %v2805_v0, %v2804_v2  ;;  %v1607_v47 = vadd.f32 %v2726_v7, %v3758_v51  ;;  %v2735_v2 = vadd.f32 %v3824_v53, %v3820_v40  ;;  %v1712_v0 = vadd.f32 %v3810_v37, %v1615_v44 }
 0x168   : > { %v2807_v26 = vpop.f32.mrf.mxu0  ;;  %v2208_v3 = vadd.f32 %v2192_v24, %v2176_v4  ;;  %v2154_v18 = vadd.f32 %v2094_v21, %v1688_v23  ;;  %v2179_v27 = vadd.f32 %v3882_v15, %v2156_v16  ;;  %2226 = vst.msk [vmem:[%s3919_s25 + $0x10] sm:$0xff] %vm534_vm0, %v2210_v8 }
 0x169   : > { %v2106_v41 = vpop.f32.mrf.mxu1  ;;  %v1704_v39 = vadd.f32 %v3814_v34, %v1607_v47  ;;  %v1620_v21 = vadd.f32 %v2735_v2, %v3764_v36  ;;  %v4072_v47 = vld [vmem:[#allocation14_spill] sm:$0xff]  ;;  %v4075_v2 = vld [vmem:[#allocation7_spill] sm:$0xff] }
 0x16a   : > { %v2808_v5 = vpop.f32.mrf.mxu0  ;;  %v2177_v1 = vadd.f32 %v3882_v15, %v2154_v18  ;;  %v2211_v59 = vadd.f32 %v2195_v38, %v2179_v27  ;;  %v2107_v19 = vadd.f32 %v2803_v56, %v2106_v41  ;;  %2224 = vst.msk [vmem:[%s3919_s25] sm:$0xff] %vm534_vm0, %v2208_v3  ;;  %v2738_v56 = vadd.f32 %v3832_v10, %v3828_v35  ;;  %v4067_v35 = vld [vmem:[#allocation8_spill] sm:$0xff]  ;;  %v4070_v3 = vld [vmem:[#allocation13_spill] sm:$0xff] }
 0x16b   : > { %v2809_v30 = vadd.f32 %v2808_v5, %v2807_v26  ;;  %v2940_v20 = vpop.f32.mrf.mxu1  ;;  %v1717_v10 = vadd.f32 %v4067_v35, %v1620_v21  ;;  %v4069_v5 = vld [vmem:[#allocation11_spill] sm:$0xff] }
 0x16c   : > { %v2810_v11 = vpop.f32.mrf.mxu0  ;;  %v2209_v24 = vadd.f32 %v2193_v45, %v2177_v1  ;;  %v2157_v13 = vadd.f32 %v2107_v19, %v1701_v28  ;;  %2227 = vst.msk [vmem:[%s3919_s25 + $0x18] sm:$0xff] %vm534_vm0, %v2211_v59  ;;  %v2741_v18 = vadd.f32 %v4070_v3, %v4069_v5  ;;  %v4081_v35 = vld [vmem:[#allocation19_spill] sm:$0xff]  ;;  %v4083_v5 = vld [vmem:[#allocation12_spill] sm:$0xff] }
 0x16d   : > { %v2115_v22 = vadd.f32 %v2939_v43, %v2809_v30  ;;  %v2109_v23 = vpop.f32.mrf.mxu1 }
 0x16e   : > { %v2811_v31 = vpop.f32.mrf.mxu0  ;;  %v2180_v51 = vadd.f32 %v3882_v15, %v2157_v13  ;;  %v2110_v48 = vadd.f32 %v2806_v42, %v2109_v23  ;;  %2225 = vst.msk [vmem:[%s3919_s25 + $0x8] sm:$0xff] %vm534_vm0, %v2209_v24 }
 0x16f   : > { %v2159_v32 = vadd.f32 %v2115_v22, %v1709_v58  ;;  %v2812_v33 = vadd.f32 %v2811_v31, %v2810_v11  ;;  %v2943_v53 = vpop.f32.mrf.mxu1  ;;  %v4071_v11 = vld [vmem:[#allocation10_spill] sm:$0xff] }
 0x170   : > { %v2813_v46 = vpop.f32.mrf.mxu0  ;;  %v2212_v37 = vadd.f32 %v2196_v60, %v2180_v51  ;;  %v2158_v26 = vadd.f32 %v2110_v48, %v1704_v39  ;;  %v4068_v60 = vld [vmem:[#allocation2_spill] sm:$0xff] }
 0x171   : > { %v2182_v38 = vadd.f32 %v3882_v15, %v2159_v32  ;;  %v2118_v45 = vadd.f32 %v2940_v20, %v2812_v33  ;;  %v2122_v7 = vpop.f32.mrf.mxu1  ;;  %v4077_v51 = vld [vmem:[#allocation18_spill] sm:$0xff] }
 0x172   : > { %v2814_v40 = vpop.f32.mrf.mxu0  ;;  %v2181_v12 = vadd.f32 %v3882_v15, %v2158_v26  ;;  %2228 = vst.msk [vmem:[%s3919_s25 + $0x20] sm:$0xff] %vm534_vm0, %v2212_v37 }
 0x173   : > { %v2214_v34 = vadd.f32 %v2198_v57, %v2182_v38  ;;  %v2160_v4 = vadd.f32 %v2118_v45, %v1712_v0  ;;  %v2815_v8 = vadd.f32 %v2814_v40, %v2813_v46  ;;  %v1623_v57 = vadd.f32 %v2738_v56, %v4068_v60  ;;  %v2944_v36 = vpop.f32.mrf.mxu1  ;;  %v4076_v46 = vld [vmem:[#allocation17_spill] sm:$0xff]  ;;  %v4078_v56 = vld [vmem:[#allocation4_spill] sm:$0xff] }
 0x174   : > { %v2816_v16 = vpop.f32.mrf.mxu0  ;;  %v2213_v27 = vadd.f32 %v3893_v62, %v2181_v12  ;;  %v4073_v62 = vld [vmem:[#allocation16_spill] sm:$0xff]  ;;  %v2747_v48 = vadd.f32 %v4077_v51, %v4076_v46 }
 0x175   : > { %v2183_v61 = vadd.f32 %v3882_v15, %v2160_v4  ;;  %2230 = vst.msk [vmem:[%s3919_s25 + $0x30] sm:$0xff] %vm534_vm0, %v2214_v34  ;;  %v2123_v14 = vadd.f32 %v2815_v8, %v2122_v7  ;;  %v2125_v42 = vpop.f32.mrf.mxu1  ;;  %v1720_v1 = vadd.f32 %v4071_v11, %v1623_v57  ;;  %v2744_v20 = vadd.f32 %v4073_v62, %v4072_v47  ;;  %v4079_v4 = vld [vmem:[#allocation9_spill] sm:$0xff] }
 0x176   : > { %v2817_v43 = vpop.f32.mrf.mxu0  ;;  %2229 = vst.msk [vmem:[%s3919_s25 + $0x28] sm:$0xff] %vm534_vm0, %v2213_v27 }
 0x177   : > { %v2215_v30 = vadd.f32 %v3897_v25, %v2183_v61  ;;  %v2818_v58 = vadd.f32 %v2817_v43, %v2816_v16  ;;  %v2161_v28 = vadd.f32 %v2123_v14, %v1717_v10  ;;  %v2947_v44 = vpop.f32.mrf.mxu1  ;;  %v4074_v25 = vld [vmem:[#allocation3_spill] sm:$0xff]  ;;  %v1631_v40 = vadd.f32 %v2744_v20, %v4078_v56  ;;  %v4080_v16 = vld [vmem:[#allocation5_spill] sm:$0xff]  ;;  %v4082_v10 = vld [vmem:[#allocation20_spill] sm:$0xff] }
 0x178   : > { %v2819_v41 = vpop.f32.mrf.mxu0  ;;  %v1628_v31 = vadd.f32 %v2741_v18, %v4074_v25  ;;  %v1636_v7 = vadd.f32 %v2747_v48, %v4080_v16  ;;  %v2750_v60 = vadd.f32 %v4082_v10, %v4081_v35 }
 0x179   : > { %v2126_v59 = vadd.f32 %v2818_v58, %v2125_v42  ;;  %2231 = vst.msk [vmem:[%s3919_s25 + $0x38] sm:$0xff] %vm534_vm0, %v2215_v30  ;;  %v2184_v19 = vadd.f32 %v3882_v15, %v2161_v28  ;;  %v2138_v45 = vpop.f32.mrf.mxu1  ;;  %v1728_v21 = vadd.f32 %v4079_v4, %v1631_v40  ;;  %v4084_v58 = vld [vmem:[#allocation6_spill] sm:$0xff] }
 0x17a   : > { %v2820_v22 = vpop.f32.mrf.mxu0  ;;  %v1725_v0 = vadd.f32 %v4075_v2, %v1628_v31  ;;  %v1733_v3 = vadd.f32 %v4083_v5, %v1636_v7  ;;  %v1639_v28 = vadd.f32 %v2750_v60, %v4084_v58 }
 0x17b   : > { %v2162_v24 = vadd.f32 %v2126_v59, %v1720_v1  ;;  %v2821_v13 = vadd.f32 %v2820_v22, %v2819_v41  ;;  %v2216_v32 = vadd.f32 %v3900_v9, %v2184_v19  ;;  %v2948_v61 = vpop.f32.mrf.mxu1  ;;  %v4085_v1 = vld [vmem:[#allocation15_spill] sm:$0xff] }
 0x17c   : > { %v2822_v33 = vpop.f32.mrf.mxu0  ;;  %v1736_v59 = vadd.f32 %v4085_v1, %v1639_v28 }
 0x17d   : > { %v2185_v39 = vadd.f32 %v3882_v15, %v2162_v24  ;;  %v2131_v23 = vadd.f32 %v2943_v53, %v2821_v13  ;;  %2232 = vst.msk [vmem:[%s3919_s25 + $0x40] sm:$0xff] %vm534_vm0, %v2216_v32  ;;  %v2141_v30 = vpop.f32.mrf.mxu1 }
 0x17e   : > { %v2823_v38 = vpop.f32.mrf.mxu0 }
 0x17f   : > { %v2217_v37 = vadd.f32 %v3903_v6, %v2185_v39  ;;  %v2163_v26 = vadd.f32 %v2131_v23, %v1725_v0  ;;  %v2824_v9 = vadd.f32 %v2823_v38, %v2822_v33 }
 0x180   : > { %v2825_v34 = vpop.f32.mrf.mxu0 }
 0x181   : > { %v2186_v8 = vadd.f32 %v3882_v15, %v2163_v26  ;;  %v2134_v53 = vadd.f32 %v2944_v36, %v2824_v9  ;;  %2233 = vst.msk [vmem:[%s3919_s25 + $0x48] sm:$0xff] %vm534_vm0, %v2217_v37 }
 0x182   : > { %v2826_v12 = vpop.f32.mrf.mxu0 }
 0x183   : > { %v2218_v6 = vadd.f32 %v3907_v55, %v2186_v8  ;;  %v2164_v57 = vadd.f32 %v2134_v53, %v1728_v21  ;;  %v2827_v14 = vadd.f32 %v2826_v12, %v2825_v34 }
 0x184   : > { %v2828_v43 = vpop.f32.mrf.mxu0 }
 0x185   : > { %v2187_v18 = vadd.f32 %v3882_v15, %v2164_v57  ;;  %v2139_v36 = vadd.f32 %v2827_v14, %v2138_v45  ;;  %2234 = vst.msk [vmem:[%s3919_s25 + $0x50] sm:$0xff] %vm534_vm0, %v2218_v6 }
 0x186   : > { %v2829_v27 = vpop.f32.mrf.mxu0 }
 0x187   : > { %v2219_v41 = vadd.f32 %v3910_v17, %v2187_v18  ;;  %v2165_v42 = vadd.f32 %v2139_v36, %v1733_v3  ;;  %v2830_v55 = vadd.f32 %v2829_v27, %v2828_v43 }
 0x188   : > { %v2831_v11 = vpop.f32.mrf.mxu0 }
 0x189   : > { %v2188_v19 = vadd.f32 %v3882_v15, %v2165_v42  ;;  %v2142_v22 = vadd.f32 %v2830_v55, %v2141_v30  ;;  %2235 = vst.msk [vmem:[%s3919_s25 + $0x58] sm:$0xff] %vm534_vm0, %v2219_v41 }
 0x18a   : > { %v2832_v47 = vpop.f32.mrf.mxu0 }
 0x18b   : > { %v2220_v62 = vadd.f32 %v3913_v52, %v2188_v19  ;;  %v2166_v20 = vadd.f32 %v2142_v22, %v1736_v59  ;;  %v2833_v25 = vadd.f32 %v2832_v47, %v2831_v11 }
 0x18c   : > { %v2834_v31 = vpop.f32.mrf.mxu0 }
 0x18d   : > { %v2189_v17 = vadd.f32 %v3882_v15, %v2166_v20  ;;  %v2147_v24 = vadd.f32 %v2947_v44, %v2833_v25  ;;  %2236 = vst.msk [vmem:[%s3919_s25 + $0x60] sm:$0xff] %vm534_vm0, %v2220_v62 }
 0x18e   : > { %v2835_v13 = vpop.f32.mrf.mxu0 }
 0x18f   : > { %v2221_v32 = vadd.f32 %v3928_v49, %v2189_v17  ;;  %v2167_v33 = vadd.f32 %v2147_v24, %v3857_v54  ;;  %v2836_v2 = vadd.f32 %v2835_v13, %v2834_v31 }
 0x191   : > { %v2190_v0 = vadd.f32 %v3882_v15, %v2167_v33  ;;  %v2150_v39 = vadd.f32 %v2948_v61, %v2836_v2  ;;  %2237 = vst.msk [vmem:[%s3919_s25 + $0x68] sm:$0xff] %vm534_vm0, %v2221_v32 }
 0x193   : > { %v2222_v52 = vadd.f32 %v3931_v63, %v2190_v0  ;;  %v2168_v23 = vadd.f32 %v2150_v39, %v3872_v50 }
 0x195   : > { %v2191_v46 = vadd.f32 %v3882_v15, %v2168_v23  ;;  %2238 = vst.msk [vmem:[%s3919_s25 + $0x70] sm:$0xff] %vm534_vm0, %v2222_v52 }
 0x197   : > { %v2223_v44 = vadd.f32 %v3934_v29, %v2191_v46 }
 0x199   : > { %2239 = vst.msk [vmem:[%s3919_s25 + $0x78] sm:$0xff] %vm534_vm0, %v2223_v44 }
 0x19a PF: > { %s18_s9 = sadd.s32 1, %s3101_s9   ;;  %s4086_s27 = smov %s3093_s29 }
 0x19b   : > { %p15_p11 = scmp.ge.s32.totalorder %s18_s9, 6   ;;  %s4087_s28 = smov %s3097_s30 }
 0x19c   : > { %s4088_s29 = smov %s4091_s10  ;;  %s4089_s30 = smov %s4095_s11 }
 0x19d   :  { %17 = sbr.rel (!%p15_p11) target bundleno = 3 (0x3), region = 93 }

</bundles_post_ra>
